<compile_context>
chip_gen: v5e
topology: v5e:2x2
jax: 0.10.0
libtpu: 0.0.40
codegen_flags: <defaults>
</compile_context>

<pallas_src>
import functools

import jax
import jax.numpy as jnp
from jax.experimental import pallas as pl
from jax.experimental.pallas import tpu as pltpu


# ---------------------------------------------------------------------------
# In-kernel helpers (traced inside kernels)
# ---------------------------------------------------------------------------
def _layernorm(v, g, b, eps=1e-5):
    mu = jnp.mean(v, axis=-1, keepdims=True)
    vc = v - mu
    var = jnp.mean(vc * vc, axis=-1, keepdims=True)
    return vc * jax.lax.rsqrt(var + eps) * g + b


def _mm(a, w_bf16):
    # bf16 operands on the MXU, f32 accumulation.
    return jnp.dot(a.astype(jnp.bfloat16), w_bf16,
                   preferred_element_type=jnp.float32)


# ---------------------------------------------------------------------------
# Fused multi-layer decoder kernel.
# grid = (batch, num_layers); batch "parallel", layers "arbitrary".
# x_out_ref (block index constant over the layer axis) doubles as the
# VMEM-resident residual stream across layers.
# ---------------------------------------------------------------------------
def _fused_layers_kernel(
    x_ref, slots_ref,
    n1_g_ref, n1_b_ref, sa_in_w_ref, sa_in_b_ref, sa_out_w_ref, sa_out_b_ref,
    n2_g_ref, n2_b_ref, ca_in_w_ref, ca_in_b_ref, ca_out_w_ref, ca_out_b_ref,
    n3_g_ref, n3_b_ref, mlp_w1_ref, mlp_b1_ref, mlp_w2_ref, mlp_b2_ref,
    x_out_ref, attn_out_ref,
    *, num_heads,
):
    l = pl.program_id(1)
    last = pl.num_programs(1) - 1
    L, D = x_ref.shape[1], x_ref.shape[2]
    K = slots_ref.shape[1]
    H = num_heads
    Dh = D // H
    scale = 1.0 / float(Dh) ** 0.5

    # Initialize the resident residual stream from HBM once per batch element.
    @pl.when(l == 0)
    def _():
        x_out_ref[0] = x_ref[0]

    x = x_out_ref[0]          # (L, D) f32, lives in VMEM across all layers
    slots = slots_ref[0]      # (K, D) f32

    def split_heads(m, base, rows):
        # (rows, H*Dh) slab -> (H, rows, Dh) head-batched stack (leading-dim
        # concat only; no major-dim transposes).
        return jnp.stack(
            [m[:, base + h * Dh: base + (h + 1) * Dh] for h in range(H)],
            axis=0)

    def merge_heads(o):
        # (H, rows, Dh) -> (rows, H*Dh)
        return jnp.concatenate([o[h] for h in range(H)], axis=-1)

    # ----------------- causal self-attention (pre-LN) -----------------
    xn = _layernorm(x, n1_g_ref[0], n1_b_ref[0])
    qkv = _mm(xn, sa_in_w_ref[0]) + sa_in_b_ref[0]            # (L, 3D) f32
    q = (split_heads(qkv, 0, L) * scale).astype(jnp.bfloat16)  # scale folded into q
    k = split_heads(qkv, D, L).astype(jnp.bfloat16)
    v = split_heads(qkv, 2 * D, L).astype(jnp.bfloat16)

    row = jax.lax.broadcasted_iota(jnp.int32, (L, L), 0)
    col = jax.lax.broadcasted_iota(jnp.int32, (L, L), 1)
    causal_bias = jnp.where(col > row, jnp.float32(-1e30), jnp.float32(0.0))

    s = jnp.einsum('hqd,hkd->hqk', q, k,
                   preferred_element_type=jnp.float32) + causal_bias
    s = s - jnp.max(s, axis=-1, keepdims=True)
    e = jnp.exp(s)
    p = e * pl.reciprocal(jnp.sum(e, axis=-1, keepdims=True), approx=True)
    o = jnp.einsum('hqk,hkd->hqd', p.astype(jnp.bfloat16), v,
                   preferred_element_type=jnp.float32)         # (H, L, Dh)
    x = x + _mm(merge_heads(o), sa_out_w_ref[0]) + sa_out_b_ref[0]

    # ----------------- cross-attention over slots (pre-LN) -----------------
    xn = _layernorm(x, n2_g_ref[0], n2_b_ref[0])
    w_in = ca_in_w_ref[0]                                      # (D, 3D) bf16
    b_in = ca_in_b_ref[0]                                      # (1, 3D) f32
    q_all = _mm(xn, w_in[:, :D]) + b_in[:, :D]                 # (L, D)
    kv = _mm(slots, w_in[:, D:]) + b_in[:, D:]                 # (K, 2D)
    qc = (split_heads(q_all, 0, L) * scale).astype(jnp.bfloat16)   # (H, L, Dh)
    kc = split_heads(kv, 0, K).astype(jnp.bfloat16)                # (H, K, Dh)
    vc = split_heads(kv, D, K).astype(jnp.bfloat16)                # (H, K, Dh)

    sc = jnp.einsum('hqd,hkd->hqk', qc, kc,
                    preferred_element_type=jnp.float32)        # (H, L, K)
    sc = sc - jnp.max(sc, axis=-1, keepdims=True)
    ec = jnp.exp(sc)
    pc = ec / jnp.sum(ec, axis=-1, keepdims=True)              # exact (alpha)
    oc = jnp.einsum('hqk,hkd->hqd', pc.astype(jnp.bfloat16), vc,
                    preferred_element_type=jnp.float32)        # (H, L, Dh)
    x = x + _mm(merge_heads(oc), ca_out_w_ref[0]) + ca_out_b_ref[0]

    # Only the last layer's head-mean cross-attention map is consumed;
    # emit it K-major so the lane dim is L (lane-dense stores).
    @pl.when(l == last)
    def _():
        attn_out_ref[0] = jnp.transpose(jnp.mean(pc, axis=0))  # (K, L)

    # ----------------- MLP (pre-LN) -----------------
    xn = _layernorm(x, n3_g_ref[0], n3_b_ref[0])
    hdn = jnp.maximum(_mm(xn, mlp_w1_ref[0]) + mlp_b1_ref[0], 0.0)
    x = x + _mm(hdn, mlp_w2_ref[0]) + mlp_b2_ref[0]

    x_out_ref[0] = x


def fused_decoder_layers(x, slots, p, num_heads):
    B, L, D = x.shape
    K = slots.shape[1]
    NL = p["self_in_w"].shape[0]
    Hd = p["mlp_w1"].shape[2]

    def wspec(r, c):
        # Per-layer stacked weight: block index follows the layer grid axis so
        # layer l+1 weights prefetch behind layer l compute (double-buffered).
        return pl.BlockSpec((1, r, c), lambda b, l: (l, 0, 0))

    kern = functools.partial(_fused_layers_kernel, num_heads=num_heads)
    x_out, attn = pl.pallas_call(
        kern,
        grid=(B, NL),
        in_specs=[
            pl.BlockSpec((1, L, D), lambda b, l: (b, 0, 0)),   # x (fetched once / b)
            pl.BlockSpec((1, K, D), lambda b, l: (b, 0, 0)),   # slots
            wspec(1, D), wspec(1, D),                          # LN1 g, b
            wspec(D, 3 * D), wspec(1, 3 * D),                  # self in-proj
            wspec(D, D), wspec(1, D),                          # self out-proj
            wspec(1, D), wspec(1, D),                          # LN2 g, b
            wspec(D, 3 * D), wspec(1, 3 * D),                  # cross in-proj
            wspec(D, D), wspec(1, D),                          # cross out-proj
            wspec(1, D), wspec(1, D),                          # LN3 g, b
            wspec(D, Hd), wspec(1, Hd),                        # MLP w1, b1
            wspec(Hd, D), wspec(1, D),                         # MLP w2, b2
        ],
        out_specs=(
            pl.BlockSpec((1, L, D), lambda b, l: (b, 0, 0)),   # resident residual
            pl.BlockSpec((1, K, L), lambda b, l: (b, 0, 0)),   # lane-dense attn map
        ),
        out_shape=(
            jax.ShapeDtypeStruct((B, L, D), jnp.float32),
            jax.ShapeDtypeStruct((B, K, L), jnp.float32),
        ),
        compiler_params=pltpu.CompilerParams(
            dimension_semantics=("parallel", "arbitrary"),
            vmem_limit_bytes=64 * 1024 * 1024,
        ),
    )(
        x, slots,
        p["n1_g"], p["n1_b"],
        p["self_in_w"], p["self_in_b"], p["self_out_w"], p["self_out_b"],
        p["n2_g"], p["n2_b"],
        p["cross_in_w"], p["cross_in_b"], p["cross_out_w"], p["cross_out_b"],
        p["n3_g"], p["n3_b"],
        p["mlp_w1"], p["mlp_b1"], p["mlp_w2"], p["mlp_b2"],
    )
    return x_out, attn


# ---------------------------------------------------------------------------
# Row-tiled slot projection + layernorm, and final output projection
# ---------------------------------------------------------------------------
def _row_tile(m):
    # Largest tile in {512, 256, 128} that divides m; else the whole extent.
    for t in (512, 256, 128):
        if m % t == 0:
            return t
    return m


def _slot_proj_norm_kernel(s_ref, w_ref, b_ref, g_ref, beta_ref, o_ref):
    y = _mm(s_ref[...], w_ref[...]) + b_ref[...]
    o_ref[...] = _layernorm(y, g_ref[...], beta_ref[...])


def slot_proj_norm(s2d, w, b, g, beta):
    M, Din = s2d.shape
    D = w.shape[1]
    TM = _row_tile(M)
    return pl.pallas_call(
        _slot_proj_norm_kernel,
        grid=(M // TM,),
        in_specs=[
            pl.BlockSpec((TM, Din), lambda i: (i, 0)),
            pl.BlockSpec((Din, D), lambda i: (0, 0)),
            pl.BlockSpec((1, D), lambda i: (0, 0)),
            pl.BlockSpec((1, D), lambda i: (0, 0)),
            pl.BlockSpec((1, D), lambda i: (0, 0)),
        ],
        out_specs=pl.BlockSpec((TM, D), lambda i: (i, 0)),
        out_shape=jax.ShapeDtypeStruct((M, D), jnp.float32),
        compiler_params=pltpu.CompilerParams(
            dimension_semantics=("parallel",)),
    )(s2d, w, b, g, beta)


def _linear_kernel(x_ref, w_ref, b_ref, o_ref):
    o_ref[...] = _mm(x_ref[...], w_ref[...]) + b_ref[...]


def linear(x2d, w, b):
    M, Din = x2d.shape
    Dout = w.shape[1]
    TM = _row_tile(M)
    return pl.pallas_call(
        _linear_kernel,
        grid=(M // TM,),
        in_specs=[
            pl.BlockSpec((TM, Din), lambda i: (i, 0)),
            pl.BlockSpec((Din, Dout), lambda i: (0, 0)),
            pl.BlockSpec((1, Dout), lambda i: (0, 0)),
        ],
        out_specs=pl.BlockSpec((TM, Dout), lambda i: (i, 0)),
        out_shape=jax.ShapeDtypeStruct((M, Dout), jnp.float32),
        compiler_params=pltpu.CompilerParams(
            dimension_semantics=("parallel",)),
    )(x2d, w, b)


# ---------------------------------------------------------------------------
# Full decoder forward
# ---------------------------------------------------------------------------
def transformer_decoder(slots, target_features, params, *, num_heads, num_tokens):
    B, K, slot_dim = slots.shape
    D = params["bos"].shape[-1]

    s = slot_proj_norm(slots.reshape(B * K, slot_dim),
                       params["slot_proj_w"], params["slot_proj_b"],
                       params["slot_norm_g"], params["slot_norm_b"])
    s = s.reshape(B, K, D)

    bos = jnp.broadcast_to(params["bos"], (B, 1, D))
    shifted = jnp.concatenate([bos, target_features[:, :-1]], axis=1)
    x = shifted + params["pos_emb"]

    x, attn_kl = fused_decoder_layers(x, s, params, num_heads)   # attn_kl: (B, K, L)

    recon = linear(x.reshape(B * num_tokens, D),
                   params["out_w"], params["out_b"]).reshape(B, num_tokens, D)

    grid_size = int(num_tokens ** 0.5)
    alpha = attn_kl.reshape(B, K, grid_size, grid_size)   # already (B, K, L)
    return recon, alpha


# ---------------------------------------------------------------------------
# Deterministic parameter init.
# Matmul weights bf16 (stacked with a leading num_layers axis), rest f32.
# ---------------------------------------------------------------------------
def init_params(key, *, num_layers, d_model, hidden_dim, num_tokens, slot_dim):
    D, Hd, NL = d_model, hidden_dim, num_layers

    def nrm(k, shape, scale=0.02):
        return (scale * jax.random.normal(k, shape, dtype=jnp.float32)
                ).astype(jnp.bfloat16)

    keys = iter(jax.random.split(key, 12))
    params = {
        "bos": jax.random.normal(next(keys), (1, 1, D), dtype=jnp.float32),
        "pos_emb": jax.random.normal(next(keys), (1, num_tokens, D),
                                     dtype=jnp.float32),
        "slot_proj_w": nrm(next(keys), (slot_dim, D)),
        "slot_proj_b": jnp.zeros((1, D), jnp.float32),
        "slot_norm_g": jnp.ones((1, D), jnp.float32),
        "slot_norm_b": jnp.zeros((1, D), jnp.float32),
        "out_w": nrm(next(keys), (D, D)),
        "out_b": jnp.zeros((1, D), jnp.float32),
        # ---- per-layer weights, stacked along a leading num_layers axis ----
        "n1_g": jnp.ones((NL, 1, D), jnp.float32),
        "n1_b": jnp.zeros((NL, 1, D), jnp.float32),
        "n2_g": jnp.ones((NL, 1, D), jnp.float32),
        "n2_b": jnp.zeros((NL, 1, D), jnp.float32),
        "n3_g": jnp.ones((NL, 1, D), jnp.float32),
        "n3_b": jnp.zeros((NL, 1, D), jnp.float32),
        "self_in_w": nrm(next(keys), (NL, D, 3 * D)),
        "self_in_b": jnp.zeros((NL, 1, 3 * D), jnp.float32),
        "self_out_w": nrm(next(keys), (NL, D, D)),
        "self_out_b": jnp.zeros((NL, 1, D), jnp.float32),
        "cross_in_w": nrm(next(keys), (NL, D, 3 * D)),
        "cross_in_b": jnp.zeros((NL, 1, 3 * D), jnp.float32),
        "cross_out_w": nrm(next(keys), (NL, D, D)),
        "cross_out_b": jnp.zeros((NL, 1, D), jnp.float32),
        "mlp_w1": nrm(next(keys), (NL, D, Hd)),
        "mlp_b1": jnp.zeros((NL, 1, Hd), jnp.float32),
        "mlp_w2": nrm(next(keys), (NL, Hd, D)),
        "mlp_b2": jnp.zeros((NL, 1, D), jnp.float32),
    }
    return params


if __name__ == "__main__":
    # Small shapes consistent with the module's forward.
    NUM_LAYERS = 2
    NUM_HEADS = 4
    D_MODEL = 32
    HIDDEN_DIM = 64
    NUM_TOKENS = 16   # grid_size = 4
    SLOT_DIM = 16
    B = 2             # even -> both v7x TensorCores fed by the "parallel" axis
    NUM_SLOTS = 4

    key = jax.random.PRNGKey(0)
    kp, ks, kt = jax.random.split(key, 3)

    params = init_params(
        kp, num_layers=NUM_LAYERS, d_model=D_MODEL, hidden_dim=HIDDEN_DIM,
        num_tokens=NUM_TOKENS, slot_dim=SLOT_DIM,
    )
    slots = jax.random.normal(ks, (B, NUM_SLOTS, SLOT_DIM), dtype=jnp.float32)
    target_features = jax.random.normal(
        kt, (B, NUM_TOKENS, D_MODEL), dtype=jnp.float32)

    fwd = jax.jit(functools.partial(
        transformer_decoder, num_heads=NUM_HEADS, num_tokens=NUM_TOKENS))
    recon, alpha = fwd(slots, target_features, params)
    jax.block_until_ready((recon, alpha))

    assert recon.shape == (B, NUM_TOKENS, D_MODEL)
    assert alpha.shape == (B, NUM_SLOTS, 4, 4)
    assert bool(jnp.all(jnp.isfinite(recon))) and bool(jnp.all(jnp.isfinite(alpha)))
    print("KERNEL_OK")
</pallas_src>

<mosaic_0001>
module attributes {stable_mosaic.version = 11 : i64} {
  func.func @_slot_proj_norm_kernel(%arg0: i32, %arg1: memref<8x16xf32, #tpu.memory_space<vmem>>, %arg2: memref<16x32xbf16, #tpu.memory_space<vmem>>, %arg3: memref<1x32xf32, #tpu.memory_space<vmem>>, %arg4: memref<1x32xf32, #tpu.memory_space<vmem>>, %arg5: memref<1x32xf32, #tpu.memory_space<vmem>>, %arg6: memref<8x32xf32, #tpu.memory_space<vmem>>) attributes {dimension_semantics = [#tpu.dimension_semantics<parallel>], iteration_bounds = array<i64: 1>, scalar_prefetch = 0 : i64, scratch_operands = 0 : i64, tpu.core_type = #tpu.core_type<tc>, window_params = [{transform_indices = @transform_0, window_bounds = array<i64: 8, 16>}, {pipeline_mode = #tpu.pipeline_mode<synchronous>, transform_indices = @transform_1, window_bounds = array<i64: 16, 32>}, {pipeline_mode = #tpu.pipeline_mode<synchronous>, transform_indices = @transform_2, window_bounds = array<i64: 1, 32>}, {pipeline_mode = #tpu.pipeline_mode<synchronous>, transform_indices = @transform_3, window_bounds = array<i64: 1, 32>}, {pipeline_mode = #tpu.pipeline_mode<synchronous>, transform_indices = @transform_4, window_bounds = array<i64: 1, 32>}, {transform_indices = @transform_5, window_bounds = array<i64: 8, 32>}]} {
    %c0 = arith.constant 0 : index
    %c0_0 = arith.constant 0 : index
    %0 = vector.load %arg1[%c0, %c0_0] : memref<8x16xf32, #tpu.memory_space<vmem>>, vector<8x16xf32>
    %c0_1 = arith.constant 0 : index
    %c0_2 = arith.constant 0 : index
    %1 = vector.load %arg2[%c0_1, %c0_2] : memref<16x32xbf16, #tpu.memory_space<vmem>>, vector<16x32xbf16>
    %2 = arith.truncf %0 : vector<8x16xf32> to vector<8x16xbf16>
    %cst = arith.constant dense<0.000000e+00> : vector<8x32xf32>
    %3 = tpu.matmul %2, %1, %cst {dimension_numbers = #tpu.dot_dimension_numbers<[1], [0], [0], [1], [0, 0, 1, 1], [], []>} : vector<8x16xbf16>, vector<16x32xbf16>, vector<8x32xf32> -> vector<8x32xf32>
    %c0_3 = arith.constant 0 : index
    %c0_4 = arith.constant 0 : index
    %4 = vector.load %arg3[%c0_3, %c0_4] : memref<1x32xf32, #tpu.memory_space<vmem>>, vector<1x32xf32>
    %5 = vector.broadcast %4 : vector<1x32xf32> to vector<8x32xf32>
    %6 = arith.addf %3, %5 : vector<8x32xf32>
    %c0_5 = arith.constant 0 : index
    %c0_6 = arith.constant 0 : index
    %7 = vector.load %arg4[%c0_5, %c0_6] : memref<1x32xf32, #tpu.memory_space<vmem>>, vector<1x32xf32>
    %c0_7 = arith.constant 0 : index
    %c0_8 = arith.constant 0 : index
    %8 = vector.load %arg5[%c0_7, %c0_8] : memref<1x32xf32, #tpu.memory_space<vmem>>, vector<1x32xf32>
    %cst_9 = arith.constant dense<0.000000e+00> : vector<8xf32>
    %9 = vector.multi_reduction <add>, %6, %cst_9 [1] : vector<8x32xf32> to vector<8xf32>
    %10 = vector.shape_cast %9 : vector<8xf32> to vector<8x1xf32>
    %cst_10 = arith.constant 3.200000e+01 : f32
    %11 = vector.broadcast %cst_10 : f32 to vector<8x1xf32>
    %12 = arith.divf %10, %11 : vector<8x1xf32>
    %13 = vector.broadcast %12 : vector<8x1xf32> to vector<8x32xf32>
    %14 = arith.subf %6, %13 : vector<8x32xf32>
    %15 = arith.mulf %14, %14 : vector<8x32xf32>
    %cst_11 = arith.constant dense<0.000000e+00> : vector<8xf32>
    %16 = vector.multi_reduction <add>, %15, %cst_11 [1] : vector<8x32xf32> to vector<8xf32>
    %17 = vector.shape_cast %16 : vector<8xf32> to vector<8x1xf32>
    %cst_12 = arith.constant 3.200000e+01 : f32
    %18 = vector.broadcast %cst_12 : f32 to vector<8x1xf32>
    %19 = arith.divf %17, %18 : vector<8x1xf32>
    %cst_13 = arith.constant 9.99999974E-6 : f32
    %20 = vector.broadcast %cst_13 : f32 to vector<8x1xf32>
    %21 = arith.addf %19, %20 : vector<8x1xf32>
    %22 = math.rsqrt %21 : vector<8x1xf32>
    %23 = vector.broadcast %22 : vector<8x1xf32> to vector<8x32xf32>
    %24 = arith.mulf %14, %23 : vector<8x32xf32>
    %25 = vector.broadcast %7 : vector<1x32xf32> to vector<8x32xf32>
    %26 = arith.mulf %24, %25 : vector<8x32xf32>
    %27 = vector.broadcast %8 : vector<1x32xf32> to vector<8x32xf32>
    %28 = arith.addf %26, %27 : vector<8x32xf32>
    %c0_14 = arith.constant 0 : index
    %c0_15 = arith.constant 0 : index
    %29 = vector.load %arg6[%c0_14, %c0_15] : memref<8x32xf32, #tpu.memory_space<vmem>>, vector<8x32xf32>
    tpu.vector_store %arg6[%c0_14, %c0_15], %28 {strides = array<i32>} : memref<8x32xf32, #tpu.memory_space<vmem>>, vector<8x32xf32>,
    return
  }
  func.func @transform_0(%arg0: i32) -> (i32, i32) {
    %c0_i32 = arith.constant 0 : i32
    %c0_i32_0 = arith.constant 0 : i32
    return %arg0, %c0_i32 : i32, i32
  }
  func.func @transform_1(%arg0: i32) -> (i32, i32) {
    %c0_i32 = arith.constant 0 : i32
    %c0_i32_0 = arith.constant 0 : i32
    %c0_i32_1 = arith.constant 0 : i32
    return %c0_i32, %c0_i32_0 : i32, i32
  }
  func.func @transform_2(%arg0: i32) -> (i32, i32) {
    %c0_i32 = arith.constant 0 : i32
    %c0_i32_0 = arith.constant 0 : i32
    %c0_i32_1 = arith.constant 0 : i32
    return %c0_i32, %c0_i32_0 : i32, i32
  }
  func.func @transform_3(%arg0: i32) -> (i32, i32) {
    %c0_i32 = arith.constant 0 : i32
    %c0_i32_0 = arith.constant 0 : i32
    %c0_i32_1 = arith.constant 0 : i32
    return %c0_i32, %c0_i32_0 : i32, i32
  }
  func.func @transform_4(%arg0: i32) -> (i32, i32) {
    %c0_i32 = arith.constant 0 : i32
    %c0_i32_0 = arith.constant 0 : i32
    %c0_i32_1 = arith.constant 0 : i32
    return %c0_i32, %c0_i32_0 : i32, i32
  }
  func.func @transform_5(%arg0: i32) -> (i32, i32) {
    %c0_i32 = arith.constant 0 : i32
    %c0_i32_0 = arith.constant 0 : i32
    return %arg0, %c0_i32 : i32, i32
  }
}

module attributes {stable_mosaic.version = 11 : i64} {
  func.func @_linear_kernel(%arg0: i32, %arg1: memref<32x32xf32, #tpu.memory_space<vmem>>, %arg2: memref<32x32xbf16, #tpu.memory_space<vmem>>, %arg3: memref<1x32xf32, #tpu.memory_space<vmem>>, %arg4: memref<32x32xf32, #tpu.memory_space<vmem>>) attributes {dimension_semantics = [#tpu.dimension_semantics<parallel>], iteration_bounds = array<i64: 1>, scalar_prefetch = 0 : i64, scratch_operands = 0 : i64, tpu.core_type = #tpu.core_type<tc>, window_params = [{transform_indices = @transform_0, window_bounds = array<i64: 32, 32>}, {pipeline_mode = #tpu.pipeline_mode<synchronous>, transform_indices = @transform_1, window_bounds = array<i64: 32, 32>}, {pipeline_mode = #tpu.pipeline_mode<synchronous>, transform_indices = @transform_2, window_bounds = array<i64: 1, 32>}, {transform_indices = @transform_3, window_bounds = array<i64: 32, 32>}]} {
    %c0 = arith.constant 0 : index
    %c0_0 = arith.constant 0 : index
    %0 = vector.load %arg1[%c0, %c0_0] : memref<32x32xf32, #tpu.memory_space<vmem>>, vector<32x32xf32>
    %c0_1 = arith.constant 0 : index
    %c0_2 = arith.constant 0 : index
    %1 = vector.load %arg2[%c0_1, %c0_2] : memref<32x32xbf16, #tpu.memory_space<vmem>>, vector<32x32xbf16>
    %2 = arith.truncf %0 : vector<32x32xf32> to vector<32x32xbf16>
    %cst = arith.constant dense<0.000000e+00> : vector<32x32xf32>
    %3 = tpu.matmul %2, %1, %cst {dimension_numbers = #tpu.dot_dimension_numbers<[1], [0], [0], [1], [0, 0, 1, 1], [], []>} : vector<32x32xbf16>, vector<32x32xbf16>, vector<32x32xf32> -> vector<32x32xf32>
    %c0_3 = arith.constant 0 : index
    %c0_4 = arith.constant 0 : index
    %4 = vector.load %arg3[%c0_3, %c0_4] : memref<1x32xf32, #tpu.memory_space<vmem>>, vector<1x32xf32>
    %5 = vector.broadcast %4 : vector<1x32xf32> to vector<32x32xf32>
    %6 = arith.addf %3, %5 : vector<32x32xf32>
    %c0_5 = arith.constant 0 : index
    %c0_6 = arith.constant 0 : index
    %7 = vector.load %arg4[%c0_5, %c0_6] : memref<32x32xf32, #tpu.memory_space<vmem>>, vector<32x32xf32>
    tpu.vector_store %arg4[%c0_5, %c0_6], %6 {strides = array<i32>} : memref<32x32xf32, #tpu.memory_space<vmem>>, vector<32x32xf32>,
    return
  }
  func.func @transform_0(%arg0: i32) -> (i32, i32) {
    %c0_i32 = arith.constant 0 : i32
    %c0_i32_0 = arith.constant 0 : i32
    return %arg0, %c0_i32 : i32, i32
  }
  func.func @transform_1(%arg0: i32) -> (i32, i32) {
    %c0_i32 = arith.constant 0 : i32
    %c0_i32_0 = arith.constant 0 : i32
    %c0_i32_1 = arith.constant 0 : i32
    return %c0_i32, %c0_i32_0 : i32, i32
  }
  func.func @transform_2(%arg0: i32) -> (i32, i32) {
    %c0_i32 = arith.constant 0 : i32
    %c0_i32_0 = arith.constant 0 : i32
    %c0_i32_1 = arith.constant 0 : i32
    return %c0_i32, %c0_i32_0 : i32, i32
  }
  func.func @transform_3(%arg0: i32) -> (i32, i32) {
    %c0_i32 = arith.constant 0 : i32
    %c0_i32_0 = arith.constant 0 : i32
    return %arg0, %c0_i32 : i32, i32
  }
}

module attributes {stable_mosaic.version = 11 : i64} {
  func.func @_fused_layers_kernel(%arg0: i32, %arg1: i32, %arg2: memref<1x16x32xf32, #tpu.memory_space<vmem>>, %arg3: memref<1x4x32xf32, #tpu.memory_space<vmem>>, %arg4: memref<1x1x32xf32, #tpu.memory_space<vmem>>, %arg5: memref<1x1x32xf32, #tpu.memory_space<vmem>>, %arg6: memref<1x32x96xbf16, #tpu.memory_space<vmem>>, %arg7: memref<1x1x96xf32, #tpu.memory_space<vmem>>, %arg8: memref<1x32x32xbf16, #tpu.memory_space<vmem>>, %arg9: memref<1x1x32xf32, #tpu.memory_space<vmem>>, %arg10: memref<1x1x32xf32, #tpu.memory_space<vmem>>, %arg11: memref<1x1x32xf32, #tpu.memory_space<vmem>>, %arg12: memref<1x32x96xbf16, #tpu.memory_space<vmem>>, %arg13: memref<1x1x96xf32, #tpu.memory_space<vmem>>, %arg14: memref<1x32x32xbf16, #tpu.memory_space<vmem>>, %arg15: memref<1x1x32xf32, #tpu.memory_space<vmem>>, %arg16: memref<1x1x32xf32, #tpu.memory_space<vmem>>, %arg17: memref<1x1x32xf32, #tpu.memory_space<vmem>>, %arg18: memref<1x32x64xbf16, #tpu.memory_space<vmem>>, %arg19: memref<1x1x64xf32, #tpu.memory_space<vmem>>, %arg20: memref<1x64x32xbf16, #tpu.memory_space<vmem>>, %arg21: memref<1x1x32xf32, #tpu.memory_space<vmem>>, %arg22: memref<1x16x32xf32, #tpu.memory_space<vmem>>, %arg23: memref<1x4x16xf32, #tpu.memory_space<vmem>>) attributes {dimension_semantics = [#tpu.dimension_semantics<parallel>, #tpu.dimension_semantics<arbitrary>], iteration_bounds = array<i64: 2, 2>, scalar_prefetch = 0 : i64, scratch_operands = 0 : i64, tpu.core_type = #tpu.core_type<tc>, window_params = [{transform_indices = @transform_0, window_bounds = array<i64: 1, 16, 32>}, {transform_indices = @transform_1, window_bounds = array<i64: 1, 4, 32>}, {transform_indices = @transform_2, window_bounds = array<i64: 1, 1, 32>}, {transform_indices = @transform_3, window_bounds = array<i64: 1, 1, 32>}, {transform_indices = @transform_4, window_bounds = array<i64: 1, 32, 96>}, {transform_indices = @transform_5, window_bounds = array<i64: 1, 1, 96>}, {transform_indices = @transform_6, window_bounds = array<i64: 1, 32, 32>}, {transform_indices = @transform_7, window_bounds = array<i64: 1, 1, 32>}, {transform_indices = @transform_8, window_bounds = array<i64: 1, 1, 32>}, {transform_indices = @transform_9, window_bounds = array<i64: 1, 1, 32>}, {transform_indices = @transform_10, window_bounds = array<i64: 1, 32, 96>}, {transform_indices = @transform_11, window_bounds = array<i64: 1, 1, 96>}, {transform_indices = @transform_12, window_bounds = array<i64: 1, 32, 32>}, {transform_indices = @transform_13, window_bounds = array<i64: 1, 1, 32>}, {transform_indices = @transform_14, window_bounds = array<i64: 1, 1, 32>}, {transform_indices = @transform_15, window_bounds = array<i64: 1, 1, 32>}, {transform_indices = @transform_16, window_bounds = array<i64: 1, 32, 64>}, {transform_indices = @transform_17, window_bounds = array<i64: 1, 1, 64>}, {transform_indices = @transform_18, window_bounds = array<i64: 1, 64, 32>}, {transform_indices = @transform_19, window_bounds = array<i64: 1, 1, 32>}, {transform_indices = @transform_20, window_bounds = array<i64: 1, 16, 32>}, {transform_indices = @transform_21, window_bounds = array<i64: 1, 4, 16>}]} {
    %c0_i32 = arith.constant 0 : i32
    %0 = arith.cmpi eq, %arg1, %c0_i32 : i32
    %1 = arith.extui %0 : i1 to i32
    %c0_i32_0 = arith.constant 0 : i32
    %2 = arith.cmpi ne, %1, %c0_i32_0 : i32
    scf.if %2 {
      %c0_98 = arith.constant 0 : index
      %c0_99 = arith.constant 0 : index
      %c0_100 = arith.constant 0 : index
      %262 = vector.load %arg2[%c0_98, %c0_99, %c0_100] : memref<1x16x32xf32, #tpu.memory_space<vmem>>, vector<1x16x32xf32>
      %263 = vector.shape_cast %262 : vector<1x16x32xf32> to vector<16x32xf32>
      %c0_101 = arith.constant 0 : index
      %c0_102 = arith.constant 0 : index
      %c0_103 = arith.constant 0 : index
      %264 = vector.load %arg22[%c0_101, %c0_102, %c0_103] : memref<1x16x32xf32, #tpu.memory_space<vmem>>, vector<1x16x32xf32>
      %265 = vector.shape_cast %264 : vector<1x16x32xf32> to vector<16x32xf32>
      %266 = vector.shape_cast %263 : vector<16x32xf32> to vector<1x16x32xf32>
      tpu.vector_store %arg22[%c0_101, %c0_102, %c0_103], %266 {strides = array<i32>} : memref<1x16x32xf32, #tpu.memory_space<vmem>>, vector<1x16x32xf32>,
    } else {
    }
    %c0 = arith.constant 0 : index
    %c0_1 = arith.constant 0 : index
    %c0_2 = arith.constant 0 : index
    %3 = vector.load %arg22[%c0, %c0_1, %c0_2] : memref<1x16x32xf32, #tpu.memory_space<vmem>>, vector<1x16x32xf32>
    %4 = vector.shape_cast %3 : vector<1x16x32xf32> to vector<16x32xf32>
    %c0_3 = arith.constant 0 : index
    %c0_4 = arith.constant 0 : index
    %c0_5 = arith.constant 0 : index
    %5 = vector.load %arg3[%c0_3, %c0_4, %c0_5] : memref<1x4x32xf32, #tpu.memory_space<vmem>>, vector<1x4x32xf32>
    %6 = vector.shape_cast %5 : vector<1x4x32xf32> to vector<4x32xf32>
    %c0_6 = arith.constant 0 : index
    %c0_7 = arith.constant 0 : index
    %c0_8 = arith.constant 0 : index
    %7 = vector.load %arg4[%c0_6, %c0_7, %c0_8] : memref<1x1x32xf32, #tpu.memory_space<vmem>>, vector<1x1x32xf32>
    %8 = vector.shape_cast %7 : vector<1x1x32xf32> to vector<1x32xf32>
    %c0_9 = arith.constant 0 : index
    %c0_10 = arith.constant 0 : index
    %c0_11 = arith.constant 0 : index
    %9 = vector.load %arg5[%c0_9, %c0_10, %c0_11] : memref<1x1x32xf32, #tpu.memory_space<vmem>>, vector<1x1x32xf32>
    %10 = vector.shape_cast %9 : vector<1x1x32xf32> to vector<1x32xf32>
    %cst = arith.constant dense<0.000000e+00> : vector<16xf32>
    %11 = vector.multi_reduction <add>, %4, %cst [1] : vector<16x32xf32> to vector<16xf32>
    %12 = vector.shape_cast %11 : vector<16xf32> to vector<16x1xf32>
    %cst_12 = arith.constant 3.200000e+01 : f32
    %13 = vector.broadcast %cst_12 : f32 to vector<16x1xf32>
    %14 = arith.divf %12, %13 : vector<16x1xf32>
    %15 = vector.broadcast %14 : vector<16x1xf32> to vector<16x32xf32>
    %16 = arith.subf %4, %15 : vector<16x32xf32>
    %17 = arith.mulf %16, %16 : vector<16x32xf32>
    %cst_13 = arith.constant dense<0.000000e+00> : vector<16xf32>
    %18 = vector.multi_reduction <add>, %17, %cst_13 [1] : vector<16x32xf32> to vector<16xf32>
    %19 = vector.shape_cast %18 : vector<16xf32> to vector<16x1xf32>
    %cst_14 = arith.constant 3.200000e+01 : f32
    %20 = vector.broadcast %cst_14 : f32 to vector<16x1xf32>
    %21 = arith.divf %19, %20 : vector<16x1xf32>
    %cst_15 = arith.constant 9.99999974E-6 : f32
    %22 = vector.broadcast %cst_15 : f32 to vector<16x1xf32>
    %23 = arith.addf %21, %22 : vector<16x1xf32>
    %24 = math.rsqrt %23 : vector<16x1xf32>
    %25 = vector.broadcast %24 : vector<16x1xf32> to vector<16x32xf32>
    %26 = arith.mulf %16, %25 : vector<16x32xf32>
    %27 = vector.broadcast %8 : vector<1x32xf32> to vector<16x32xf32>
    %28 = arith.mulf %26, %27 : vector<16x32xf32>
    %29 = vector.broadcast %10 : vector<1x32xf32> to vector<16x32xf32>
    %30 = arith.addf %28, %29 : vector<16x32xf32>
    %c0_16 = arith.constant 0 : index
    %c0_17 = arith.constant 0 : index
    %c0_18 = arith.constant 0 : index
    %31 = vector.load %arg6[%c0_16, %c0_17, %c0_18] : memref<1x32x96xbf16, #tpu.memory_space<vmem>>, vector<1x32x96xbf16>
    %32 = vector.shape_cast %31 : vector<1x32x96xbf16> to vector<32x96xbf16>
    %33 = arith.truncf %30 : vector<16x32xf32> to vector<16x32xbf16>
    %cst_19 = arith.constant dense<0.000000e+00> : vector<16x96xf32>
    %34 = tpu.matmul %33, %32, %cst_19 {dimension_numbers = #tpu.dot_dimension_numbers<[1], [0], [0], [1], [0, 0, 1, 1], [], []>} : vector<16x32xbf16>, vector<32x96xbf16>, vector<16x96xf32> -> vector<16x96xf32>
    %c0_20 = arith.constant 0 : index
    %c0_21 = arith.constant 0 : index
    %c0_22 = arith.constant 0 : index
    %35 = vector.load %arg7[%c0_20, %c0_21, %c0_22] : memref<1x1x96xf32, #tpu.memory_space<vmem>>, vector<1x1x96xf32>
    %36 = vector.shape_cast %35 : vector<1x1x96xf32> to vector<1x96xf32>
    %37 = vector.broadcast %36 : vector<1x96xf32> to vector<16x96xf32>
    %38 = arith.addf %34, %37 : vector<16x96xf32>
    %39 = vector.extract_strided_slice %38 {offsets = [0, 0], sizes = [16, 8], strides = [1, 1]} : vector<16x96xf32> to vector<16x8xf32>
    %40 = vector.extract_strided_slice %38 {offsets = [0, 8], sizes = [16, 8], strides = [1, 1]} : vector<16x96xf32> to vector<16x8xf32>
    %41 = vector.extract_strided_slice %38 {offsets = [0, 16], sizes = [16, 8], strides = [1, 1]} : vector<16x96xf32> to vector<16x8xf32>
    %42 = vector.extract_strided_slice %38 {offsets = [0, 24], sizes = [16, 8], strides = [1, 1]} : vector<16x96xf32> to vector<16x8xf32>
    %43 = vector.shape_cast %39 : vector<16x8xf32> to vector<1x16x8xf32>
    %44 = vector.shape_cast %40 : vector<16x8xf32> to vector<1x16x8xf32>
    %45 = vector.shape_cast %41 : vector<16x8xf32> to vector<1x16x8xf32>
    %46 = vector.shape_cast %42 : vector<16x8xf32> to vector<1x16x8xf32>
    %47 = tpu.concatenate %43, %44, %45, %46 in 0 : vector<1x16x8xf32>, vector<1x16x8xf32>, vector<1x16x8xf32>, vector<1x16x8xf32> -> vector<4x16x8xf32>
    %cst_23 = arith.constant 0.353553385 : f32
    %48 = vector.broadcast %cst_23 : f32 to vector<4x16x8xf32>
    %49 = arith.mulf %47, %48 : vector<4x16x8xf32>
    %50 = arith.truncf %49 : vector<4x16x8xf32> to vector<4x16x8xbf16>
    %51 = vector.extract_strided_slice %38 {offsets = [0, 32], sizes = [16, 8], strides = [1, 1]} : vector<16x96xf32> to vector<16x8xf32>
    %52 = vector.extract_strided_slice %38 {offsets = [0, 40], sizes = [16, 8], strides = [1, 1]} : vector<16x96xf32> to vector<16x8xf32>
    %53 = vector.extract_strided_slice %38 {offsets = [0, 48], sizes = [16, 8], strides = [1, 1]} : vector<16x96xf32> to vector<16x8xf32>
    %54 = vector.extract_strided_slice %38 {offsets = [0, 56], sizes = [16, 8], strides = [1, 1]} : vector<16x96xf32> to vector<16x8xf32>
    %55 = vector.shape_cast %51 : vector<16x8xf32> to vector<1x16x8xf32>
    %56 = vector.shape_cast %52 : vector<16x8xf32> to vector<1x16x8xf32>
    %57 = vector.shape_cast %53 : vector<16x8xf32> to vector<1x16x8xf32>
    %58 = vector.shape_cast %54 : vector<16x8xf32> to vector<1x16x8xf32>
    %59 = tpu.concatenate %55, %56, %57, %58 in 0 : vector<1x16x8xf32>, vector<1x16x8xf32>, vector<1x16x8xf32>, vector<1x16x8xf32> -> vector<4x16x8xf32>
    %60 = arith.truncf %59 : vector<4x16x8xf32> to vector<4x16x8xbf16>
    %61 = vector.extract_strided_slice %38 {offsets = [0, 64], sizes = [16, 8], strides = [1, 1]} : vector<16x96xf32> to vector<16x8xf32>
    %62 = vector.extract_strided_slice %38 {offsets = [0, 72], sizes = [16, 8], strides = [1, 1]} : vector<16x96xf32> to vector<16x8xf32>
    %63 = vector.extract_strided_slice %38 {offsets = [0, 80], sizes = [16, 8], strides = [1, 1]} : vector<16x96xf32> to vector<16x8xf32>
    %64 = vector.extract_strided_slice %38 {offsets = [0, 88], sizes = [16, 8], strides = [1, 1]} : vector<16x96xf32> to vector<16x8xf32>
    %65 = vector.shape_cast %61 : vector<16x8xf32> to vector<1x16x8xf32>
    %66 = vector.shape_cast %62 : vector<16x8xf32> to vector<1x16x8xf32>
    %67 = vector.shape_cast %63 : vector<16x8xf32> to vector<1x16x8xf32>
    %68 = vector.shape_cast %64 : vector<16x8xf32> to vector<1x16x8xf32>
    %69 = tpu.concatenate %65, %66, %67, %68 in 0 : vector<1x16x8xf32>, vector<1x16x8xf32>, vector<1x16x8xf32>, vector<1x16x8xf32> -> vector<4x16x8xf32>
    %70 = arith.truncf %69 : vector<4x16x8xf32> to vector<4x16x8xbf16>
    %71 = tpu.iota {dimensions = array<i32: 0>} : vector<16x16xi32>
    %72 = tpu.iota {dimensions = array<i32: 1>} : vector<16x16xi32>
    %73 = arith.cmpi sgt, %72, %71 : vector<16x16xi32>
    %cst_24 = arith.constant -1.000000e+30 : f32
    %cst_25 = arith.constant 0.000000e+00 : f32
    %74 = vector.broadcast %cst_24 : f32 to vector<16x16xf32>
    %75 = vector.broadcast %cst_25 : f32 to vector<16x16xf32>
    %76 = arith.select %73, %74, %75 : vector<16x16xi1>, vector<16x16xf32>
    "tpu.trace_start"() <{level = 10 : i32, message = "hqd,hkd->hqk"}> : () -> ()
    %cst_26 = arith.constant dense<0.000000e+00> : vector<4x16x16xf32>
    %77 = tpu.matmul %50, %60, %cst_26 {dimension_numbers = #tpu.dot_dimension_numbers<[2], [2], [1], [1], [0, 0, 0, 1, 1, 1], [0], [0]>} : vector<4x16x8xbf16>, vector<4x16x8xbf16>, vector<4x16x16xf32> -> vector<4x16x16xf32>
    "tpu.trace_stop"() : () -> ()
    %78 = vector.shape_cast %76 : vector<16x16xf32> to vector<1x16x16xf32>
    %79 = vector.broadcast %78 : vector<1x16x16xf32> to vector<4x16x16xf32>
    %80 = arith.addf %77, %79 : vector<4x16x16xf32>
    %cst_27 = arith.constant dense<0xFF800000> : vector<4x16xf32>
    %81 = vector.multi_reduction <maximumf>, %80, %cst_27 [2] : vector<4x16x16xf32> to vector<4x16xf32>
    %82 = vector.shape_cast %81 : vector<4x16xf32> to vector<4x16x1xf32>
    %83 = vector.broadcast %82 : vector<4x16x1xf32> to vector<4x16x16xf32>
    %84 = arith.subf %80, %83 : vector<4x16x16xf32>
    %85 = math.exp %84 : vector<4x16x16xf32>
    %cst_28 = arith.constant dense<0.000000e+00> : vector<4x16xf32>
    %86 = vector.multi_reduction <add>, %85, %cst_28 [2] : vector<4x16x16xf32> to vector<4x16xf32>
    %87 = vector.shape_cast %86 : vector<4x16xf32> to vector<4x16x1xf32>
    %88 = tpu.reciprocal %87 {approx = true} : vector<4x16x1xf32> -> vector<4x16x1xf32>
    %89 = vector.broadcast %88 : vector<4x16x1xf32> to vector<4x16x16xf32>
    %90 = arith.mulf %85, %89 : vector<4x16x16xf32>
    %91 = arith.truncf %90 : vector<4x16x16xf32> to vector<4x16x16xbf16>
    "tpu.trace_start"() <{level = 10 : i32, message = "hqk,hkd->hqd"}> : () -> ()
    %cst_29 = arith.constant dense<0.000000e+00> : vector<4x16x8xf32>
    %92 = tpu.matmul %91, %70, %cst_29 {dimension_numbers = #tpu.dot_dimension_numbers<[2], [1], [1], [2], [0, 0, 0, 1, 1, 2], [0], [0]>} : vector<4x16x16xbf16>, vector<4x16x8xbf16>, vector<4x16x8xf32> -> vector<4x16x8xf32>
    "tpu.trace_stop"() : () -> ()
    %93 = vector.extract_strided_slice %92 {offsets = [0, 0, 0], sizes = [1, 16, 8], strides = [1, 1, 1]} : vector<4x16x8xf32> to vector<1x16x8xf32>
    %94 = vector.shape_cast %93 : vector<1x16x8xf32> to vector<16x8xf32>
    %95 = vector.extract_strided_slice %92 {offsets = [1, 0, 0], sizes = [1, 16, 8], strides = [1, 1, 1]} : vector<4x16x8xf32> to vector<1x16x8xf32>
    %96 = vector.shape_cast %95 : vector<1x16x8xf32> to vector<16x8xf32>
    %97 = vector.extract_strided_slice %92 {offsets = [2, 0, 0], sizes = [1, 16, 8], strides = [1, 1, 1]} : vector<4x16x8xf32> to vector<1x16x8xf32>
    %98 = vector.shape_cast %97 : vector<1x16x8xf32> to vector<16x8xf32>
    %99 = vector.extract_strided_slice %92 {offsets = [3, 0, 0], sizes = [1, 16, 8], strides = [1, 1, 1]} : vector<4x16x8xf32> to vector<1x16x8xf32>
    %100 = vector.shape_cast %99 : vector<1x16x8xf32> to vector<16x8xf32>
    %101 = tpu.concatenate %94, %96, %98, %100 in 1 : vector<16x8xf32>, vector<16x8xf32>, vector<16x8xf32>, vector<16x8xf32> -> vector<16x32xf32>
    %c0_30 = arith.constant 0 : index
    %c0_31 = arith.constant 0 : index
    %c0_32 = arith.constant 0 : index
    %102 = vector.load %arg8[%c0_30, %c0_31, %c0_32] : memref<1x32x32xbf16, #tpu.memory_space<vmem>>, vector<1x32x32xbf16>
    %103 = vector.shape_cast %102 : vector<1x32x32xbf16> to vector<32x32xbf16>
    %104 = arith.truncf %101 : vector<16x32xf32> to vector<16x32xbf16>
    %cst_33 = arith.constant dense<0.000000e+00> : vector<16x32xf32>
    %105 = tpu.matmul %104, %103, %cst_33 {dimension_numbers = #tpu.dot_dimension_numbers<[1], [0], [0], [1], [0, 0, 1, 1], [], []>} : vector<16x32xbf16>, vector<32x32xbf16>, vector<16x32xf32> -> vector<16x32xf32>
    %106 = arith.addf %4, %105 : vector<16x32xf32>
    %c0_34 = arith.constant 0 : index
    %c0_35 = arith.constant 0 : index
    %c0_36 = arith.constant 0 : index
    %107 = vector.load %arg9[%c0_34, %c0_35, %c0_36] : memref<1x1x32xf32, #tpu.memory_space<vmem>>, vector<1x1x32xf32>
    %108 = vector.shape_cast %107 : vector<1x1x32xf32> to vector<1x32xf32>
    %109 = vector.broadcast %108 : vector<1x32xf32> to vector<16x32xf32>
    %110 = arith.addf %106, %109 : vector<16x32xf32>
    %c0_37 = arith.constant 0 : index
    %c0_38 = arith.constant 0 : index
    %c0_39 = arith.constant 0 : index
    %111 = vector.load %arg10[%c0_37, %c0_38, %c0_39] : memref<1x1x32xf32, #tpu.memory_space<vmem>>, vector<1x1x32xf32>
    %112 = vector.shape_cast %111 : vector<1x1x32xf32> to vector<1x32xf32>
    %c0_40 = arith.constant 0 : index
    %c0_41 = arith.constant 0 : index
    %c0_42 = arith.constant 0 : index
    %113 = vector.load %arg11[%c0_40, %c0_41, %c0_42] : memref<1x1x32xf32, #tpu.memory_space<vmem>>, vector<1x1x32xf32>
    %114 = vector.shape_cast %113 : vector<1x1x32xf32> to vector<1x32xf32>
    %cst_43 = arith.constant dense<0.000000e+00> : vector<16xf32>
    %115 = vector.multi_reduction <add>, %110, %cst_43 [1] : vector<16x32xf32> to vector<16xf32>
    %116 = vector.shape_cast %115 : vector<16xf32> to vector<16x1xf32>
    %cst_44 = arith.constant 3.200000e+01 : f32
    %117 = vector.broadcast %cst_44 : f32 to vector<16x1xf32>
    %118 = arith.divf %116, %117 : vector<16x1xf32>
    %119 = vector.broadcast %118 : vector<16x1xf32> to vector<16x32xf32>
    %120 = arith.subf %110, %119 : vector<16x32xf32>
    %121 = arith.mulf %120, %120 : vector<16x32xf32>
    %cst_45 = arith.constant dense<0.000000e+00> : vector<16xf32>
    %122 = vector.multi_reduction <add>, %121, %cst_45 [1] : vector<16x32xf32> to vector<16xf32>
    %123 = vector.shape_cast %122 : vector<16xf32> to vector<16x1xf32>
    %cst_46 = arith.constant 3.200000e+01 : f32
    %124 = vector.broadcast %cst_46 : f32 to vector<16x1xf32>
    %125 = arith.divf %123, %124 : vector<16x1xf32>
    %cst_47 = arith.constant 9.99999974E-6 : f32
    %126 = vector.broadcast %cst_47 : f32 to vector<16x1xf32>
    %127 = arith.addf %125, %126 : vector<16x1xf32>
    %128 = math.rsqrt %127 : vector<16x1xf32>
    %129 = vector.broadcast %128 : vector<16x1xf32> to vector<16x32xf32>
    %130 = arith.mulf %120, %129 : vector<16x32xf32>
    %131 = vector.broadcast %112 : vector<1x32xf32> to vector<16x32xf32>
    %132 = arith.mulf %130, %131 : vector<16x32xf32>
    %133 = vector.broadcast %114 : vector<1x32xf32> to vector<16x32xf32>
    %134 = arith.addf %132, %133 : vector<16x32xf32>
    %c0_48 = arith.constant 0 : index
    %c0_49 = arith.constant 0 : index
    %c0_50 = arith.constant 0 : index
    %135 = vector.load %arg12[%c0_48, %c0_49, %c0_50] : memref<1x32x96xbf16, #tpu.memory_space<vmem>>, vector<1x32x96xbf16>
    %136 = vector.shape_cast %135 : vector<1x32x96xbf16> to vector<32x96xbf16>
    %c0_51 = arith.constant 0 : index
    %c0_52 = arith.constant 0 : index
    %c0_53 = arith.constant 0 : index
    %137 = vector.load %arg13[%c0_51, %c0_52, %c0_53] : memref<1x1x96xf32, #tpu.memory_space<vmem>>, vector<1x1x96xf32>
    %138 = vector.shape_cast %137 : vector<1x1x96xf32> to vector<1x96xf32>
    %139 = vector.extract_strided_slice %136 {offsets = [0, 0], sizes = [32, 32], strides = [1, 1]} : vector<32x96xbf16> to vector<32x32xbf16>
    %140 = arith.truncf %134 : vector<16x32xf32> to vector<16x32xbf16>
    %cst_54 = arith.constant dense<0.000000e+00> : vector<16x32xf32>
    %141 = tpu.matmul %140, %139, %cst_54 {dimension_numbers = #tpu.dot_dimension_numbers<[1], [0], [0], [1], [0, 0, 1, 1], [], []>} : vector<16x32xbf16>, vector<32x32xbf16>, vector<16x32xf32> -> vector<16x32xf32>
    %142 = vector.extract_strided_slice %138 {offsets = [0, 0], sizes = [1, 32], strides = [1, 1]} : vector<1x96xf32> to vector<1x32xf32>
    %143 = vector.broadcast %142 : vector<1x32xf32> to vector<16x32xf32>
    %144 = arith.addf %141, %143 : vector<16x32xf32>
    %145 = vector.extract_strided_slice %136 {offsets = [0, 32], sizes = [32, 64], strides = [1, 1]} : vector<32x96xbf16> to vector<32x64xbf16>
    %146 = arith.truncf %6 : vector<4x32xf32> to vector<4x32xbf16>
    %cst_55 = arith.constant dense<0.000000e+00> : vector<4x64xf32>
    %147 = tpu.matmul %146, %145, %cst_55 {dimension_numbers = #tpu.dot_dimension_numbers<[1], [0], [0], [1], [0, 0, 1, 1], [], []>} : vector<4x32xbf16>, vector<32x64xbf16>, vector<4x64xf32> -> vector<4x64xf32>
    %148 = vector.extract_strided_slice %138 {offsets = [0, 32], sizes = [1, 64], strides = [1, 1]} : vector<1x96xf32> to vector<1x64xf32>
    %149 = vector.broadcast %148 : vector<1x64xf32> to vector<4x64xf32>
    %150 = arith.addf %147, %149 : vector<4x64xf32>
    %151 = vector.extract_strided_slice %144 {offsets = [0, 0], sizes = [16, 8], strides = [1, 1]} : vector<16x32xf32> to vector<16x8xf32>
    %152 = vector.extract_strided_slice %144 {offsets = [0, 8], sizes = [16, 8], strides = [1, 1]} : vector<16x32xf32> to vector<16x8xf32>
    %153 = vector.extract_strided_slice %144 {offsets = [0, 16], sizes = [16, 8], strides = [1, 1]} : vector<16x32xf32> to vector<16x8xf32>
    %154 = vector.extract_strided_slice %144 {offsets = [0, 24], sizes = [16, 8], strides = [1, 1]} : vector<16x32xf32> to vector<16x8xf32>
    %155 = vector.shape_cast %151 : vector<16x8xf32> to vector<1x16x8xf32>
    %156 = vector.shape_cast %152 : vector<16x8xf32> to vector<1x16x8xf32>
    %157 = vector.shape_cast %153 : vector<16x8xf32> to vector<1x16x8xf32>
    %158 = vector.shape_cast %154 : vector<16x8xf32> to vector<1x16x8xf32>
    %159 = tpu.concatenate %155, %156, %157, %158 in 0 : vector<1x16x8xf32>, vector<1x16x8xf32>, vector<1x16x8xf32>, vector<1x16x8xf32> -> vector<4x16x8xf32>
    %cst_56 = arith.constant 0.353553385 : f32
    %160 = vector.broadcast %cst_56 : f32 to vector<4x16x8xf32>
    %161 = arith.mulf %159, %160 : vector<4x16x8xf32>
    %162 = arith.truncf %161 : vector<4x16x8xf32> to vector<4x16x8xbf16>
    %163 = vector.extract_strided_slice %150 {offsets = [0, 0], sizes = [4, 8], strides = [1, 1]} : vector<4x64xf32> to vector<4x8xf32>
    %164 = vector.extract_strided_slice %150 {offsets = [0, 8], sizes = [4, 8], strides = [1, 1]} : vector<4x64xf32> to vector<4x8xf32>
    %165 = vector.extract_strided_slice %150 {offsets = [0, 16], sizes = [4, 8], strides = [1, 1]} : vector<4x64xf32> to vector<4x8xf32>
    %166 = vector.extract_strided_slice %150 {offsets = [0, 24], sizes = [4, 8], strides = [1, 1]} : vector<4x64xf32> to vector<4x8xf32>
    %167 = vector.shape_cast %163 : vector<4x8xf32> to vector<1x4x8xf32>
    %168 = vector.shape_cast %164 : vector<4x8xf32> to vector<1x4x8xf32>
    %169 = vector.shape_cast %165 : vector<4x8xf32> to vector<1x4x8xf32>
    %170 = vector.shape_cast %166 : vector<4x8xf32> to vector<1x4x8xf32>
    %171 = tpu.concatenate %167, %168, %169, %170 in 0 : vector<1x4x8xf32>, vector<1x4x8xf32>, vector<1x4x8xf32>, vector<1x4x8xf32> -> vector<4x4x8xf32>
    %172 = arith.truncf %171 : vector<4x4x8xf32> to vector<4x4x8xbf16>
    %173 = vector.extract_strided_slice %150 {offsets = [0, 32], sizes = [4, 8], strides = [1, 1]} : vector<4x64xf32> to vector<4x8xf32>
    %174 = vector.extract_strided_slice %150 {offsets = [0, 40], sizes = [4, 8], strides = [1, 1]} : vector<4x64xf32> to vector<4x8xf32>
    %175 = vector.extract_strided_slice %150 {offsets = [0, 48], sizes = [4, 8], strides = [1, 1]} : vector<4x64xf32> to vector<4x8xf32>
    %176 = vector.extract_strided_slice %150 {offsets = [0, 56], sizes = [4, 8], strides = [1, 1]} : vector<4x64xf32> to vector<4x8xf32>
    %177 = vector.shape_cast %173 : vector<4x8xf32> to vector<1x4x8xf32>
    %178 = vector.shape_cast %174 : vector<4x8xf32> to vector<1x4x8xf32>
    %179 = vector.shape_cast %175 : vector<4x8xf32> to vector<1x4x8xf32>
    %180 = vector.shape_cast %176 : vector<4x8xf32> to vector<1x4x8xf32>
    %181 = tpu.concatenate %177, %178, %179, %180 in 0 : vector<1x4x8xf32>, vector<1x4x8xf32>, vector<1x4x8xf32>, vector<1x4x8xf32> -> vector<4x4x8xf32>
    %182 = arith.truncf %181 : vector<4x4x8xf32> to vector<4x4x8xbf16>
    "tpu.trace_start"() <{level = 10 : i32, message = "hqd,hkd->hqk"}> : () -> ()
    %cst_57 = arith.constant dense<0.000000e+00> : vector<4x16x4xf32>
    %183 = tpu.matmul %162, %172, %cst_57 {dimension_numbers = #tpu.dot_dimension_numbers<[2], [2], [1], [1], [0, 0, 0, 1, 1, 1], [0], [0]>} : vector<4x16x8xbf16>, vector<4x4x8xbf16>, vector<4x16x4xf32> -> vector<4x16x4xf32>
    "tpu.trace_stop"() : () -> ()
    %cst_58 = arith.constant dense<0xFF800000> : vector<4x16xf32>
    %184 = vector.multi_reduction <maximumf>, %183, %cst_58 [2] : vector<4x16x4xf32> to vector<4x16xf32>
    %185 = vector.shape_cast %184 : vector<4x16xf32> to vector<4x16x1xf32>
    %186 = vector.broadcast %185 : vector<4x16x1xf32> to vector<4x16x4xf32>
    %187 = arith.subf %183, %186 : vector<4x16x4xf32>
    %188 = math.exp %187 : vector<4x16x4xf32>
    %cst_59 = arith.constant dense<0.000000e+00> : vector<4x16xf32>
    %189 = vector.multi_reduction <add>, %188, %cst_59 [2] : vector<4x16x4xf32> to vector<4x16xf32>
    %190 = vector.shape_cast %189 : vector<4x16xf32> to vector<4x16x1xf32>
    %191 = vector.broadcast %190 : vector<4x16x1xf32> to vector<4x16x4xf32>
    %192 = arith.divf %188, %191 : vector<4x16x4xf32>
    %193 = arith.truncf %192 : vector<4x16x4xf32> to vector<4x16x4xbf16>
    "tpu.trace_start"() <{level = 10 : i32, message = "hqk,hkd->hqd"}> : () -> ()
    %cst_60 = arith.constant dense<0.000000e+00> : vector<4x16x8xf32>
    %194 = tpu.matmul %193, %182, %cst_60 {dimension_numbers = #tpu.dot_dimension_numbers<[2], [1], [1], [2], [0, 0, 0, 1, 1, 2], [0], [0]>} : vector<4x16x4xbf16>, vector<4x4x8xbf16>, vector<4x16x8xf32> -> vector<4x16x8xf32>
    "tpu.trace_stop"() : () -> ()
    %195 = vector.extract_strided_slice %194 {offsets = [0, 0, 0], sizes = [1, 16, 8], strides = [1, 1, 1]} : vector<4x16x8xf32> to vector<1x16x8xf32>
    %196 = vector.shape_cast %195 : vector<1x16x8xf32> to vector<16x8xf32>
    %197 = vector.extract_strided_slice %194 {offsets = [1, 0, 0], sizes = [1, 16, 8], strides = [1, 1, 1]} : vector<4x16x8xf32> to vector<1x16x8xf32>
    %198 = vector.shape_cast %197 : vector<1x16x8xf32> to vector<16x8xf32>
    %199 = vector.extract_strided_slice %194 {offsets = [2, 0, 0], sizes = [1, 16, 8], strides = [1, 1, 1]} : vector<4x16x8xf32> to vector<1x16x8xf32>
    %200 = vector.shape_cast %199 : vector<1x16x8xf32> to vector<16x8xf32>
    %201 = vector.extract_strided_slice %194 {offsets = [3, 0, 0], sizes = [1, 16, 8], strides = [1, 1, 1]} : vector<4x16x8xf32> to vector<1x16x8xf32>
    %202 = vector.shape_cast %201 : vector<1x16x8xf32> to vector<16x8xf32>
    %203 = tpu.concatenate %196, %198, %200, %202 in 1 : vector<16x8xf32>, vector<16x8xf32>, vector<16x8xf32>, vector<16x8xf32> -> vector<16x32xf32>
    %c0_61 = arith.constant 0 : index
    %c0_62 = arith.constant 0 : index
    %c0_63 = arith.constant 0 : index
    %204 = vector.load %arg14[%c0_61, %c0_62, %c0_63] : memref<1x32x32xbf16, #tpu.memory_space<vmem>>, vector<1x32x32xbf16>
    %205 = vector.shape_cast %204 : vector<1x32x32xbf16> to vector<32x32xbf16>
    %206 = arith.truncf %203 : vector<16x32xf32> to vector<16x32xbf16>
    %cst_64 = arith.constant dense<0.000000e+00> : vector<16x32xf32>
    %207 = tpu.matmul %206, %205, %cst_64 {dimension_numbers = #tpu.dot_dimension_numbers<[1], [0], [0], [1], [0, 0, 1, 1], [], []>} : vector<16x32xbf16>, vector<32x32xbf16>, vector<16x32xf32> -> vector<16x32xf32>
    %208 = arith.addf %110, %207 : vector<16x32xf32>
    %c0_65 = arith.constant 0 : index
    %c0_66 = arith.constant 0 : index
    %c0_67 = arith.constant 0 : index
    %209 = vector.load %arg15[%c0_65, %c0_66, %c0_67] : memref<1x1x32xf32, #tpu.memory_space<vmem>>, vector<1x1x32xf32>
    %210 = vector.shape_cast %209 : vector<1x1x32xf32> to vector<1x32xf32>
    %211 = vector.broadcast %210 : vector<1x32xf32> to vector<16x32xf32>
    %212 = arith.addf %208, %211 : vector<16x32xf32>
    %c1_i32 = arith.constant 1 : i32
    %213 = arith.cmpi eq, %arg1, %c1_i32 : i32
    %214 = arith.extui %213 : i1 to i32
    %c0_i32_68 = arith.constant 0 : i32
    %215 = arith.cmpi ne, %214, %c0_i32_68 : i32
    scf.if %215 {
      %cst_98 = arith.constant dense<0.000000e+00> : vector<16x4xf32>
      %262 = vector.multi_reduction <add>, %192, %cst_98 [0] : vector<4x16x4xf32> to vector<16x4xf32>
      %cst_99 = arith.constant 4.000000e+00 : f32
      %263 = vector.broadcast %cst_99 : f32 to vector<16x4xf32>
      %264 = arith.divf %262, %263 : vector<16x4xf32>
      %265 = tpu.transpose %264, [1, 0] : vector<16x4xf32> -> vector<4x16xf32>
      %c0_100 = arith.constant 0 : index
      %c0_101 = arith.constant 0 : index
      %c0_102 = arith.constant 0 : index
      %266 = vector.load %arg23[%c0_100, %c0_101, %c0_102] : memref<1x4x16xf32, #tpu.memory_space<vmem>>, vector<1x4x16xf32>
      %267 = vector.shape_cast %266 : vector<1x4x16xf32> to vector<4x16xf32>
      %268 = vector.shape_cast %265 : vector<4x16xf32> to vector<1x4x16xf32>
      tpu.vector_store %arg23[%c0_100, %c0_101, %c0_102], %268 {strides = array<i32>} : memref<1x4x16xf32, #tpu.memory_space<vmem>>, vector<1x4x16xf32>,
    } else {
    }
    %c0_69 = arith.constant 0 : index
    %c0_70 = arith.constant 0 : index
    %c0_71 = arith.constant 0 : index
    %216 = vector.load %arg16[%c0_69, %c0_70, %c0_71] : memref<1x1x32xf32, #tpu.memory_space<vmem>>, vector<1x1x32xf32>
    %217 = vector.shape_cast %216 : vector<1x1x32xf32> to vector<1x32xf32>
    %c0_72 = arith.constant 0 : index
    %c0_73 = arith.constant 0 : index
    %c0_74 = arith.constant 0 : index
    %218 = vector.load %arg17[%c0_72, %c0_73, %c0_74] : memref<1x1x32xf32, #tpu.memory_space<vmem>>, vector<1x1x32xf32>
    %219 = vector.shape_cast %218 : vector<1x1x32xf32> to vector<1x32xf32>
    %cst_75 = arith.constant dense<0.000000e+00> : vector<16xf32>
    %220 = vector.multi_reduction <add>, %212, %cst_75 [1] : vector<16x32xf32> to vector<16xf32>
    %221 = vector.shape_cast %220 : vector<16xf32> to vector<16x1xf32>
    %cst_76 = arith.constant 3.200000e+01 : f32
    %222 = vector.broadcast %cst_76 : f32 to vector<16x1xf32>
    %223 = arith.divf %221, %222 : vector<16x1xf32>
    %224 = vector.broadcast %223 : vector<16x1xf32> to vector<16x32xf32>
    %225 = arith.subf %212, %224 : vector<16x32xf32>
    %226 = arith.mulf %225, %225 : vector<16x32xf32>
    %cst_77 = arith.constant dense<0.000000e+00> : vector<16xf32>
    %227 = vector.multi_reduction <add>, %226, %cst_77 [1] : vector<16x32xf32> to vector<16xf32>
    %228 = vector.shape_cast %227 : vector<16xf32> to vector<16x1xf32>
    %cst_78 = arith.constant 3.200000e+01 : f32
    %229 = vector.broadcast %cst_78 : f32 to vector<16x1xf32>
    %230 = arith.divf %228, %229 : vector<16x1xf32>
    %cst_79 = arith.constant 9.99999974E-6 : f32
    %231 = vector.broadcast %cst_79 : f32 to vector<16x1xf32>
    %232 = arith.addf %230, %231 : vector<16x1xf32>
    %233 = math.rsqrt %232 : vector<16x1xf32>
    %234 = vector.broadcast %233 : vector<16x1xf32> to vector<16x32xf32>
    %235 = arith.mulf %225, %234 : vector<16x32xf32>
    %236 = vector.broadcast %217 : vector<1x32xf32> to vector<16x32xf32>
    %237 = arith.mulf %235, %236 : vector<16x32xf32>
    %238 = vector.broadcast %219 : vector<1x32xf32> to vector<16x32xf32>
    %239 = arith.addf %237, %238 : vector<16x32xf32>
    %c0_80 = arith.constant 0 : index
    %c0_81 = arith.constant 0 : index
    %c0_82 = arith.constant 0 : index
    %240 = vector.load %arg18[%c0_80, %c0_81, %c0_82] : memref<1x32x64xbf16, #tpu.memory_space<vmem>>, vector<1x32x64xbf16>
    %241 = vector.shape_cast %240 : vector<1x32x64xbf16> to vector<32x64xbf16>
    %242 = arith.truncf %239 : vector<16x32xf32> to vector<16x32xbf16>
    %cst_83 = arith.constant dense<0.000000e+00> : vector<16x64xf32>
    %243 = tpu.matmul %242, %241, %cst_83 {dimension_numbers = #tpu.dot_dimension_numbers<[1], [0], [0], [1], [0, 0, 1, 1], [], []>} : vector<16x32xbf16>, vector<32x64xbf16>, vector<16x64xf32> -> vector<16x64xf32>
    %c0_84 = arith.constant 0 : index
    %c0_85 = arith.constant 0 : index
    %c0_86 = arith.constant 0 : index
    %244 = vector.load %arg19[%c0_84, %c0_85, %c0_86] : memref<1x1x64xf32, #tpu.memory_space<vmem>>, vector<1x1x64xf32>
    %245 = vector.shape_cast %244 : vector<1x1x64xf32> to vector<1x64xf32>
    %246 = vector.broadcast %245 : vector<1x64xf32> to vector<16x64xf32>
    %247 = arith.addf %243, %246 : vector<16x64xf32>
    %cst_87 = arith.constant 0.000000e+00 : f32
    %248 = vector.broadcast %cst_87 : f32 to vector<16x64xf32>
    %249 = arith.maximumf %247, %248 : vector<16x64xf32>
    %c0_88 = arith.constant 0 : index
    %c0_89 = arith.constant 0 : index
    %c0_90 = arith.constant 0 : index
    %250 = vector.load %arg20[%c0_88, %c0_89, %c0_90] : memref<1x64x32xbf16, #tpu.memory_space<vmem>>, vector<1x64x32xbf16>
    %251 = vector.shape_cast %250 : vector<1x64x32xbf16> to vector<64x32xbf16>
    %252 = arith.truncf %249 : vector<16x64xf32> to vector<16x64xbf16>
    %cst_91 = arith.constant dense<0.000000e+00> : vector<16x32xf32>
    %253 = tpu.matmul %252, %251, %cst_91 {dimension_numbers = #tpu.dot_dimension_numbers<[1], [0], [0], [1], [0, 0, 1, 1], [], []>} : vector<16x64xbf16>, vector<64x32xbf16>, vector<16x32xf32> -> vector<16x32xf32>
    %254 = arith.addf %212, %253 : vector<16x32xf32>
    %c0_92 = arith.constant 0 : index
    %c0_93 = arith.constant 0 : index
    %c0_94 = arith.constant 0 : index
    %255 = vector.load %arg21[%c0_92, %c0_93, %c0_94] : memref<1x1x32xf32, #tpu.memory_space<vmem>>, vector<1x1x32xf32>
    %256 = vector.shape_cast %255 : vector<1x1x32xf32> to vector<1x32xf32>
    %257 = vector.broadcast %256 : vector<1x32xf32> to vector<16x32xf32>
    %258 = arith.addf %254, %257 : vector<16x32xf32>
    %c0_95 = arith.constant 0 : index
    %c0_96 = arith.constant 0 : index
    %c0_97 = arith.constant 0 : index
    %259 = vector.load %arg22[%c0_95, %c0_96, %c0_97] : memref<1x16x32xf32, #tpu.memory_space<vmem>>, vector<1x16x32xf32>
    %260 = vector.shape_cast %259 : vector<1x16x32xf32> to vector<16x32xf32>
    %261 = vector.shape_cast %258 : vector<16x32xf32> to vector<1x16x32xf32>
    tpu.vector_store %arg22[%c0_95, %c0_96, %c0_97], %261 {strides = array<i32>} : memref<1x16x32xf32, #tpu.memory_space<vmem>>, vector<1x16x32xf32>,
    return
  }
  func.func @transform_0(%arg0: i32, %arg1: i32) -> (i32, i32, i32) {
    %c0_i32 = arith.constant 0 : i32
    %c0_i32_0 = arith.constant 0 : i32
    %c0_i32_1 = arith.constant 0 : i32
    return %arg0, %c0_i32, %c0_i32_0 : i32, i32, i32
  }
  func.func @transform_1(%arg0: i32, %arg1: i32) -> (i32, i32, i32) {
    %c0_i32 = arith.constant 0 : i32
    %c0_i32_0 = arith.constant 0 : i32
    %c0_i32_1 = arith.constant 0 : i32
    return %arg0, %c0_i32, %c0_i32_0 : i32, i32, i32
  }
  func.func @transform_2(%arg0: i32, %arg1: i32) -> (i32, i32, i32) {
    %c0_i32 = arith.constant 0 : i32
    %c0_i32_0 = arith.constant 0 : i32
    %c0_i32_1 = arith.constant 0 : i32
    return %arg1, %c0_i32, %c0_i32_0 : i32, i32, i32
  }
  func.func @transform_3(%arg0: i32, %arg1: i32) -> (i32, i32, i32) {
    %c0_i32 = arith.constant 0 : i32
    %c0_i32_0 = arith.constant 0 : i32
    %c0_i32_1 = arith.constant 0 : i32
    return %arg1, %c0_i32, %c0_i32_0 : i32, i32, i32
  }
  func.func @transform_4(%arg0: i32, %arg1: i32) -> (i32, i32, i32) {
    %c0_i32 = arith.constant 0 : i32
    %c0_i32_0 = arith.constant 0 : i32
    %c0_i32_1 = arith.constant 0 : i32
    return %arg1, %c0_i32, %c0_i32_0 : i32, i32, i32
  }
  func.func @transform_5(%arg0: i32, %arg1: i32) -> (i32, i32, i32) {
    %c0_i32 = arith.constant 0 : i32
    %c0_i32_0 = arith.constant 0 : i32
    %c0_i32_1 = arith.constant 0 : i32
    return %arg1, %c0_i32, %c0_i32_0 : i32, i32, i32
  }
  func.func @transform_6(%arg0: i32, %arg1: i32) -> (i32, i32, i32) {
    %c0_i32 = arith.constant 0 : i32
    %c0_i32_0 = arith.constant 0 : i32
    %c0_i32_1 = arith.constant 0 : i32
    return %arg1, %c0_i32, %c0_i32_0 : i32, i32, i32
  }
  func.func @transform_7(%arg0: i32, %arg1: i32) -> (i32, i32, i32) {
    %c0_i32 = arith.constant 0 : i32
    %c0_i32_0 = arith.constant 0 : i32
    %c0_i32_1 = arith.constant 0 : i32
    return %arg1, %c0_i32, %c0_i32_0 : i32, i32, i32
  }
  func.func @transform_8(%arg0: i32, %arg1: i32) -> (i32, i32, i32) {
    %c0_i32 = arith.constant 0 : i32
    %c0_i32_0 = arith.constant 0 : i32
    %c0_i32_1 = arith.constant 0 : i32
    return %arg1, %c0_i32, %c0_i32_0 : i32, i32, i32
  }
  func.func @transform_9(%arg0: i32, %arg1: i32) -> (i32, i32, i32) {
    %c0_i32 = arith.constant 0 : i32
    %c0_i32_0 = arith.constant 0 : i32
    %c0_i32_1 = arith.constant 0 : i32
    return %arg1, %c0_i32, %c0_i32_0 : i32, i32, i32
  }
  func.func @transform_10(%arg0: i32, %arg1: i32) -> (i32, i32, i32) {
    %c0_i32 = arith.constant 0 : i32
    %c0_i32_0 = arith.constant 0 : i32
    %c0_i32_1 = arith.constant 0 : i32
    return %arg1, %c0_i32, %c0_i32_0 : i32, i32, i32
  }
  func.func @transform_11(%arg0: i32, %arg1: i32) -> (i32, i32, i32) {
    %c0_i32 = arith.constant 0 : i32
    %c0_i32_0 = arith.constant 0 : i32
    %c0_i32_1 = arith.constant 0 : i32
    return %arg1, %c0_i32, %c0_i32_0 : i32, i32, i32
  }
  func.func @transform_12(%arg0: i32, %arg1: i32) -> (i32, i32, i32) {
    %c0_i32 = arith.constant 0 : i32
    %c0_i32_0 = arith.constant 0 : i32
    %c0_i32_1 = arith.constant 0 : i32
    return %arg1, %c0_i32, %c0_i32_0 : i32, i32, i32
  }
  func.func @transform_13(%arg0: i32, %arg1: i32) -> (i32, i32, i32) {
    %c0_i32 = arith.constant 0 : i32
    %c0_i32_0 = arith.constant 0 : i32
    %c0_i32_1 = arith.constant 0 : i32
    return %arg1, %c0_i32, %c0_i32_0 : i32, i32, i32
  }
  func.func @transform_14(%arg0: i32, %arg1: i32) -> (i32, i32, i32) {
    %c0_i32 = arith.constant 0 : i32
    %c0_i32_0 = arith.constant 0 : i32
    %c0_i32_1 = arith.constant 0 : i32
    return %arg1, %c0_i32, %c0_i32_0 : i32, i32, i32
  }
  func.func @transform_15(%arg0: i32, %arg1: i32) -> (i32, i32, i32) {
    %c0_i32 = arith.constant 0 : i32
    %c0_i32_0 = arith.constant 0 : i32
    %c0_i32_1 = arith.constant 0 : i32
    return %arg1, %c0_i32, %c0_i32_0 : i32, i32, i32
  }
  func.func @transform_16(%arg0: i32, %arg1: i32) -> (i32, i32, i32) {
    %c0_i32 = arith.constant 0 : i32
    %c0_i32_0 = arith.constant 0 : i32
    %c0_i32_1 = arith.constant 0 : i32
    return %arg1, %c0_i32, %c0_i32_0 : i32, i32, i32
  }
  func.func @transform_17(%arg0: i32, %arg1: i32) -> (i32, i32, i32) {
    %c0_i32 = arith.constant 0 : i32
    %c0_i32_0 = arith.constant 0 : i32
    %c0_i32_1 = arith.constant 0 : i32
    return %arg1, %c0_i32, %c0_i32_0 : i32, i32, i32
  }
  func.func @transform_18(%arg0: i32, %arg1: i32) -> (i32, i32, i32) {
    %c0_i32 = arith.constant 0 : i32
    %c0_i32_0 = arith.constant 0 : i32
    %c0_i32_1 = arith.constant 0 : i32
    return %arg1, %c0_i32, %c0_i32_0 : i32, i32, i32
  }
  func.func @transform_19(%arg0: i32, %arg1: i32) -> (i32, i32, i32) {
    %c0_i32 = arith.constant 0 : i32
    %c0_i32_0 = arith.constant 0 : i32
    %c0_i32_1 = arith.constant 0 : i32
    return %arg1, %c0_i32, %c0_i32_0 : i32, i32, i32
  }
  func.func @transform_20(%arg0: i32, %arg1: i32) -> (i32, i32, i32) {
    %c0_i32 = arith.constant 0 : i32
    %c0_i32_0 = arith.constant 0 : i32
    %c0_i32_1 = arith.constant 0 : i32
    return %arg0, %c0_i32, %c0_i32_0 : i32, i32, i32
  }
  func.func @transform_21(%arg0: i32, %arg1: i32) -> (i32, i32, i32) {
    %c0_i32 = arith.constant 0 : i32
    %c0_i32_0 = arith.constant 0 : i32
    %c0_i32_1 = arith.constant 0 : i32
    return %arg0, %c0_i32, %c0_i32_0 : i32, i32, i32
  }
}

</mosaic_0001>

<bundles_post_ra>
// kernel: transformer_decoder.5
= control target key start
LH: loop header
LB: loop body
LE: loop exit
PB: predicated region body
PF: predicated region fallthrough
CT: control target
= control target key end

     0   :  { %s187_s0 = inlined_call_operand.vmem [shape: f32[32,32], index: 0, kind: input, shape index: {}]   ;;  %s188_s1 = inlined_call_operand.vmem [shape: bf16[32,32], index: 1, kind: input, shape index: {}]   ;;  %s189_s2 = inlined_call_operand.vmem [shape: f32[1,32], index: 2, kind: input, shape index: {}]   ;;  %s190_s3 = inlined_call_operand.hbm [shape: f32[32,32], index: 3, kind: output, shape index: {}]  }
   0x1   :  { %v101_v0 = vld [vmem:[%s188_s1 + $0x8] sm:$0xff]  ;;  %v100_v1 = vld [vmem:[%s188_s1] sm:$0xff]  ;;  %v18_v4 = vld [vmem:[%s187_s0 + $0x10] sm:$0xff] }
   0x2   :  { %v16_v2 = vld [vmem:[%s187_s0] sm:$0xff]  ;;  %v17_v3 = vld [vmem:[%s187_s0 + $0x8] sm:$0xff]  ;;  %55 = vmatpush.bf16.msra.mxu0 %v101_v0  ;;  %102 = vmatpush.bf16.msra.mxu1 %v101_v0  ;;  %v19_v5 = vld [vmem:[%s187_s0 + $0x18] sm:$0xff] }
   0x3   :  { %8 = vsyncpa [#allocation3], 0  ;;  %v24_v6 = vpack.c.bf16 %v17_v3, %v16_v2  ;;  %v25_v7 = vpack.c.bf16 %v19_v5, %v18_v4  ;;  %vm42_vm0 = vcmask 261120   ;;  %v107_v8 = vld [vmem:[%s189_s2] ss:$0 sm:$0xff]  ;;  %s134_s0 = smov [#allocation2]  }
   0x4   :  { %s76_s25 = sshll.u32 %s134_s0, 4  ;;  %s78_s28 = sshll.u32 %s190_s3, 4  ;;  %s77_s25 = int_to_ptr.vmem [resolvable:$true] %s76_s25  ;;  %s79_s28 = int_to_ptr.hbm [resolvable:$true] %s78_s28 }
   0x5   :  { %s135_s2 = smov 128   ;;  %s136_s29 = smov 8  }
   0x6   :  { %56 = vmatpush.bf16.msra.mxu0 %v100_v1  ;;  %103 = vmatpush.bf16.msra.mxu1 %v100_v1 }
   0x9   :  { %98 = vmatmul.msk.bf16.vlgmr.msra.gmra.mxu0 %vm42_vm0, %v24_v6  ;;  %99 = vmatmul.msk.bf16.vlgmr.msra.gmra.mxu1 %vm42_vm0, %v25_v7 }
  0x86   :  { %v58_v9 = vpop.f32.mrf.mxu0  ;;  %v63_v10 = vpop.f32.mrf.mxu1 }
  0x87   :  { %v59_v11 = vadd.f32 %v107_v8, %v58_v9  ;;  %v64_v12 = vadd.f32 %v107_v8, %v63_v10 }
  0x89   :  { %68 = vst.msk [vmem:[#allocation2] sm:$0xff] %vm42_vm0, %v59_v11 }
  0x8a   :  { %70 = vst.msk [vmem:[#allocation2 + $0x10] sm:$0xff] %vm42_vm0, %v64_v12 }
  0x8e   :  { %v60_v13 = vpop.f32.mrf.mxu0  ;;  %v65_v14 = vpop.f32.mrf.mxu1 }
  0x8f   :  { %v61_v15 = vadd.f32 %v107_v8, %v60_v13  ;;  %v66_v16 = vadd.f32 %v107_v8, %v65_v14 }
  0x91   :  { %69 = vst.msk [vmem:[#allocation2 + $0x8] sm:$0xff] %vm42_vm0, %v61_v15 }
  0x92   :  { %71 = vst.msk [vmem:[#allocation2 + $0x18] sm:$0xff] %vm42_vm0, %v66_v16 }
  0x93   :  { %84 = dma.vmem_to_hbm [thread:$0]  %s77_s25, 512, %s79_s28, [#allocation3], %s135_s2, %s135_s2, %s136_s29  }
  0x94   :  { %132 = dma.done.wait [#allocation3], 512  }
  0x95   :  { %133 = vsyncadd [#allocation3], 4294966784 }
  0x96   :  { %89 = vsyncpa [#allocation3], 1 }

// kernel: transformer_decoder.3
= control target key start
LH: loop header
LB: loop body
LE: loop exit
PB: predicated region body
PF: predicated region fallthrough
CT: control target
= control target key end

     0   :  { %10 = vsyncpa [#allocation3], 0  ;;  %s249_s0 = inlined_call_operand.hbm [shape: f32[8,16], index: 0, kind: input, shape index: {}]   ;;  %s250_s1 = inlined_call_operand.vmem [shape: bf16[16,32], index: 1, kind: input, shape index: {}]   ;;  %s251_s2 = inlined_call_operand.vmem [shape: f32[1,32], index: 2, kind: input, shape index: {}]   ;;  %s252_s3 = inlined_call_operand.vmem [shape: f32[1,32], index: 3, kind: input, shape index: {}]   ;;  %s253_s4 = inlined_call_operand.hbm [shape: f32[1,32], index: 4, kind: input, shape index: {}]   ;;  %s254_s5 = inlined_call_operand.vmem [shape: f32[8,32], index: 5, kind: output, shape index: {}]  }
   0x1   :  { %s17_s20 = sshll.u32 %s249_s0, 4  ;;  %s18_s20 = int_to_ptr.hbm [resolvable:$true] %s17_s20 }
   0x2   :  { %11 = vsyncpa [#allocation5], 0  ;;  %s195_s21 = smov [#allocation2]   ;;  %s34_s25 = sshll.u32 %s253_s4, 4  ;;  %s35_s25 = int_to_ptr.hbm [resolvable:$true] %s34_s25 }
   0x3   :  { %s19_s22 = sshll.u32 %s195_s21, 4  ;;  %s196_s26 = smov [#allocation4]   ;;  %s20_s22 = int_to_ptr.vmem [resolvable:$true] %s19_s22 }
   0x4   :  { %22 = dma.hbm_to_vmem [thread:$0]  %s18_s20, 128, %s20_s22, [#allocation3]  }
   0x5   :  { %s36_s27 = sshll.u32 %s196_s26, 4  ;;  %s37_s27 = int_to_ptr.vmem [resolvable:$true] %s36_s27 }
   0x6   :  { %39 = dma.hbm_to_vmem [thread:$0]  %s35_s25, 16, %s37_s27, [#allocation5]  }
   0x7   :  { %191 = dma.done.wait [#allocation3], 128  }
   0x8   :  { %192 = vsyncadd [#allocation3], 4294967168 }
   0x9   :  { %193 = dma.done.wait [#allocation5], 16  }
   0xa   :  { %194 = vsyncadd [#allocation5], 4294967280  ;;  %v132_v0 = vld [vmem:[%s250_s1] sm:$0xff]  ;;  %vm63_vm0 = vcmask 130048   ;;  %vm82_vm1 = vcmask 261120   ;;  %v197_v8 = vmov 32.0  }
   0xb   :  { %v49_v1 = vld [vmem:[#allocation2] sm:$0xff]  ;;  %74 = vmatpush.bf16.msra.mxu0 %v132_v0  ;;  %139 = vrcp.f32 %v197_v8  ;;  %v138_v31 = vld [vmem:[#allocation4] ss:$0 sm:$0xff] }
   0xc   :  { %v52_v2 = vpack.c.bf16 %v49_v1, %v49_v1  ;;  %v136_v3 = vld [vmem:[%s251_s2] ss:$0 sm:$0xff] }
   0xd   :  { %v137_v29 = vld [vmem:[%s252_s3] ss:$0 sm:$0xff] }
   0xe   :  { %131 = vmatmul.msk.bf16.vlgmr.msra.gmra.mxu0 %vm63_vm0, %v52_v2 }
  0x11   :  { %v140_v9 = vpop.eup %139 }
  0x12   :  { %v87_v10 = vmul.f32 32.0, %v140_v9  ;;  %vm91_vm2 = vweird.f32 %v140_v9 }
  0x14   :  { %v88_v11 = vsub.f32 1.0, %v87_v10 }
  0x16   :  { %v89_v12 = vmul.f32 %v140_v9, %v88_v11 }
  0x18   :  { %v90_v13 = vadd.f32 %v140_v9, %v89_v12 }
  0x1a   :  { %v92_v14 = vsel %vm91_vm2, %v140_v9, %v90_v13 }
  0x8b   :  { %v76_v4 = vpop.f32.mrf.mxu0 }
  0x8c   :  { %v77_v5 = vadd.f32 %v136_v3, %v76_v4 }
  0x8e   :  { %v83_v6 = vsel %vm82_vm1, %v77_v5, 0.0 }
  0x8f   :  { %84 = vadd.xlane.f32.xlu0 %v83_v6 }
  0x93   :  { %v78_v7 = vpop.f32.mrf.mxu0 }
 0x102   :  { %v85_v15 = vpop.xlane.xlu0 %84 }
 0x103   :  { %v93_v16 = vmul.f32 %v92_v14, %v85_v15 }
 0x105   :  { %v94_v17 = vsub.f32 %v77_v5, %v93_v16 }
 0x107   :  { %v95_v18 = vmul.f32 %v94_v17, %v94_v17 }
 0x109   :  { %v96_v19 = vsel %vm82_vm1, %v95_v18, 0.0 }
 0x10a   :  { %97 = vadd.xlane.f32.xlu0 %v96_v19 }
 0x17d   :  { %v98_v20 = vpop.xlane.xlu0 %97 }
 0x17e   :  { %v99_v21 = vmul.f32 %v98_v20, %v92_v14 }
 0x180   :  { %v100_v22 = vadd.f32 1e-05, %v99_v21 }
 0x182   :  { %141 = vrsqrt.f32 %v100_v22  ;;  %vm107_vm4 = vweird.f32 %v100_v22 }
 0x188   :  { %v142_v23 = vpop.eup %141 }
 0x189   :  { %v102_v24 = vmul.f32 %v142_v23, %v100_v22  ;;  %vm108_vm3 = vweird.f32 %v142_v23 }
 0x18a   :  { %vm109_vm5 = vmor %vm107_vm4, %vm108_vm3 }
 0x18b   :  { %v103_v25 = vmul.f32 %v142_v23, %v102_v24 }
 0x18d   :  { %v104_v26 = vmul.f32 0.5, %v103_v25 }
 0x18f   :  { %v105_v27 = vsub.f32 1.5, %v104_v26 }
 0x191   :  { %v106_v28 = vmul.f32 %v142_v23, %v105_v27 }
 0x193   :  { %v110_v30 = vsel %vm109_vm5, %v142_v23, %v106_v28 }
 0x194   :  { %v111_v32 = vmul.f32 %v110_v30, %v94_v17 }
 0x196   :  { %v115_v33 = vmul.f32 %v137_v29, %v111_v32 }
 0x198   :  { %v119_v34 = vadd.f32 %v138_v31, %v115_v33 }
 0x19a   :  { %120 = vst.msk [vmem:[%s254_s5] sm:$0xff] %vm82_vm1, %v119_v34 }
 0x19b   :  { %125 = vsyncpa [#allocation3], 1 }
 0x19c   :  { %126 = vsyncpa [#allocation5], 1 }

// kernel: transformer_decoder.4
= control target key start
LH: loop header
LB: loop body
LE: loop exit
PB: predicated region body
PF: predicated region fallthrough
CT: control target
= control target key end

     0   :  { %s4636_s0 = inlined_call_operand.vmem [shape: f32[2,16,32], index: 0, kind: input, shape index: {}]   ;;  %s4637_s1 = inlined_call_operand.vmem [shape: f32[2,4,32], index: 1, kind: input, shape index: {}]   ;;  %s4638_s2 = inlined_call_operand.vmem [shape: f32[2,1,32], index: 2, kind: input, shape index: {}]   ;;  %s4639_s3 = inlined_call_operand.vmem [shape: f32[2,1,32], index: 3, kind: input, shape index: {}]   ;;  %s4640_s4 = inlined_call_operand.vmem [shape: bf16[2,32,96], index: 4, kind: input, shape index: {}]   ;;  %s4641_s5 = inlined_call_operand.vmem [shape: f32[2,1,96], index: 5, kind: input, shape index: {}]   ;;  %s4642_s6 = inlined_call_operand.vmem [shape: bf16[2,32,32], index: 6, kind: input, shape index: {}]   ;;  %s4643_s7 = inlined_call_operand.hbm [shape: f32[2,1,32], index: 7, kind: input, shape index: {}]   ;;  %s4644_s8 = inlined_call_operand.hbm [shape: f32[2,1,32], index: 8, kind: input, shape index: {}]   ;;  %s4645_s9 = inlined_call_operand.hbm [shape: f32[2,1,32], index: 9, kind: input, shape index: {}]   ;;  %s4646_s10 = inlined_call_operand.vmem [shape: bf16[2,32,96], index: 10, kind: input, shape index: {}]   ;;  %s4647_s11 = inlined_call_operand.hbm [shape: f32[2,1,96], index: 11, kind: input, shape index: {}]   ;;  %s4648_s12 = inlined_call_operand.vmem [shape: bf16[2,32,32], index: 12, kind: input, shape index: {}]   ;;  %s4649_s13 = inlined_call_operand.hbm [shape: f32[2,1,32], index: 13, kind: input, shape index: {}]   ;;  %s4650_s14 = inlined_call_operand.hbm [shape: f32[2,1,32], index: 14, kind: input, shape index: {}]   ;;  %s4651_s15 = inlined_call_operand.hbm [shape: f32[2,1,32], index: 15, kind: input, shape index: {}]   ;;  %s4652_s16 = inlined_call_operand.hbm [shape: bf16[2,32,64], index: 16, kind: input, shape index: {}]   ;;  %s4653_s17 = inlined_call_operand.hbm [shape: f32[2,1,64], index: 17, kind: input, shape index: {}]   ;;  %s4654_s18 = inlined_call_operand.vmem [shape: bf16[2,64,32], index: 18, kind: input, shape index: {}]   ;;  %s4655_s19 = inlined_call_operand.hbm [shape: f32[2,1,32], index: 19, kind: input, shape index: {}]   ;;  %s4656_s20 = inlined_call_operand.vmem [shape: f32[2,16,32], index: 20, kind: output, shape index: {0}]   ;;  %s4657_s21 = inlined_call_operand.vmem [shape: f32[2,4,16], index: 21, kind: output, shape index: {1}]  }
   0x1   :  { %4668 = sst [smem:[#allocation30_spill]] %s4636_s0 }
   0x2   :  { %4669 = sst [smem:[#allocation31_spill]] %s4637_s1 }
   0x3   :  { %4670 = sst [smem:[#allocation32_spill]] %s4638_s2 }
   0x4   :  { %4671 = sst [smem:[#allocation33_spill]] %s4639_s3 }
   0x5   :  { %4672 = sst [smem:[#allocation34_spill]] %s4640_s4 }
   0x6   :  { %4673 = sst [smem:[#allocation35_spill]] %s4641_s5 }
   0x7   :  { %4674 = sst [smem:[#allocation36_spill]] %s4642_s6 }
   0x8   :  { %4675 = sst [smem:[#allocation37_spill]] %s4643_s7 }
   0x9   :  { %4676 = sst [smem:[#allocation38_spill]] %s4644_s8 }
   0xa   :  { %4677 = sst [smem:[#allocation39_spill]] %s4645_s9 }
   0xb   :  { %4678 = sst [smem:[#allocation40_spill]] %s4646_s10 }
   0xc   :  { %4679 = sst [smem:[#allocation41_spill]] %s4647_s11 }
   0xd   :  { %4680 = sst [smem:[#allocation42_spill]] %s4648_s12 }
   0xe   :  { %4681 = sst [smem:[#allocation43_spill]] %s4649_s13 }
   0xf   :  { %4682 = sst [smem:[#allocation44_spill]] %s4650_s14 }
  0x10   :  { %4683 = sst [smem:[#allocation45_spill]] %s4651_s15 }
  0x11   :  { %4684 = sst [smem:[#allocation46_spill]] %s4652_s16 }
  0x12   :  { %4685 = sst [smem:[#allocation47_spill]] %s4653_s17 }
  0x13   :  { %4686 = sst [smem:[#allocation48_spill]] %s4654_s18 }
  0x14   :  { %4687 = sst [smem:[#allocation49_spill]] %s4655_s19 }
  0x15   :  { %4688 = sst [smem:[#allocation50_spill]] %s4656_s20 }
  0x16   :  { %4689 = sst [smem:[#allocation51_spill]] %s4657_s21 }
  0x17   :  { %27 = vsyncpa [#allocation3], 0 }
  0x18   :  { %29 = vsyncpa [#allocation3 + $0x1], 0 }
  0x19   :  { %30 = vsyncpa [#allocation5], 0 }
  0x1a   :  { %32 = vsyncpa [#allocation5 + $0x1], 0 }
  0x1b   :  { %33 = vsyncpa [#allocation8], 0 }
  0x1c   :  { %35 = vsyncpa [#allocation8 + $0x1], 0 }
  0x1d   :  { %36 = vsyncpa [#allocation11], 0 }
  0x1e   :  { %38 = vsyncpa [#allocation11 + $0x1], 0 }
  0x1f   :  { %39 = vsyncpa [#allocation14], 0 }
  0x20   :  { %41 = vsyncpa [#allocation14 + $0x1], 0 }
  0x21   :  { %42 = vsyncpa [#allocation17], 0 }
  0x22   :  { %44 = vsyncpa [#allocation17 + $0x1], 0  ;;  %s3905_s2 = smov 0   ;;  %s3907_s25 = smov 0  }
  0x23   :  { %s3909_s26 = smov 0   ;;  %s3911_s27 = smov 0  }
  0x24   :  { %s3913_s3 = smov 0   ;;  %s3915_s28 = smov 0  }
  0x25   :  { %s3917_s29 = smov 0   ;;  %s3919_s0 = smov 0  }
  0x26 LB: > { %4690 = sst [smem:[#allocation24_spill]] %s3760_s26  ;;  %s4659_s4 = sadd.s32 4294967295, %s3780_s0   ;;  %s3780_s0 = sphi %s3919_s0, %s50_s0   ;;  %s3776_s29 = sphi %s3917_s29, %s4763_s29   ;;  %s3772_s28 = sphi %s3915_s28, %s4762_s28   ;;  %s3768_s3 = sphi %s3913_s3, %s4761_s3   ;;  %s3764_s27 = sphi %s3911_s27, %s4760_s27   ;;  %s3760_s26 = sphi %s3909_s26, %s4759_s26   ;;  %s3756_s25 = sphi %s3907_s25, %s4765_s25   ;;  %s3752_s2 = sphi %s3905_s2, %s4764_s2  }
  0x27   : > { %4691 = sst [smem:[#allocation25_spill]] %s3772_s28  ;;  %s59_s30 = sadd.s32 1, %s3772_s28 }
  0x28   : > { %4692 = sst [smem:[#allocation26_spill]] %s3776_s29  ;;  %p60_p0 = scmp.ge.s32.totalorder %s59_s30, 2 }
  0x29   : > { %s62_s5 = sadd.s32 1, %s3776_s29  ;;  %s251_s22 = sadd.s32 1, %s3760_s26 }
  0x2a   : > { %p258_p1 = scmp.ne.s32.totalorder %s3760_s26, %s3756_s25  ;;  %s4767_s30 = smov (%p60_p0, %s59_s30), 0 }
  0x2b   : > { %4693 = sst [smem:[#allocation27_spill]] %s4767_s30  ;;  %s4769_s5 = smov (!%p60_p0, %s62_s5), %s3776_s29 }
  0x2c   : > { %s248_s23 = ssub.s32 %s3772_s28, %s4767_s30  ;;  %p259_p2 = scmp.eq.s32.totalorder %s3780_s0, 0 }
  0x2d   : > { %p64_p3 = scmp.ge.s32.totalorder %s4769_s5, 2  ;;  %p249_p4 = scmp.eq.s32.totalorder %s248_s23, 0 }
  0x2e   : > { %p260_p5 = por %p259_p2, %p258_p1  ;;  %p264_p6 = scmp.ne.s32.totalorder %s3756_s25, %s3752_s2 }
  0x2f   : > { %s4771_s5 = smov (%p64_p3, %s4769_s5), 0  ;;  %p265_p7 = scmp.eq.s32.totalorder %s4659_s4, 0 }
  0x30   : > { %4694 = sst [smem:[#allocation28_spill]] %s4771_s5  ;;  %p3193_p8 = scmp.lt.s32.totalorder %s3780_s0, 4 }
  0x31   : > { %s3959_s1 = scalar_select %p249_p4, %s3760_s26, %s251_s22  }
  0x32   : > { %s3965_s24 = sand.u32 1, %s3760_s26   ;;  %p3967_p9 = por %p265_p7, %p264_p6 }
  0x33   : > { %4695 = sst [smem:[#allocation29_spill]] %s3959_s1  ;;  %s3972_s23 = sand.u32 1, %s3780_s0  }
  0x34   : > { %p3974_p10 = pnand %p3193_p8, %p260_p5  ;;  %s4698_s8 = sld [smem:[#allocation38_spill]] }
  0x35   : > { %s721_s1 = scalar_lea.vmem [#allocation4], %s3965_s24  ;;  %p3019_p11 = scmp.ge.s32.totalorder %s3780_s0, 1 }
  0x36   : > { %s728_s26 = sshll.u32 %s721_s1, 4  ;;  %s4662_s21 = scalar_lea.sflag [#allocation5], %s3972_s23  ;;  %s729_s26 = int_to_ptr.vmem [resolvable:$true] %s728_s26 }
  0x37   : > { %p898_p12 = scmp.lt.s32.totalorder %s3780_s0, 5  ;;  %s4699_s11 = sld [smem:[#allocation41_spill]] }
  0x38   : > { %s4701_s14 = sld [smem:[#allocation44_spill]]  ;;  %s3782_s10 = smov 64  }
  0x39   : > { %p3994_p13 = pnand %p3019_p11, %p898_p12  ;;  %s4702_s16 = sld [smem:[#allocation46_spill]] }
  0x3a   : > { %s724_s5 = scalar_lea.hbm %s4698_s8, %s3772_s28  ;;  %s763_s8 = scalar_lea.vmem [#allocation7], %s3965_s24 }
  0x3b   : > { %s726_s29 = sshll.u32 %s724_s5, 4  ;;  %s770_s20 = sshll.u32 %s763_s8, 4  ;;  %s727_s29 = int_to_ptr.hbm [resolvable:$true] %s726_s29  ;;  %s771_s20 = int_to_ptr.vmem [resolvable:$true] %s770_s20 }
  0x3c   : > { %3168 = dma.hbm_to_vmem [thread:$0]  (!%p3974_p10), %s727_s29, 16, %s729_s26, %s4662_s21  }
  0x3d   : > { %s766_s5 = scalar_lea.hbm %s4699_s11, %s3772_s28  ;;  %s4663_s26 = scalar_lea.sflag [#allocation8], %s3972_s23 }
  0x3e   : > { %s768_s1 = sshll.u32 %s766_s5, 4  ;;  %s808_s4 = scalar_lea.hbm %s4701_s14, %s3772_s28  ;;  %s769_s1 = int_to_ptr.hbm [resolvable:$true] %s768_s1 }
  0x3f   : > { %3174 = dma.hbm_to_vmem [thread:$0]  (!%p3974_p10), %s769_s1, 16, %s771_s20, %s4663_s26  }
  0x40   : > { %s810_s21 = sshll.u32 %s808_s4, 4  ;;  %s805_s11 = scalar_lea.vmem [#allocation10], %s3965_s24  ;;  %s811_s21 = int_to_ptr.hbm [resolvable:$true] %s810_s21 }
  0x41   : > { %s812_s12 = sshll.u32 %s805_s11, 4  ;;  %s4664_s5 = scalar_lea.sflag [#allocation11], %s3972_s23  ;;  %s813_s12 = int_to_ptr.vmem [resolvable:$true] %s812_s12 }
  0x42   : > { %3180 = dma.hbm_to_vmem [thread:$0]  (!%p3974_p10), %s811_s21, 16, %s813_s12, %s4664_s5  }
  0x43   : > { %s3016_s8 = sshll.u32 %s3965_s24, 4  ;;  %s3120_s20 = sshll.u32 %s3772_s28, 4 }
  0x44   : > { %s845_s18 = scalar_lea.hbm %s4702_s16, %s3120_s20  ;;  %s840_s29 = scalar_lea.vmem [#allocation13], %s3016_s8 }
  0x45   : > { %s848_s11 = sshll.u32 %s840_s29, 4  ;;  %s846_s4 = sshll.u32 %s845_s18, 4  ;;  %s849_s11 = int_to_ptr.vmem [resolvable:$true] %s848_s11  ;;  %s847_s4 = int_to_ptr.hbm [resolvable:$true] %s846_s4 }
  0x46   : > { %s837_s14 = scalar_lea.sflag [#allocation14], %s3972_s23  ;;  %s3783_s6 = smov 4  }
  0x47   : > { %3186 = dma.hbm_to_vmem [thread:$0]  (!%p3974_p10), %s847_s4, 256, %s849_s11, %s837_s14, %s3782_s10, %s3782_s10, %s3783_s6  }
  0x48   : > { %s4703_s7 = sld [smem:[#allocation37_spill]]  ;;  %s704_s20 = scalar_lea.vmem [#allocation2], %s3965_s24 }
  0x49   : > { %s711_s1 = sshll.u32 %s704_s20, 4  ;;  %s702_s18 = scalar_lea.sflag [#allocation3], %s3965_s24  ;;  %s712_s1 = int_to_ptr.vmem [resolvable:$true] %s711_s1 }
  0x4a   : > { %s4704_s9 = sld [smem:[#allocation39_spill]]  ;;  %s738_s11 = scalar_lea.vmem [#allocation6], %s3965_s24 }
  0x4b   : > { %s745_s4 = sshll.u32 %s738_s11, 4  ;;  %s4705_s12 = scalar_lea.sflag [#allocation5], %s3972_s23  ;;  %s746_s4 = int_to_ptr.vmem [resolvable:$true] %s745_s4 }
  0x4c   : > { %s4706_s13 = sld [smem:[#allocation43_spill]]  ;;  %s788_s5 = scalar_lea.vmem [#allocation9], %s3965_s24 }
  0x4d   : > { %s4708_s15 = sld [smem:[#allocation45_spill]]  ;;  %s4709_s21 = scalar_lea.sflag [#allocation11], %s3972_s23 }
  0x4e   : > { %s707_s26 = scalar_lea.hbm %s4703_s7, %s3772_s28  ;;  %s4710_s17 = sld [smem:[#allocation47_spill]] }
  0x4f   : > { %s709_s8 = sshll.u32 %s707_s26, 4  ;;  %s4711_s19 = sld [smem:[#allocation49_spill]]  ;;  %s710_s8 = int_to_ptr.hbm [resolvable:$true] %s709_s8 }
  0x50   : > { %3165 = dma.hbm_to_vmem [thread:$0]  (!%p3974_p10), %s710_s8, 16, %s712_s1, %s702_s18  }
  0x51   : > { %s741_s6 = scalar_lea.hbm %s4704_s9, %s3772_s28  ;;  %s795_s1 = sshll.u32 %s788_s5, 4  ;;  %s796_s1 = int_to_ptr.vmem [resolvable:$true] %s795_s1 }
  0x52   : > { %s743_s10 = sshll.u32 %s741_s6, 4  ;;  %s791_s8 = scalar_lea.hbm %s4706_s13, %s3772_s28  ;;  %s744_s10 = int_to_ptr.hbm [resolvable:$true] %s743_s10 }
  0x53   : > { %3171 = dma.hbm_to_vmem [thread:$0]  (!%p3974_p10), %s744_s10, 16, %s746_s4, %s4705_s12  }
  0x54   : > { %s793_s20 = sshll.u32 %s791_s8, 4  ;;  %s4707_s18 = scalar_lea.sflag [#allocation8], %s3972_s23  ;;  %s794_s20 = int_to_ptr.hbm [resolvable:$true] %s793_s20 }
  0x55   : > { %3177 = dma.hbm_to_vmem [thread:$0]  (!%p3974_p10), %s794_s20, 16, %s796_s1, %s4707_s18  }
  0x56   : > { %s825_s10 = scalar_lea.hbm %s4708_s15, %s3772_s28  ;;  %s822_s4 = scalar_lea.vmem [#allocation12], %s3965_s24 }
  0x57   : > { %s827_s11 = sshll.u32 %s825_s10, 4  ;;  %s829_s12 = sshll.u32 %s822_s4, 4  ;;  %s828_s11 = int_to_ptr.hbm [resolvable:$true] %s827_s11  ;;  %s830_s12 = int_to_ptr.vmem [resolvable:$true] %s829_s12 }
  0x58   : > { %3183 = dma.hbm_to_vmem [thread:$0]  (!%p3974_p10), %s828_s11, 16, %s830_s12, %s4709_s21  }
  0x59   : > { %s864_s5 = scalar_lea.hbm %s4710_s17, %s3772_s28  ;;  %s861_s1 = scalar_lea.vmem [#allocation15], %s3965_s24 }
  0x5a   : > { %s866_s20 = sshll.u32 %s864_s5, 4  ;;  %s868_s18 = sshll.u32 %s861_s1, 4  ;;  %s867_s20 = int_to_ptr.hbm [resolvable:$true] %s866_s20  ;;  %s869_s18 = int_to_ptr.vmem [resolvable:$true] %s868_s18 }
  0x5b   : > { %3189 = dma.hbm_to_vmem [thread:$0]  (!%p3974_p10), %s867_s20, 16, %s869_s18, %s837_s14  }
  0x5c   : > { %s889_s10 = scalar_lea.hbm %s4711_s19, %s3772_s28  ;;  %s886_s4 = scalar_lea.vmem [#allocation16], %s3965_s24 }
  0x5d   : > { %s893_s7 = sshll.u32 %s886_s4, 4  ;;  %s891_s9 = sshll.u32 %s889_s10, 4  ;;  %s894_s7 = int_to_ptr.vmem [resolvable:$true] %s893_s7  ;;  %s892_s9 = int_to_ptr.hbm [resolvable:$true] %s891_s9 }
  0x5e   : > { %s884_s11 = scalar_lea.sflag [#allocation17], %s3965_s24  ;;  %902 = sbr.rel (%p3994_p13) target bundleno = 3723 (0xe8b), region = 100 }
  0x5f   : > { %3192 = dma.hbm_to_vmem [thread:$0]  (!%p3974_p10), %s892_s9, 16, %s894_s7, %s884_s11  }
  0x60   : > { %s4079_s12 = sand.u32 (!%p3994_p13), 1, %s3756_s25  }
  0x61   : > { %s905_s14 = scalar_lea.sflag (!%p3994_p13), [#allocation3], %s4079_s12 }
  0x63   : > { %3727 = dma.done.wait (%p3967_p9), %s905_s14, 16  }
  0x64   : > { %3729 = vsyncadd (%p3967_p9), %s905_s14, 4294967280  ;;  %s4712_s24 = sadd.s32 4294967295, %s3780_s0  }
  0x65   : > { %s913_s7 = sand.u32 1, %s4712_s24  }
  0x66   : > { %s914_s9 = scalar_lea.sflag [#allocation5], %s913_s7 }
  0x67   : > { %3731 = dma.done.wait (%p3967_p9), %s914_s9, 32  }
  0x68   : > { %3733 = vsyncadd (%p3967_p9), %s914_s9, 4294967264  ;;  %s932_s21 = scalar_lea.sflag [#allocation8], %s913_s7 }
  0x69   : > { %3735 = dma.done.wait (%p3967_p9), %s932_s21, 32  }
  0x6a   : > { %3737 = vsyncadd (%p3967_p9), %s932_s21, 4294967264  ;;  %s950_s5 = scalar_lea.sflag [#allocation11], %s913_s7 }
  0x6b   : > { %3739 = dma.done.wait (%p3967_p9), %s950_s5, 32  }
  0x6c   : > { %3741 = vsyncadd (%p3967_p9), %s950_s5, 4294967264  ;;  %s3020_s1 = sshll.u32 %s4079_s12, 4  ;;  %s968_s29 = scalar_lea.sflag [#allocation14], %s913_s7 }
  0x6d   : > { %s4108_s6 = scalar_lea.vmem [#allocation13], %s3020_s1 }
  0x6e   : > { %3743 = dma.done.wait (%p3967_p9), %s968_s29, 272  }
  0x6f   : > { %3745 = vsyncadd (%p3967_p9), %s968_s29, 4294967024  ;;  %s987_s4 = scalar_lea.sflag [#allocation17], %s4079_s12 }
  0x70   : > { %3747 = dma.done.wait (%p3967_p9), %s987_s4, 16  }
  0x71   : > { %3749 = vsyncadd (%p3967_p9), %s987_s4, 4294967280  ;;  %p1132_p0 = scmp.lt.s32.totalorder %s3768_s3, 1  ;;  %p1141_p1 = scmp.lt.s32.totalorder %s3764_s27, 1 }
  0x72   : > { %s4713_s30 = sld [smem:[#allocation30_spill]]  ;;  %p3037_p2 = scmp.ne.s32.totalorder %s3764_s27, 0 }
  0x73   : > { %s4773_s3 = smov (!%p1132_p0, %s3768_s3), 1  ;;  %s4714_s4 = sld [smem:[#allocation31_spill]] }
  0x74   : > { %s4125_s14 = scalar_select %p1141_p1, %s3764_s27, 1 }
  0x75   : > { %s3121_s24 = sshll.u32 %s4773_s3, 4  ;;  %s3023_s7 = sshll.u32 %s4773_s3, 2 }
  0x76   : > { %s3122_s13 = sshll.u32 %s4125_s14, 4  ;;  %s4720_s10 = sld [smem:[#allocation40_spill]] }
  0x77   : > { %s4721_s23 = sld [smem:[#allocation42_spill]]  ;;  %s3126_s16 = sshll.u32 %s4125_s14, 5 }
  0x78   : > { %s1136_s5 = scalar_lea.vmem %s4713_s30, %s3121_s24  ;;  %s4718_s30 = sld [smem:[#allocation34_spill]] }
  0x79   : > { %s4133_s11 = scalar_lea.vmem %s4714_s4, %s3023_s7  ;;  %s4719_s4 = sld [smem:[#allocation36_spill]] }
  0x7a   : > { %s4722_s21 = sld [smem:[#allocation50_spill]] }
  0x7b   : > { %s4723_s29 = sld [smem:[#allocation48_spill]] }
  0x7c   : > { %s4161_s2 = scalar_lea.vmem %s4720_s10, %s3122_s13  ;;  %s4724_s18 = sld [smem:[#allocation51_spill]] }
  0x7d   : > { %s4166_s15 = scalar_lea.vmem %s4721_s23, %s3122_s13 }
  0x7e   : > { %s4151_s19 = scalar_lea.vmem %s4718_s30, %s3122_s13  ;;  %1188 = sbr.rel (%p3037_p2) target bundleno = 134 (0x86), region = 144 }
  0x7f   : > { %s4156_s28 = scalar_lea.vmem %s4719_s4, %s3122_s13 }
  0x80   : > { %s4172_s30 = scalar_lea.vmem %s4722_s21, %s3121_s24 }
  0x81   : > { %s4177_s4 = scalar_lea.vmem %s4723_s29, %s3126_s16 }
  0x82   : > { %s4182_s10 = scalar_lea.vmem %s4724_s18, %s3023_s7 }
  0x83   : > { %v1189_v0 = vld [vmem:[%s1136_s5] sm:$0xff]  ;;  %vm1191_vm0 = vcmask 261120   ;;  %v1190_v1 = vld [vmem:[%s1136_s5 + $0x8] sm:$0xff] }
  0x84   : > { %1192 = vst.msk [vmem:[%s4172_s30] sm:$0xff] %vm1191_vm0, %v1189_v0 }
  0x85   : > { %1193 = vst.msk [vmem:[%s4172_s30 + $0x8] sm:$0xff] %vm1191_vm0, %v1190_v1 }
  0x86 PF: > { %vm4666_vm1 = vcmask 261120   ;;  %v3784_v6 = vmov 32.0   ;;  %v3129_v23 = vld [vmem:[%s4151_s19 + $0x8] sm:$0xff]  ;;  %v3128_v25 = vld [vmem:[%s4151_s19] sm:$0xff]  ;;  %s4725_s19 = sld [smem:[#allocation32_spill]]  ;;  %s3785_s9 = smov 112  }
  0x87   : > { %3310 = vrcp.f32 %v3784_v6  ;;  %1291 = vmatpush.bf16.msra.mxu0 %v3129_v23  ;;  %s4727_s7 = sld [smem:[#allocation33_spill]]  ;;  %s3786_s21 = smov 120   ;;  %vm1364_vm9 = vcmask 64512   ;;  %vm1481_vm11 = vcmask 130048   ;;  %vm4667_vm13 = vcmask 195584  }
  0x88   : > { %s4729_s16 = sld [smem:[#allocation35_spill]]  ;;  %s3788_s1 = smov 96  }
  0x89   : > { %s3790_s29 = smov 64   ;;  %s3791_s20 = smov 8  }
  0x8a   : > { %s3792_s18 = smov 16   ;;  %s3793_s13 = smov 24  }
  0x8b   : > { %v4188_v2 = vld [vmem:[%s4172_s30] sm:$0xff]  ;;  %1292 = vmatpush.bf16.msra.mxu0 %v3128_v25  ;;  %s4733_s17 = scalar_lea.vmem [#allocation4], %s4079_s12  ;;  %p3091_p3 = scmp.ne.s32.totalorder %s3764_s27, 1 }
  0x8c   : > { %v1200_v3 = vsel %vm4666_vm1, %v4188_v2, 0.0  ;;  %v4193_v4 = vld [vmem:[%s4172_s30 + $0x8] sm:$0xff]  ;;  %s4726_s23 = scalar_lea.vmem %s4725_s19, %s4125_s14  ;;  %s4734_s19 = scalar_lea.vmem [#allocation6], %s4079_s12 }
  0x8d   : > { %1201 = vadd.xlane.f32.xlu0 %v1200_v3  ;;  %v1203_v5 = vsel %vm4666_vm1, %v4193_v4, 0.0  ;;  %v3311_v7 = vpop.eup %3310  ;;  %v3302_v44 = vld [vmem:[%s4726_s23] ss:$0 sm:$0xff]  ;;  %s4728_s5 = scalar_lea.vmem %s4727_s7, %s4125_s14 }
  0x8e   : > { %v1207_v8 = vmul.f32 32.0, %v3311_v7  ;;  %vm1211_vm2 = vweird.f32 %v3311_v7  ;;  %v3303_v49 = vld [vmem:[%s4728_s5] ss:$0 sm:$0xff]  ;;  %s4730_s3 = scalar_lea.vmem %s4729_s16, %s4125_s14  ;;  %s3787_s14 = smov 104  }
  0x8f   : > { %v3304_v54 = vld [vmem:[%s4730_s3] ss:$0 sm:$0xff] }
  0x90   : > { %v1208_v9 = vsub.f32 1.0, %v1207_v8 }
  0x92   : > { %v1209_v10 = vmul.f32 %v3311_v7, %v1208_v9 }
  0x94   : > { %v1210_v11 = vadd.f32 %v3311_v7, %v1209_v10 }
  0x95   : > { %1204 = vadd.xlane.f32.xlu0 %v1203_v5 }
  0x96   : > { %v4197_v12 = vsel %vm1211_vm2, %v3311_v7, %v1210_v11 }
 0x100   : > { %v1202_v13 = vpop.xlane.xlu0 %1201 }
 0x101   : > { %v1213_v14 = vmul.f32 %v4197_v12, %v1202_v13 }
 0x103   : > { %v1215_v15 = vsub.f32 %v4188_v2, %v1213_v14 }
 0x105   : > { %v1217_v16 = vmul.f32 %v1215_v15, %v1215_v15 }
 0x107   : > { %v1219_v17 = vsel %vm4666_vm1, %v1217_v16, 0.0 }
 0x108   : > { %1220 = vadd.xlane.f32.xlu1 %v1219_v17  ;;  %v1205_v18 = vpop.xlane.xlu0 %1204 }
 0x109   : > { %v1214_v19 = vmul.f32 %v4197_v12, %v1205_v18 }
 0x10b   : > { %v1216_v20 = vsub.f32 %v4193_v4, %v1214_v19 }
 0x10d   : > { %v1218_v21 = vmul.f32 %v1216_v20, %v1216_v20 }
 0x10f   : > { %v1222_v22 = vsel %vm4666_vm1, %v1218_v21, 0.0 }
 0x110   : > { %1223 = vadd.xlane.f32.xlu1 %v1222_v22 }
 0x17b   : > { %v1221_v24 = vpop.xlane.xlu1 %1220 }
 0x17c   : > { %v1225_v26 = vmul.f32 %v1221_v24, %v4197_v12 }
 0x17e   : > { %v1227_v27 = vadd.f32 1e-05, %v1225_v26 }
 0x180   : > { %3312 = vrsqrt.f32 %v1227_v27  ;;  %vm1235_vm4 = vweird.f32 %v1227_v27 }
 0x183   : > { %v1224_v28 = vpop.xlane.xlu1 %1223 }
 0x184   : > { %v1226_v29 = vmul.f32 %v1224_v28, %v4197_v12 }
 0x186   : > { %v3313_v30 = vpop.eup %3312  ;;  %v1228_v31 = vadd.f32 1e-05, %v1226_v29 }
 0x187   : > { %v1230_v32 = vmul.f32 %v3313_v30, %v1227_v27  ;;  %vm1236_vm3 = vweird.f32 %v3313_v30 }
 0x188   : > { %3314 = vrsqrt.f32 %v1228_v31  ;;  %vm1237_vm5 = vmor %vm1235_vm4, %vm1236_vm3  ;;  %vm1245_vm7 = vweird.f32 %v1228_v31 }
 0x189   : > { %v1231_v33 = vmul.f32 %v3313_v30, %v1230_v32 }
 0x18b   : > { %v1232_v34 = vmul.f32 0.5, %v1231_v33 }
 0x18d   : > { %v1233_v35 = vsub.f32 1.5, %v1232_v34 }
 0x18e   : > { %v3315_v36 = vpop.eup %3314 }
 0x18f   : > { %v1234_v37 = vmul.f32 %v3313_v30, %v1233_v35  ;;  %v1240_v38 = vmul.f32 %v3315_v36, %v1228_v31  ;;  %vm1246_vm6 = vweird.f32 %v3315_v36 }
 0x190   : > { %vm1247_vm8 = vmor %vm1245_vm7, %vm1246_vm6 }
 0x191   : > { %v1241_v39 = vmul.f32 %v3315_v36, %v1240_v38  ;;  %v1238_v40 = vsel %vm1237_vm5, %v3313_v30, %v1234_v37  ;;  %vm2021_vm5 = vcmask 31744  }
 0x192   : > { %v1249_v43 = vmul.f32 %v1238_v40, %v1215_v15 }
 0x193   : > { %v1242_v41 = vmul.f32 0.5, %v1241_v39 }
 0x194   : > { %v1254_v48 = vmul.f32 %v3302_v44, %v1249_v43 }
 0x195   : > { %v1243_v42 = vsub.f32 1.5, %v1242_v41 }
 0x196   : > { %v1259_v51 = vadd.f32 %v3303_v49, %v1254_v48 }
 0x197   : > { %v1244_v45 = vmul.f32 %v3315_v36, %v1243_v42 }
 0x199   : > { %v1248_v46 = vsel %vm1247_vm8, %v3315_v36, %v1244_v45 }
 0x19a   : > { %v1250_v47 = vmul.f32 %v1248_v46, %v1216_v20 }
 0x19c   : > { %v1255_v50 = vmul.f32 %v3302_v44, %v1250_v47 }
 0x19e   : > { %v1260_v52 = vadd.f32 %v3303_v49, %v1255_v50 }
 0x1a0   : > { %v1265_v53 = vpack.c.bf16 %v1260_v52, %v1259_v51 }
 0x1a2   : > { %3046 = vmatmul.msk.bf16.vlgmr.msra.gmra.mxu0 %vm4666_vm1, %v1265_v53 }
 0x21f   : > { %v1294_v55 = vpop.f32.mrf.mxu0 }
 0x220   : > { %v1295_v56 = vadd.f32 %v3304_v54, %v1294_v55 }
 0x222   : > { %1307 = vrot.lane.b32.xlu0 %v1295_v56, %s3785_s9  ;;  %1301 = vrot.lane.b32.xlu2 %v1295_v56, %s3786_s21  ;;  %v1319_v57 = vmul.f32 0.35355338, %v1295_v56  ;;  %v1335_v60 = vpack.c.bf16 %v1295_v56, %v1295_v56 }
 0x224   : > { %v1327_v63 = vpack.c.bf16 %v1319_v57, %v1319_v57  ;;  %v1359_v3 = vunpack.c.l.b16 %v1335_v60  ;;  %v1343_v60 = vlaneseq }
 0x226   : > { %v1354_v5 = vunpack.c.l.b16 %v1327_v63  ;;  %v3789_v63 = vmov 0.0  }
 0x227   : > { %v1296_v58 = vpop.f32.mrf.mxu0 }
 0x228   : > { %v1297_v59 = vadd.f32 %v3304_v54, %v1296_v58 }
 0x22a   : > { %1309 = vrot.lane.b32.xlu1 %v1297_v59, %s3785_s9  ;;  %1303 = vrot.lane.b32.xlu2 %v1297_v59, %s3786_s21  ;;  %v1336_v61 = vpack.c.bf16 %v1297_v59, %v1297_v59  ;;  %v1320_v62 = vmul.f32 0.35355338, %v1297_v59 }
 0x22c   : > { %v1360_v0 = vunpack.c.l.b16 %v1336_v61  ;;  %v1328_v1 = vpack.c.bf16 %v1320_v62, %v1320_v62  ;;  %v1344_v61 = vshrl.u32 %v1343_v60, 7  ;;  %v1347_v62 = vand.u32 127, %v1343_v60 }
 0x22e   : > { %v1355_v6 = vunpack.c.l.b16 %v1328_v1  ;;  %v4229_v7 = vpack.c.b16 %v1360_v0, %v1359_v3  ;;  %vm1348_vm10 = vcmp.gt.s32.totalorder %v1347_v62, %v1344_v61  ;;  %v1345_v3 = vadd.s32 8, %v1344_v61 }
 0x22f   : > { %v1350_v0 = vsel %vm1348_vm10, -1e+30, %v3789_v63  ;;  %vm2235_vm10 = vcmask 1041408  }
 0x230   : > { %v1356_v8 = vpack.c.b16 %v1355_v6, %v1354_v5  ;;  %vm1349_vm12 = vcmp.gt.s32.totalorder %v1347_v62, %v1345_v3 }
 0x232   : > { %1313 = vrot.lane.b32.xlu2 %v1295_v56, %s3787_s14  ;;  %1362 = vrot.lane.b32.xlu1 %v4229_v7, %s3788_s1 }
 0x23a   : > { %1315 = vrot.lane.b32.xlu2 %v1297_v59, %s3787_s14 }
 0x27c   : > { %v1302_v9 = vpop.permute.xlu2 %1301 }
 0x27d   : > { %v1321_v10 = vmul.f32 0.35355338, %v1302_v9  ;;  %v1337_v11 = vpack.c.bf16 %v1302_v9, %v1302_v9 }
 0x27f   : > { %v1329_v14 = vpack.c.bf16 %v1321_v10, %v1321_v10  ;;  %v1392_v17 = vunpack.c.l.b16 %v1337_v11 }
 0x281   : > { %v1387_v20 = vunpack.c.l.b16 %v1329_v14 }
 0x284   : > { %v1304_v13 = vpop.permute.xlu2 %1303 }
 0x285   : > { %v1322_v15 = vmul.f32 0.35355338, %v1304_v13  ;;  %v1338_v16 = vpack.c.bf16 %v1304_v13, %v1304_v13 }
 0x287   : > { %v1330_v18 = vpack.c.bf16 %v1322_v15, %v1322_v15  ;;  %v1393_v19 = vunpack.c.l.b16 %v1338_v16 }
 0x289   : > { %v1388_v21 = vunpack.c.l.b16 %v1330_v18  ;;  %v4235_v22 = vpack.c.b16 %v1393_v19, %v1392_v17 }
 0x28b   : > { %1395 = vrot.lane.b32.xlu2 %v4235_v22, %s3788_s1  ;;  %v1389_v23 = vpack.c.b16 %v1388_v21, %v1387_v20 }
 0x28c   : > { %v1314_v24 = vpop.permute.xlu2 %1313 }
 0x28d   : > { %v1341_v25 = vpack.c.bf16 %v1314_v24, %v1314_v24  ;;  %v1325_v43 = vmul.f32 0.35355338, %v1314_v24 }
 0x28f   : > { %v1456_v28 = vunpack.c.l.b16 %v1341_v25  ;;  %v1333_v46 = vpack.c.bf16 %v1325_v43, %v1325_v43 }
 0x291   : > { %v1451_v49 = vunpack.c.l.b16 %v1333_v46 }
 0x294   : > { %v1316_v26 = vpop.permute.xlu2 %1315  ;;  %v1308_v30 = vpop.permute.xlu0 %1307 }
 0x295   : > { %v1342_v27 = vpack.c.bf16 %v1316_v26, %v1316_v26  ;;  %v1339_v32 = vpack.c.bf16 %v1308_v30, %v1308_v30  ;;  %v1326_v42 = vmul.f32 0.35355338, %v1316_v26  ;;  %v1323_v52 = vmul.f32 0.35355338, %v1308_v30 }
 0x297   : > { %v1457_v29 = vunpack.c.l.b16 %v1342_v27  ;;  %v1424_v35 = vunpack.c.l.b16 %v1339_v32  ;;  %v1334_v44 = vpack.c.bf16 %v1326_v42, %v1326_v42  ;;  %v1331_v55 = vpack.c.bf16 %v1323_v52, %v1323_v52 }
 0x299   : > { %v4239_v31 = vpack.c.b16 %v1457_v29, %v1456_v28  ;;  %v1452_v48 = vunpack.c.l.b16 %v1334_v44  ;;  %v1419_v58 = vunpack.c.l.b16 %v1331_v55 }
 0x29b   : > { %1459 = vrot.lane.b32.xlu2 %v4239_v31, %s3788_s1  ;;  %v1453_v50 = vpack.c.b16 %v1452_v48, %v1451_v49 }
 0x29c   : > { %v1310_v33 = vpop.permute.xlu1 %1309 }
 0x29d   : > { %v1340_v34 = vpack.c.bf16 %v1310_v33, %v1310_v33  ;;  %v1324_v51 = vmul.f32 0.35355338, %v1310_v33 }
 0x29f   : > { %v1425_v36 = vunpack.c.l.b16 %v1340_v34  ;;  %v1332_v53 = vpack.c.bf16 %v1324_v51, %v1324_v51 }
 0x2a1   : > { %v4243_v37 = vpack.c.b16 %v1425_v36, %v1424_v35  ;;  %v1420_v57 = vunpack.c.l.b16 %v1332_v53 }
 0x2a3   : > { %1427 = vrot.lane.b32.xlu0 %v4243_v37, %s3788_s1  ;;  %v1421_v59 = vpack.c.b16 %v1420_v57, %v1419_v58 }
 0x2a4   : > { %v1363_v38 = vpop.permute.xlu1 %1362 }
 0x2a5   : > { %v1369_v39 = vsel %vm1364_vm9, %v1363_v38, 0 }
 0x2a6   : > { %1378 = vmatpush.bf16.xpose.msra.mxu1 %v1369_v39 }
 0x2ad   : > { %3047 = vmatmul.msk.bf16.vlgmr.msra.gmra.mxu1 %vm1364_vm9, %v1356_v8  ;;  %v1351_v8 = vsel %vm1349_vm12, -1e+30, %v3789_v63 }
 0x2e5   : > { %v1396_v40 = vpop.permute.xlu2 %1395 }
 0x2e6   : > { %v1401_v41 = vsel %vm1364_vm9, %v1396_v40, 0 }
 0x2e7   : > { %1410 = vmatpush.bf16.xpose.msra.mxu2 %v1401_v41 }
 0x2ee   : > { %3048 = vmatmul.msk.bf16.vlgmr.msra.gmra.mxu2 %vm1364_vm9, %v1389_v23 }
 0x2f5   : > { %v1460_v45 = vpop.permute.xlu2 %1459 }
 0x2f6   : > { %v1465_v47 = vsel %vm1364_vm9, %v1460_v45, 0 }
 0x2f7   : > { %1474 = vmatpush.bf16.xpose.msrb.mxu0 %v1465_v47 }
 0x2fe   : > { %3050 = vmatmul.msk.bf16.vlgmr.msrb.gmra.mxu0 %vm1364_vm9, %v1453_v50 }
 0x315   : > { %v1428_v54 = vpop.permute.xlu0 %1427 }
 0x316   : > { %v1433_v56 = vsel %vm1364_vm9, %v1428_v54, 0 }
 0x317   : > { %1442 = vmatpush.bf16.xpose.msra.mxu3 %v1433_v56 }
 0x31e   : > { %3049 = vmatmul.msk.bf16.vlgmr.msra.gmra.mxu3 %vm1364_vm9, %v1421_v59 }
 0x32a   : > { %v1380_v11 = vpop.f32.mrf.mxu1 }
 0x32b   : > { %v1381_v30 = vadd.f32 %v1380_v11, %v1350_v0 }
 0x32d   : > { %v1482_v32 = vsel %vm1481_vm11, %v1381_v30, -inf }
 0x332   : > { %v1382_v17 = vpop.f32.mrf.mxu1 }
 0x333   : > { %v4258_v18 = vadd.f32 %v1382_v17, %v1351_v8 }
 0x335   : > { %v1485_v19 = vsel %vm1481_vm11, %v4258_v18, -inf }
 0x371   : > { %v1412_v1 = vpop.f32.mrf.mxu2 }
 0x372   : > { %v1413_v5 = vadd.f32 %v1412_v1, %v1350_v0 }
 0x374   : > { %v1488_v6 = vsel %vm1481_vm11, %v1413_v5, -inf }
 0x375   : > { %1489 = vmax.xlane.f32.xlu0 %v1488_v6 }
 0x379   : > { %v1414_v9 = vpop.f32.mrf.mxu2 }
 0x37a   : > { %v1415_v10 = vadd.f32 %v1414_v9, %v1351_v8 }
 0x37b   : > { %v1476_v14 = vpop.f32.mrf.mxu0 }
 0x37c   : > { %v1491_v13 = vsel %vm1481_vm11, %v1415_v10, -inf  ;;  %v1477_v15 = vadd.f32 %v1476_v14, %v1350_v0 }
 0x37d   : > { %1492 = vmax.xlane.f32.xlu2 %v1491_v13 }
 0x37e   : > { %v1500_v16 = vsel %vm1481_vm11, %v1477_v15, -inf }
 0x383   : > { %v1478_v24 = vpop.f32.mrf.mxu0 }
 0x384   : > { %v1479_v25 = vadd.f32 %v1478_v24, %v1351_v8 }
 0x385   : > { %1501 = vmax.xlane.f32.xlu2 %v1500_v16 }
 0x386   : > { %v1503_v29 = vsel %vm1481_vm11, %v1479_v25, -inf }
 0x38d   : > { %1486 = vmax.xlane.f32.xlu2 %v1485_v19 }
 0x3a1   : > { %v1444_v20 = vpop.f32.mrf.mxu3 }
 0x3a2   : > { %v1445_v21 = vadd.f32 %v1444_v20, %v1350_v0 }
 0x3a4   : > { %v1494_v23 = vsel %vm1481_vm11, %v1445_v21, -inf }
 0x3a5   : > { %1495 = vmax.xlane.f32.xlu1 %v1494_v23 }
 0x3a9   : > { %v1446_v26 = vpop.f32.mrf.mxu3 }
 0x3aa   : > { %v1447_v27 = vadd.f32 %v1446_v26, %v1351_v8 }
 0x3ac   : > { %v1497_v28 = vsel %vm1481_vm11, %v1447_v27, -inf }
 0x3ad   : > { %1498 = vmax.xlane.f32.xlu0 %v1497_v28  ;;  %1504 = vmax.xlane.f32.xlu1 %v1503_v29 }
 0x3b5   : > { %1483 = vmax.xlane.f32.xlu0 %v1482_v32 }
 0x3e8   : > { %v1490_v33 = vpop.xlane.xlu0 %1489 }
 0x3e9   : > { %v1508_v34 = vsub.f32 %v1413_v5, %v1490_v33 }
 0x3eb   : > { %v1518_v35 = vmul.f32 1.442695, %v1508_v34 }
 0x3ed   : > { %3316 = vpow2.f32 %v1518_v35 }
 0x3f0   : > { %v1493_v36 = vpop.xlane.xlu2 %1492 }
 0x3f1   : > { %v1509_v42 = vsub.f32 %v1415_v10, %v1493_v36 }
 0x3f3   : > { %v4266_v38 = vpop.eup %3316  ;;  %v1520_v44 = vmul.f32 1.442695, %v1509_v42 }
 0x3f4   : > { %v1536_v39 = vsel %vm1481_vm11, %v4266_v38, 0.0 }
 0x3f5   : > { %1537 = vadd.xlane.f32.xlu1 %v1536_v39 }
 0x3f8   : > { %v1502_v40 = vpop.xlane.xlu2 %1501 }
 0x3f9   : > { %v1512_v41 = vsub.f32 %v1477_v15, %v1502_v40 }
 0x3fb   : > { %v1526_v43 = vmul.f32 1.442695, %v1512_v41 }
 0x3fd   : > { %3318 = vpow2.f32 %v1526_v43 }
 0x3fe   : > { %3320 = vpow2.f32 %v1520_v44 }
 0x400   : > { %v1487_v6 = vpop.xlane.xlu2 %1486 }
 0x401   : > { %v1507_v8 = vsub.f32 %v4258_v18, %v1487_v6 }
 0x403   : > { %v3319_v45 = vpop.eup %3318  ;;  %v1516_v9 = vmul.f32 1.442695, %v1507_v8  ;;  %v3131_v8 = vld [vmem:[%s4156_s28 + $0x8] sm:$0xff] }
 0x404   : > { %v1548_v46 = vsel %vm1481_vm11, %v3319_v45, 0.0  ;;  %v4271_v47 = vpop.eup %3320 }
 0x405   : > { %1549 = vadd.xlane.f32.xlu0 %v1548_v46  ;;  %v1539_v48 = vsel %vm1481_vm11, %v4271_v47, 0.0 }
 0x40d   : > { %1540 = vadd.xlane.f32.xlu0 %v1539_v48 }
 0x418   : > { %v1496_v49 = vpop.xlane.xlu1 %1495 }
 0x419   : > { %v1510_v50 = vsub.f32 %v1445_v21, %v1496_v49 }
 0x41b   : > { %v1522_v51 = vmul.f32 1.442695, %v1510_v50 }
 0x41d   : > { %3322 = vpow2.f32 %v1522_v51 }
 0x420   : > { %v1499_v52 = vpop.xlane.xlu0 %1498  ;;  %v1505_v53 = vpop.xlane.xlu1 %1504 }
 0x421   : > { %v1511_v54 = vsub.f32 %v1447_v27, %v1499_v52  ;;  %v1513_v55 = vsub.f32 %v1479_v25, %v1505_v53  ;;  %1633 = vrot.lane.b32.xlu0 %v4243_v37, %s3790_s29 }
 0x423   : > { %v3323_v56 = vpop.eup %3322  ;;  %v1524_v57 = vmul.f32 1.442695, %v1511_v54  ;;  %v1528_v58 = vmul.f32 1.442695, %v1513_v55 }
 0x424   : > { %v1542_v59 = vsel %vm1481_vm11, %v3323_v56, 0.0 }
 0x425   : > { %3324 = vpow2.f32 %v1524_v57  ;;  %1543 = vadd.xlane.f32.xlu2 %v1542_v59 }
 0x426   : > { %3326 = vpow2.f32 %v1528_v58 }
 0x428   : > { %v1484_v0 = vpop.xlane.xlu0 %1483 }
 0x429   : > { %v1506_v1 = vsub.f32 %v1381_v30, %v1484_v0 }
 0x42b   : > { %v3325_v60 = vpop.eup %3324  ;;  %v1514_v3 = vmul.f32 1.442695, %v1506_v1 }
 0x42c   : > { %v3327_v61 = vpop.eup %3326  ;;  %v1545_v62 = vsel %vm1481_vm11, %v3325_v60, 0.0 }
 0x42d   : > { %1546 = vadd.xlane.f32.xlu1 %v1545_v62  ;;  %v1551_v63 = vsel %vm1481_vm11, %v3327_v61, 0.0  ;;  %3328 = vpow2.f32 %v1514_v3 }
 0x42e   : > { %1552 = vadd.xlane.f32.xlu2 %v1551_v63  ;;  %3330 = vpow2.f32 %v1516_v9  ;;  %v3130_v9 = vld [vmem:[%s4156_s28] sm:$0xff]  ;;  %s4731_s28 = scalar_lea.vmem [#allocation2], %s4079_s12 }
 0x433   : > { %v4281_v37 = vpop.eup %3328 }
 0x434   : > { %v1530_v5 = vsel %vm1481_vm11, %v4281_v37, 0.0  ;;  %v3331_v10 = vpop.eup %3330 }
 0x435   : > { %v1533_v11 = vsel %vm1481_vm11, %v3331_v10, 0.0 }
 0x446   : > { %1658 = vrot.lane.b32.xlu2 %v4239_v31, %s3790_s29  ;;  %1608 = vrot.lane.b32.xlu1 %v4235_v22, %s3790_s29 }
 0x44b   : > { %1531 = vadd.xlane.f32.xlu0 %v1530_v5 }
 0x44e   : > { %1583 = vrot.lane.b32.xlu2 %v4229_v7, %s3790_s29 }
 0x468   : > { %v1538_v14 = vpop.xlane.xlu1 %1537 }
 0x470   : > { %1534 = vadd.xlane.f32.xlu1 %v1533_v11 }
 0x478   : > { %v1550_v31 = vpop.xlane.xlu0 %1549 }
 0x480   : > { %v1541_v13 = vpop.xlane.xlu0 %1540 }
 0x493   : > { %v1634_v22 = vpop.permute.xlu0 %1633 }
 0x494   : > { %1646 = vmatpush.bf16.msrb.mxu3 %v1634_v22 }
 0x498   : > { %v1544_v15 = vpop.xlane.xlu2 %1543 }
 0x499   : > { %3332 = vrcp.f32 %v1544_v15 }
 0x49a   : > { %3334 = vrcp.f32 %v1550_v31 }
 0x49f   : > { %v3333_v17 = vpop.eup %3332 }
 0x4a0   : > { %v1547_v16 = vpop.xlane.xlu1 %1546  ;;  %v3335_v19 = vpop.eup %3334  ;;  %v1566_v18 = vmul.f32 %v3333_v17, %v3323_v56 }
 0x4a1   : > { %3336 = vrcp.f32 %v1547_v16  ;;  %v1553_v7 = vpop.xlane.xlu2 %1552  ;;  %v1568_v20 = vmul.f32 %v3335_v19, %v3319_v45 }
 0x4a2   : > { %3338 = vrcp.f32 %v1553_v7  ;;  %v1574_v24 = vpack.c.bf16 %v1566_v18, %v1566_v18 }
 0x4a3   : > { %3340 = vrcp.f32 %v1541_v13  ;;  %v1576_v26 = vpack.c.bf16 %v1568_v20, %v1568_v20 }
 0x4a4   : > { %3342 = vrcp.f32 %v1538_v14  ;;  %v1630_v33 = vunpack.c.l.b16 %v1574_v24 }
 0x4a5   : > { %v1655_v36 = vunpack.c.l.b16 %v1576_v26 }
 0x4a7   : > { %v3337_v21 = vpop.eup %3336 }
 0x4a8   : > { %v3339_v23 = vpop.eup %3338  ;;  %v1567_v25 = vmul.f32 %v3337_v21, %v3325_v60 }
 0x4a9   : > { %v1569_v27 = vmul.f32 %v3339_v23, %v3327_v61  ;;  %v1659_v28 = vpop.permute.xlu2 %1658  ;;  %v3341_v30 = vpop.eup %3340 }
 0x4aa   : > { %v1575_v29 = vpack.c.bf16 %v1567_v25, %v1567_v25  ;;  %1671 = vmatpush.bf16.msra.mxu0 %v1659_v28  ;;  %v3343_v35 = vpop.eup %3342  ;;  %v1565_v40 = vmul.f32 %v3341_v30, %v4271_v47 }
 0x4ab   : > { %v1577_v32 = vpack.c.bf16 %v1569_v27, %v1569_v27  ;;  %v1564_v43 = vmul.f32 %v3343_v35, %v4266_v38  ;;  %v3305_v27 = vld [vmem:[%s4731_s28] ss:$0 sm:$0xff] }
 0x4ac   : > { %v1631_v34 = vunpack.c.l.b16 %v1575_v29  ;;  %v1573_v45 = vpack.c.bf16 %v1565_v40, %v1565_v40 }
 0x4ad   : > { %v1656_v39 = vunpack.c.l.b16 %v1577_v32  ;;  %v1572_v46 = vpack.c.bf16 %v1564_v43, %v1564_v43 }
 0x4ae   : > { %v1632_v41 = vpack.c.b16 %v1631_v34, %v1630_v33  ;;  %v1606_v48 = vunpack.c.l.b16 %v1573_v45 }
 0x4af   : > { %v1657_v42 = vpack.c.b16 %v1656_v39, %v1655_v36  ;;  %v1605_v49 = vunpack.c.l.b16 %v1572_v46  ;;  %v3133_v39 = vld [vmem:[%s4161_s2 + $0x8] sm:$0xff] }
 0x4b0   : > { %3053 = vmatmul.msk.bf16.vlgmr.msrb.gmra.mxu3 %vm1481_vm11, %v1632_v41  ;;  %v3132_v41 = vld [vmem:[%s4161_s2] sm:$0xff]  ;;  %s4732_s2 = scalar_lea.vmem [#allocation7], %s4079_s12 }
 0x4b1   : > { %v1584_v44 = vpop.permute.xlu2 %1583  ;;  %3054 = vmatmul.msk.bf16.vlgmr.msra.gmra.mxu0 %vm1481_vm11, %v1657_v42  ;;  %v1607_v51 = vpack.c.b16 %v1606_v48, %v1605_v49 }
 0x4b2   : > { %1596 = vmatpush.bf16.msrb.mxu1 %v1584_v44 }
 0x4b6   : > { %1735 = vmatpush.bf16.msra.mxu1 %v3131_v8 }
 0x4b8   : > { %v1609_v50 = vpop.permute.xlu1 %1608 }
 0x4b9   : > { %1621 = vmatpush.bf16.msrb.mxu2 %v1609_v50 }
 0x4ba   : > { %1736 = vmatpush.bf16.msra.mxu1 %v3130_v9 }
 0x4bc   : > { %3052 = vmatmul.msk.bf16.vlgmr.msrb.gmra.mxu2 %vm1481_vm11, %v1607_v51 }
 0x4bd   : > { %1837 = vmatpush.bf16.msra.mxu2 %v3133_v39 }
 0x4be   : > { %v1532_v47 = vpop.xlane.xlu0 %1531 }
 0x4bf   : > { %3344 = vrcp.f32 %v1532_v47 }
 0x4c1   : > { %1838 = vmatpush.bf16.msra.mxu2 %v3132_v41 }
 0x4c5   : > { %v3345_v53 = vpop.eup %3344 }
 0x4c6   : > { %v1562_v38 = vmul.f32 %v3345_v53, %v4281_v37 }
 0x4c8   : > { %v1570_v55 = vpack.c.bf16 %v1562_v38, %v1562_v38 }
 0x4ca   : > { %v1580_v58 = vunpack.c.l.b16 %v1570_v55 }
 0x4e3   : > { %v1535_v52 = vpop.xlane.xlu1 %1534 }
 0x4e4   : > { %3346 = vrcp.f32 %v1535_v52  ;;  %v3308_v52 = vld [vmem:[%s4732_s2] ss:$0 sm:$0xff] }
 0x4ea   : > { %v3347_v54 = vpop.eup %3346 }
 0x4eb   : > { %v1563_v56 = vmul.f32 %v3347_v54, %v3331_v10 }
 0x4ed   : > { %v1571_v57 = vpack.c.bf16 %v1563_v56, %v1563_v56 }
 0x4ef   : > { %v1581_v59 = vunpack.c.l.b16 %v1571_v57 }
 0x4f1   : > { %v1582_v60 = vpack.c.b16 %v1581_v59, %v1580_v58 }
 0x4f3   : > { %3051 = vmatmul.msk.bf16.vlgmr.msrb.gmra.mxu1 %vm1481_vm11, %v1582_v60 }
 0x52e   : > { %v1673_v1 = vpop.f32.mrf.mxu0 }
 0x533   : > { %v1648_v62 = vpop.f32.mrf.mxu3 }
 0x536   : > { %v1675_v5 = vpop.f32.mrf.mxu0 }
 0x537   : > { %v3282_v6 = vpack.i.bf16 %v1675_v5, %v1673_v1 }
 0x53b   : > { %v1650_v3 = vpop.f32.mrf.mxu3 }
 0x53c   : > { %v3277_v37 = vpack.i.bf16 %v1650_v3, %v1648_v62 }
 0x53f   : > { %v1623_v61 = vpop.f32.mrf.mxu2 }
 0x547   : > { %v1625_v63 = vpop.f32.mrf.mxu2 }
 0x548   : > { %v3272_v0 = vpack.i.bf16 %v1625_v63, %v1623_v61 }
 0x54a   : > { %3273 = vrot.lane.b32.xlu2 %v3272_v0, %s3791_s20 }
 0x552   : > { %3278 = vrot.lane.b32.xlu2 %v3277_v37, %s3792_s18  ;;  %v1196_v37 = vld [vmem:[%s4133_s11] sm:$0xf]  ;;  %s4746_s11 = scalar_lea.vmem [#allocation9], %s4079_s12 }
 0x55a   : > { %3283 = vrot.lane.b32.xlu2 %v3282_v6, %s3793_s13  ;;  %v3306_v6 = vld [vmem:[%s4733_s17] ss:$0 sm:$0xff] }
 0x570   : > { %v1598_v11 = vpop.f32.mrf.mxu1 }
 0x578   : > { %v1600_v16 = vpop.f32.mrf.mxu1 }
 0x5a4   : > { %v3274_v10 = vpop.permute.xlu2 %3273 }
 0x5a5   : > { %v3276_v13 = vunpack.i.h.bf16 %v3274_v10  ;;  %v3275_v22 = vunpack.i.l.bf16 %v3274_v10 }
 0x5a7   : > { %v1702_v7 = vsel %vm1364_vm9, %v1598_v11, %v3275_v22  ;;  %v1703_v19 = vsel %vm1364_vm9, %v1600_v16, %v3276_v13  ;;  %v1845_v11 = vpack.c.bf16 %v1196_v37, %v1196_v37  ;;  %v3307_v13 = vld [vmem:[%s4734_s19] ss:$0 sm:$0xff] }
 0x5ac   : > { %v3279_v31 = vpop.permute.xlu2 %3278 }
 0x5ad   : > { %v3281_v14 = vunpack.i.h.bf16 %v3279_v31  ;;  %v3280_v15 = vunpack.i.l.bf16 %v3279_v31 }
 0x5af   : > { %v1704_v21 = vsel %vm1481_vm11, %v1702_v7, %v3280_v15  ;;  %v1705_v23 = vsel %vm1481_vm11, %v1703_v19, %v3281_v14 }
 0x5b4   : > { %v3284_v17 = vpop.permute.xlu2 %3283 }
 0x5b5   : > { %v3286_v18 = vunpack.i.h.bf16 %v3284_v17  ;;  %v3285_v20 = vunpack.i.l.bf16 %v3284_v17 }
 0x5b7   : > { %v1707_v24 = vsel %vm4667_vm13, %v1704_v21, %v3285_v20  ;;  %v1708_v25 = vsel %vm4667_vm13, %v1705_v23, %v3286_v18 }
 0x5b8   : > { %v1713_v26 = vpack.c.bf16 %v1708_v25, %v1707_v24 }
 0x5ba   : > { %3063 = vmatmul.msk.bf16.vlgmr.msra.gmra.mxu1 %vm4666_vm1, %v1713_v26 }
 0x637   : > { %v1738_v28 = vpop.f32.mrf.mxu1 }
 0x638   : > { %v1743_v29 = vadd.f32 %v1738_v28, %v4188_v2 }
 0x63a   : > { %v4310_v30 = vadd.f32 %v3305_v27, %v1743_v29 }
 0x63c   : > { %v1753_v32 = vsel %vm4666_vm1, %v4310_v30, 0.0 }
 0x63d   : > { %1754 = vadd.xlane.f32.xlu2 %v1753_v32 }
 0x63f   : > { %v1740_v33 = vpop.f32.mrf.mxu1 }
 0x640   : > { %v1744_v34 = vadd.f32 %v1740_v33, %v4193_v4 }
 0x642   : > { %v4315_v35 = vadd.f32 %v3305_v27, %v1744_v34 }
 0x644   : > { %v1756_v36 = vsel %vm4666_vm1, %v4315_v35, 0.0 }
 0x645   : > { %1757 = vadd.xlane.f32.xlu0 %v1756_v36 }
 0x6b0   : > { %v1755_v40 = vpop.xlane.xlu2 %1754 }
 0x6b1   : > { %v1759_v2 = vmul.f32 %v1755_v40, %v4197_v12 }
 0x6b3   : > { %v1761_v42 = vsub.f32 %v4310_v30, %v1759_v2 }
 0x6b5   : > { %v1763_v43 = vmul.f32 %v1761_v42, %v1761_v42 }
 0x6b7   : > { %v1765_v44 = vsel %vm4666_vm1, %v1763_v43, 0.0 }
 0x6b8   : > { %1766 = vadd.xlane.f32.xlu1 %v1765_v44  ;;  %v1758_v4 = vpop.xlane.xlu0 %1757 }
 0x6b9   : > { %v1760_v45 = vmul.f32 %v1758_v4, %v4197_v12 }
 0x6bb   : > { %v1762_v46 = vsub.f32 %v4315_v35, %v1760_v45 }
 0x6bd   : > { %v1764_v48 = vmul.f32 %v1762_v46, %v1762_v46 }
 0x6bf   : > { %v1768_v49 = vsel %vm4666_vm1, %v1764_v48, 0.0 }
 0x6c0   : > { %1769 = vadd.xlane.f32.xlu0 %v1768_v49 }
 0x6d1   : > { %1848 = vrot.lane.b32.xlu1 %v3133_v39, %s3788_s1 }
 0x6d4   : > { %1846 = vrot.lane.b32.xlu0 %v3132_v41, %s3788_s1 }
 0x6d9   : > { %1852 = vrot.lane.b32.xlu1 %v3308_v52, %s3788_s1 }
 0x72b   : > { %v1767_v50 = vpop.xlane.xlu1 %1766 }
 0x72c   : > { %v1771_v51 = vmul.f32 %v1767_v50, %v4197_v12 }
 0x72e   : > { %v1773_v47 = vadd.f32 1e-05, %v1771_v51 }
 0x730   : > { %3348 = vrsqrt.f32 %v1773_v47  ;;  %vm1781_vm15 = vweird.f32 %v1773_v47 }
 0x733   : > { %v1770_v53 = vpop.xlane.xlu0 %1769 }
 0x734   : > { %v1772_v38 = vmul.f32 %v1770_v53, %v4197_v12 }
 0x736   : > { %v3349_v54 = vpop.eup %3348  ;;  %v1774_v55 = vadd.f32 1e-05, %v1772_v38 }
 0x737   : > { %v1776_v56 = vmul.f32 %v3349_v54, %v1773_v47  ;;  %vm1782_vm14 = vweird.f32 %v3349_v54 }
 0x738   : > { %3350 = vrsqrt.f32 %v1774_v55  ;;  %vm1783_vm0 = vmor %vm1781_vm15, %vm1782_vm14  ;;  %vm1791_vm3 = vweird.f32 %v1774_v55 }
 0x739   : > { %v1777_v57 = vmul.f32 %v3349_v54, %v1776_v56 }
 0x73b   : > { %v1778_v58 = vmul.f32 0.5, %v1777_v57 }
 0x73d   : > { %v1779_v59 = vsub.f32 1.5, %v1778_v58 }
 0x73e   : > { %v3351_v60 = vpop.eup %3350 }
 0x73f   : > { %v1780_v61 = vmul.f32 %v3349_v54, %v1779_v59  ;;  %v1786_v62 = vmul.f32 %v3351_v60, %v1774_v55  ;;  %vm1792_vm2 = vweird.f32 %v3351_v60 }
 0x740   : > { %vm1793_vm4 = vmor %vm1791_vm3, %vm1792_vm2 }
 0x741   : > { %v1787_v63 = vmul.f32 %v3351_v60, %v1786_v62  ;;  %v1784_v0 = vsel %vm1783_vm0, %v3349_v54, %v1780_v61 }
 0x742   : > { %v1795_v8 = vmul.f32 %v1784_v0, %v1761_v42 }
 0x743   : > { %v1788_v1 = vmul.f32 0.5, %v1787_v63  ;;  %v1849_v3 = vpop.permute.xlu1 %1848 }
 0x744   : > { %1864 = vmatpush.bf16.msra.mxu3 %v1849_v3  ;;  %v1800_v22 = vmul.f32 %v3306_v6, %v1795_v8 }
 0x745   : > { %v1789_v5 = vsub.f32 1.5, %v1788_v1 }
 0x746   : > { %v1847_v9 = vpop.permute.xlu0 %1846  ;;  %v1805_v16 = vadd.f32 %v3307_v13, %v1800_v22 }
 0x747   : > { %v1790_v10 = vmul.f32 %v3351_v60, %v1789_v5 }
 0x748   : > { %1865 = vmatpush.bf16.msra.mxu3 %v1847_v9 }
 0x749   : > { %v1794_v31 = vsel %vm1793_vm4, %v3351_v60, %v1790_v10 }
 0x74a   : > { %v1796_v14 = vmul.f32 %v1794_v31, %v1762_v46 }
 0x74b   : > { %3073 = vmatmul.msk.bf16.vlgmr.msra.gmra.mxu3 %vm4666_vm1, %v1845_v11  ;;  %v1853_v19 = vpop.permute.xlu1 %1852 }
 0x74c   : > { %v1801_v15 = vmul.f32 %v3306_v6, %v1796_v14 }
 0x74e   : > { %v1806_v17 = vadd.f32 %v3307_v13, %v1801_v15 }
 0x750   : > { %v1812_v7 = vpack.c.bf16 %v1806_v17, %v1805_v16 }
 0x752   : > { %3072 = vmatmul.msk.bf16.vlgmr.msra.gmra.mxu2 %vm4666_vm1, %v1812_v7 }
 0x7ce   : > { %v1867_v18 = vpop.f32.mrf.mxu3 }
 0x7cf   : > { %v1868_v20 = vadd.f32 %v1867_v18, %v1853_v19 }
 0x7d1   : > { %1914 = vrot.lane.b32.xlu2 %v1868_v20, %s3787_s14  ;;  %1911 = vrot.lane.b32.xlu0 %v1868_v20, %s3785_s9  ;;  %v4343_v21 = vpack.c.bf16 %v1868_v20, %v1868_v20 }
 0x7d3   : > { %v1930_v23 = vsel %vm1364_vm9, %v4343_v21, 0 }
 0x7d4   : > { %1939 = vmatpush.bf16.xpose.msrb.mxu0 %v1930_v23 }
 0x7d5   : > { %v1840_v24 = vpop.f32.mrf.mxu2 }
 0x7d6   : > { %v1841_v25 = vadd.f32 %v3308_v52, %v1840_v24  ;;  %v1869_v26 = vpop.f32.mrf.mxu3 }
 0x7d8   : > { %1879 = vrot.lane.b32.xlu1 %v1841_v25, %s3785_s9  ;;  %v1891_v27 = vmul.f32 0.35355338, %v1841_v25 }
 0x7da   : > { %v1899_v32 = vpack.c.bf16 %v1891_v27, %v1891_v27 }
 0x7dc   : > { %v1923_v36 = vunpack.c.l.b16 %v1899_v32 }
 0x7dd   : > { %v1842_v28 = vpop.f32.mrf.mxu2 }
 0x7de   : > { %v1843_v29 = vadd.f32 %v3308_v52, %v1842_v28 }
 0x7e0   : > { %v1892_v33 = vmul.f32 0.35355338, %v1843_v29  ;;  %1885 = vrot.lane.b32.xlu1 %v1841_v25, %s3787_s14  ;;  %1875 = vrot.lane.b32.xlu2 %v1843_v29, %s3786_s21 }
 0x7e1   : > { %1881 = vrot.lane.b32.xlu0 %v1843_v29, %s3785_s9 }
 0x7e2   : > { %v1900_v34 = vpack.c.bf16 %v1892_v33, %v1892_v33 }
 0x7e4   : > { %v1924_v39 = vunpack.c.l.b16 %v1900_v34 }
 0x7e6   : > { %v1925_v40 = vpack.c.b16 %v1924_v39, %v1923_v36 }
 0x7e8   : > { %1908 = vrot.lane.b32.xlu1 %v1868_v20, %s3786_s21  ;;  %3074 = vmatmul.msk.bf16.vlgmr.msrb.gmra.mxu0 %vm1364_vm9, %v1925_v40 }
 0x7e9   : > { %1887 = vrot.lane.b32.xlu0 %v1843_v29, %s3787_s14 }
 0x7f1   : > { %1873 = vrot.lane.b32.xlu0 %v1841_v25, %s3786_s21 }
 0x82b   : > { %v1915_v2 = vpop.permute.xlu2 %1914 }
 0x82c   : > { %v4355_v41 = vpack.c.bf16 %v1915_v2, %v1915_v2 }
 0x82e   : > { %v2005_v42 = vsel %vm1364_vm9, %v4355_v41, 0 }
 0x82f   : > { %2014 = vmatpush.bf16.xpose.msrb.mxu3 %v2005_v42 }
 0x83a   : > { %v1876_v60 = vpop.permute.xlu2 %1875 }
 0x83b   : > { %v1894_v63 = vmul.f32 0.35355338, %v1876_v60 }
 0x83d   : > { %v1902_v5 = vpack.c.bf16 %v1894_v63, %v1894_v63 }
 0x83f   : > { %v1949_v9 = vunpack.c.l.b16 %v1902_v5 }
 0x843   : > { %v1912_v43 = vpop.permute.xlu0 %1911 }
 0x844   : > { %v4359_v44 = vpack.c.bf16 %v1912_v43, %v1912_v43 }
 0x846   : > { %v1980_v4 = vsel %vm1364_vm9, %v4359_v44, 0 }
 0x847   : > { %1989 = vmatpush.bf16.xpose.msrb.mxu2 %v1980_v4 }
 0x84a   : > { %v1880_v45 = vpop.permute.xlu1 %1879 }
 0x84b   : > { %v1895_v46 = vmul.f32 0.35355338, %v1880_v45 }
 0x84d   : > { %v1903_v50 = vpack.c.bf16 %v1895_v46, %v1895_v46 }
 0x84f   : > { %v1973_v52 = vunpack.c.l.b16 %v1903_v50 }
 0x852   : > { %v1886_v48 = vpop.permute.xlu1 %1885 }
 0x853   : > { %v1882_v49 = vpop.permute.xlu0 %1881  ;;  %v1897_v53 = vmul.f32 0.35355338, %v1886_v48 }
 0x854   : > { %v1896_v51 = vmul.f32 0.35355338, %v1882_v49 }
 0x855   : > { %v1905_v58 = vpack.c.bf16 %v1897_v53, %v1897_v53 }
 0x856   : > { %v1904_v47 = vpack.c.bf16 %v1896_v51, %v1896_v51 }
 0x857   : > { %v1998_v0 = vunpack.c.l.b16 %v1905_v58 }
 0x858   : > { %v1974_v38 = vunpack.c.l.b16 %v1904_v47 }
 0x85a   : > { %v1975_v54 = vpack.c.b16 %v1974_v38, %v1973_v52  ;;  %v1909_v55 = vpop.permute.xlu1 %1908 }
 0x85b   : > { %v4363_v56 = vpack.c.bf16 %v1909_v55, %v1909_v55  ;;  %v1888_v57 = vpop.permute.xlu0 %1887 }
 0x85c   : > { %v1898_v59 = vmul.f32 0.35355338, %v1888_v57  ;;  %3076 = vmatmul.msk.bf16.vlgmr.msrb.gmra.mxu2 %vm1364_vm9, %v1975_v54 }
 0x85d   : > { %v1955_v61 = vsel %vm1364_vm9, %v4363_v56, 0  ;;  %v2259_v63 = vunpack.c.l.b16 %v4363_v56 }
 0x85e   : > { %v1906_v62 = vpack.c.bf16 %v1898_v59, %v1898_v59  ;;  %1964 = vmatpush.bf16.xpose.msrb.mxu1 %v1955_v61 }
 0x860   : > { %v1999_v1 = vunpack.c.l.b16 %v1906_v62 }
 0x862   : > { %v2000_v3 = vpack.c.b16 %v1999_v1, %v1998_v0  ;;  %v2289_v0 = vunpack.c.l.b16 %v4359_v44  ;;  %v2260_v1 = vpack.c.b16 %v2259_v63, %v2259_v63 }
 0x863   : > { %v1874_v37 = vpop.permute.xlu0 %1873 }
 0x864   : > { %v1893_v6 = vmul.f32 0.35355338, %v1874_v37  ;;  %3077 = vmatmul.msk.bf16.vlgmr.msrb.gmra.mxu3 %vm1364_vm9, %v2000_v3  ;;  %v2290_v3 = vpack.c.b16 %v2289_v0, %v2289_v0  ;;  %v2319_v37 = vunpack.c.l.b16 %v4355_v41 }
 0x865   : > { %v4373_v7 = vpop.f32.mrf.mxu0 }
 0x866   : > { %v1901_v8 = vpack.c.bf16 %v1893_v6, %v1893_v6  ;;  %v2022_v26 = vsel %vm2021_vm5, %v4373_v7, -inf  ;;  %v2320_v5 = vpack.c.b16 %v2319_v37, %v2319_v37  ;;  %v2228_v6 = vunpack.c.l.b16 %v4343_v21 }
 0x868   : > { %v1948_v10 = vunpack.c.l.b16 %v1901_v8  ;;  %v2229_v8 = vpack.c.b16 %v2228_v6, %v2228_v6 }
 0x86a   : > { %v1950_v11 = vpack.c.b16 %v1949_v9, %v1948_v10 }
 0x86c   : > { %3075 = vmatmul.msk.bf16.vlgmr.msrb.gmra.mxu1 %vm1364_vm9, %v1950_v11 }
 0x86d   : > { %v4378_v25 = vpop.f32.mrf.mxu0 }
 0x86e   : > { %v2025_v27 = vsel %vm2021_vm5, %v4378_v25, -inf }
 0x8df   : > { %v1991_v31 = vpop.f32.mrf.mxu2 }
 0x8e0   : > { %v2034_v13 = vsel %vm2021_vm5, %v1991_v31, -inf }
 0x8e1   : > { %2035 = vmax.xlane.f32.xlu1 %v2034_v13 }
 0x8e7   : > { %v1993_v22 = vpop.f32.mrf.mxu2  ;;  %v2016_v14 = vpop.f32.mrf.mxu3 }
 0x8e8   : > { %v2037_v15 = vsel %vm2021_vm5, %v1993_v22, -inf  ;;  %v2040_v16 = vsel %vm2021_vm5, %v2016_v14, -inf }
 0x8e9   : > { %2038 = vmax.xlane.f32.xlu0 %v2037_v15  ;;  %2041 = vmax.xlane.f32.xlu2 %v2040_v16  ;;  %v1966_v17 = vpop.f32.mrf.mxu1 }
 0x8ea   : > { %v2028_v20 = vsel %vm2021_vm5, %v1966_v17, -inf }
 0x8ef   : > { %v2018_v19 = vpop.f32.mrf.mxu3 }
 0x8f0   : > { %v2043_v18 = vsel %vm2021_vm5, %v2018_v19, -inf }
 0x8f1   : > { %2044 = vmax.xlane.f32.xlu1 %v2043_v18  ;;  %2029 = vmax.xlane.f32.xlu0 %v2028_v20  ;;  %v1968_v23 = vpop.f32.mrf.mxu1 }
 0x8f2   : > { %v2031_v24 = vsel %vm2021_vm5, %v1968_v23, -inf }
 0x8f3   : > { %2032 = vmax.xlane.f32.xlu2 %v2031_v24 }
 0x8f9   : > { %2023 = vmax.xlane.f32.xlu1 %v2022_v26  ;;  %2026 = vmax.xlane.f32.xlu0 %v2025_v27 }
 0x954   : > { %v2036_v28 = vpop.xlane.xlu1 %2035 }
 0x955   : > { %v2050_v29 = vsub.f32 %v1991_v31, %v2036_v28 }
 0x957   : > { %v2062_v32 = vmul.f32 1.442695, %v2050_v29 }
 0x959   : > { %3352 = vpow2.f32 %v2062_v32 }
 0x95c   : > { %v2042_v33 = vpop.xlane.xlu2 %2041  ;;  %v2039_v34 = vpop.xlane.xlu0 %2038 }
 0x95d   : > { %v2052_v36 = vsub.f32 %v2016_v14, %v2042_v33  ;;  %v2051_v47 = vsub.f32 %v1993_v22, %v2039_v34 }
 0x95f   : > { %v4384_v39 = vpop.eup %3352  ;;  %v2066_v40 = vmul.f32 1.442695, %v2052_v36  ;;  %v2064_v38 = vmul.f32 1.442695, %v2051_v47 }
 0x960   : > { %v2082_v2 = vsel %vm2021_vm5, %v4384_v39, 0.0 }
 0x961   : > { %3354 = vpow2.f32 %v2066_v40  ;;  %2083 = vadd.xlane.f32.xlu2 %v2082_v2 }
 0x964   : > { %v2045_v42 = vpop.xlane.xlu1 %2044  ;;  %v2030_v43 = vpop.xlane.xlu0 %2029 }
 0x965   : > { %v2053_v4 = vsub.f32 %v2018_v19, %v2045_v42  ;;  %v2048_v45 = vsub.f32 %v1966_v17, %v2030_v43 }
 0x966   : > { %v2033_v46 = vpop.xlane.xlu2 %2032 }
 0x967   : > { %v4388_v48 = vpop.eup %3354  ;;  %v2068_v49 = vmul.f32 1.442695, %v2053_v4  ;;  %v2058_v50 = vmul.f32 1.442695, %v2048_v45  ;;  %v2049_v51 = vsub.f32 %v1968_v23, %v2033_v46 }
 0x968   : > { %v2088_v52 = vsel %vm2021_vm5, %v4388_v48, 0.0 }
 0x969   : > { %3356 = vpow2.f32 %v2068_v49  ;;  %v2060_v53 = vmul.f32 1.442695, %v2049_v51  ;;  %2089 = vadd.xlane.f32.xlu0 %v2088_v52 }
 0x96a   : > { %3358 = vpow2.f32 %v2058_v50 }
 0x96b   : > { %3360 = vpow2.f32 %v2060_v53 }
 0x96c   : > { %3362 = vpow2.f32 %v2064_v38  ;;  %v2027_v9 = vpop.xlane.xlu0 %2026  ;;  %v2024_v56 = vpop.xlane.xlu1 %2023 }
 0x96d   : > { %v2047_v44 = vsub.f32 %v4378_v25, %v2027_v9  ;;  %v2046_v10 = vsub.f32 %v4373_v7, %v2024_v56 }
 0x96f   : > { %v4392_v54 = vpop.eup %3356  ;;  %v2056_v11 = vmul.f32 1.442695, %v2047_v44  ;;  %v2054_v31 = vmul.f32 1.442695, %v2046_v10 }
 0x970   : > { %v4394_v55 = vpop.eup %3358  ;;  %v2091_v57 = vsel %vm2021_vm5, %v4392_v54, 0.0 }
 0x971   : > { %v4398_v58 = vpop.eup %3360  ;;  %2092 = vadd.xlane.f32.xlu2 %v2091_v57  ;;  %v2076_v59 = vsel %vm2021_vm5, %v4394_v55, 0.0  ;;  %3364 = vpow2.f32 %v2056_v11 }
 0x972   : > { %2077 = vadd.xlane.f32.xlu1 %v2076_v59  ;;  %v2079_v60 = vsel %vm2021_vm5, %v4398_v58, 0.0  ;;  %v4404_v61 = vpop.eup %3362  ;;  %3366 = vpow2.f32 %v2054_v31 }
 0x973   : > { %2080 = vadd.xlane.f32.xlu0 %v2079_v60  ;;  %v2085_v62 = vsel %vm2021_vm5, %v4404_v61, 0.0 }
 0x977   : > { %v4418_v13 = vpop.eup %3364 }
 0x978   : > { %v4420_v41 = vpop.eup %3366  ;;  %v2073_v21 = vsel %vm2021_vm5, %v4418_v13, 0.0 }
 0x979   : > { %v2070_v22 = vsel %vm2021_vm5, %v4420_v41, 0.0 }
 0x97a   : > { %2086 = vadd.xlane.f32.xlu1 %v2085_v62 }
 0x987   : > { %2261 = vrot.lane.b32.xlu0 %v2260_v1, %s3788_s1 }
 0x989   : > { %2291 = vrot.lane.b32.xlu2 %v2290_v3, %s3788_s1 }
 0x993   : > { %2321 = vrot.lane.b32.xlu1 %v2320_v5, %s3788_s1 }
 0x99b   : > { %2230 = vrot.lane.b32.xlu1 %v2229_v8, %s3788_s1 }
 0x9b1   : > { %2074 = vadd.xlane.f32.xlu0 %v2073_v21 }
 0x9b2   : > { %2071 = vadd.xlane.f32.xlu2 %v2070_v22 }
 0x9d4   : > { %v2084_v14 = vpop.xlane.xlu2 %2083 }
 0x9d5   : > { %3368 = vrcp.f32 %v2084_v14  ;;  %v2163_v26 = vand.u32 2147483647, %v2084_v14  ;;  %v2165_v28 = vand.u32 2147483648, %v2084_v14  ;;  %vm2159_vm7 = vweird.f32 %v2084_v14 }
 0x9d7   : > { %vm2164_vm12 = vcmp.eq.f32.partialorder %v2163_v26, 8.507059e+37  ;;  %v2166_v2 = vor.u32 1.1754944e-38, %v2165_v28 }
 0x9db   : > { %v3369_v15 = vpop.eup %3368 }
 0x9dc   : > { %v2155_v16 = vmul.f32 %v3369_v15, %v2084_v14  ;;  %v4426_v17 = vpop.xlane.xlu0 %2089  ;;  %vm2160_vm6 = vweird.f32 %v3369_v15 }
 0x9dd   : > { %3370 = vrcp.f32 %v4426_v17  ;;  %v2195_v29 = vand.u32 2147483648, %v4426_v17  ;;  %vm4440_vm8 = vmor %vm2159_vm7, %vm2160_vm6  ;;  %vm2189_vm14 = vweird.f32 %v4426_v17  ;;  %v2193_v42 = vand.u32 2147483647, %v4426_v17 }
 0x9de   : > { %v2156_v7 = vsub.f32 1.0, %v2155_v16 }
 0x9df   : > { %v4453_v45 = vor.u32 1.1754944e-38, %v2195_v29 }
 0x9e0   : > { %v2157_v19 = vmul.f32 %v3369_v15, %v2156_v7 }
 0x9e2   : > { %v2158_v25 = vadd.f32 %v3369_v15, %v2157_v19 }
 0x9e3   : > { %v4429_v18 = vpop.eup %3370 }
 0x9e4   : > { %v4431_v20 = vpop.xlane.xlu2 %2092  ;;  %v2185_v27 = vmul.f32 %v4429_v18, %v4426_v17  ;;  %v2162_v34 = vsel %vm4440_vm8, %v3369_v15, %v2158_v25  ;;  %vm2190_vm15 = vweird.f32 %v4429_v18 }
 0x9e5   : > { %3372 = vrcp.f32 %v4431_v20  ;;  %v2078_v23 = vpop.xlane.xlu1 %2077  ;;  %v2167_v47 = vsel %vm2164_vm12, %v2166_v2, %v2162_v34  ;;  %vm2204_vm0 = vweird.f32 %v4431_v20  ;;  %v2208_v38 = vand.u32 2147483647, %v4431_v20 }
 0x9e6   : > { %3374 = vrcp.f32 %v2078_v23  ;;  %v4434_v24 = vpop.xlane.xlu0 %2080  ;;  %v2186_v36 = vsub.f32 1.0, %v2185_v27  ;;  %v2133_v62 = vand.u32 2147483647, %v2078_v23  ;;  %v2135_v63 = vand.u32 2147483648, %v2078_v23 }
 0x9e7   : > { %3376 = vrcp.f32 %v4434_v24  ;;  %v2210_v0 = vand.u32 2147483648, %v4431_v20  ;;  %vm2129_vm4 = vweird.f32 %v2078_v23  ;;  %v2148_v5 = vand.u32 2147483647, %v4434_v24 }
 0x9e8   : > { %v2187_v53 = vmul.f32 %v4429_v18, %v2186_v36  ;;  %v2150_v6 = vand.u32 2147483648, %v4434_v24  ;;  %vm4476_vm8 = vcmp.eq.f32.partialorder %v2208_v38, 8.507059e+37  ;;  %vm2134_vm1 = vcmp.eq.f32.partialorder %v2133_v62, 8.507059e+37 }
 0x9e9   : > { %v2136_v31 = vor.u32 1.1754944e-38, %v2135_v63  ;;  %vm2144_vm13 = vweird.f32 %v4434_v24  ;;  %v2211_v7 = vor.u32 1.1754944e-38, %v2210_v0  ;;  %v4509_v36 = vmul.f32 %v4384_v39, %v2167_v47 }
 0x9ea   : > { %v2188_v8 = vadd.f32 %v4429_v18, %v2187_v53 }
 0x9eb   : > { %v4444_v33 = vpop.eup %3372 }
 0x9ec   : > { %v3375_v40 = vpop.eup %3374  ;;  %v2200_v43 = vmul.f32 %v4444_v33, %v4431_v20  ;;  %v2292_v4 = vpop.permute.xlu2 %2291  ;;  %vm2205_vm2 = vweird.f32 %v4444_v33  ;;  %v2151_v20 = vor.u32 1.1754944e-38, %v2150_v6 }
 0x9ed   : > { %v2125_v46 = vmul.f32 %v3375_v40, %v2078_v23  ;;  %v2297_v49 = vsel %vm2235_vm10, %v2292_v4, 0  ;;  %v4456_v50 = vpop.xlane.xlu1 %2086  ;;  %v3377_v51 = vpop.eup %3376  ;;  %vm2130_vm3 = vweird.f32 %v3375_v40  ;;  %vm4472_vm6 = vmor %vm2204_vm0, %vm2205_vm2 }
 0x9ee   : > { %v2201_v52 = vsub.f32 1.0, %v2200_v43  ;;  %3378 = vrcp.f32 %v4456_v50  ;;  %2306 = vmatpush.bf16.msra.mxu2 %v2297_v49  ;;  %v2140_v59 = vmul.f32 %v3377_v51, %v4434_v24  ;;  %vm2145_vm7 = vweird.f32 %v3377_v51  ;;  %vm2131_vm12 = vmor %vm2129_vm4, %vm2130_vm3 }
 0x9ef   : > { %v2126_v57 = vsub.f32 1.0, %v2125_v46  ;;  %vm4485_vm0 = vmor %vm2189_vm14, %vm2190_vm15  ;;  %vm2149_vm3 = vcmp.eq.f32.partialorder %v2148_v5, 8.507059e+37  ;;  %v2178_v29 = vand.u32 2147483647, %v4456_v50  ;;  %v2180_v32 = vand.u32 2147483648, %v4456_v50 }
 0x9f0   : > { %v2202_v60 = vmul.f32 %v4444_v33, %v2201_v52  ;;  %v2141_v3 = vsub.f32 1.0, %v2140_v59  ;;  %vm2146_vm2 = vmor %vm2144_vm13, %vm2145_vm7  ;;  %v2192_v23 = vsel %vm4485_vm0, %v4429_v18, %v2188_v8  ;;  %vm2194_vm13 = vcmp.eq.f32.partialorder %v2193_v42, 8.507059e+37 }
 0x9f1   : > { %v2127_v1 = vmul.f32 %v3375_v40, %v2126_v57  ;;  %v2197_v2 = vsel %vm2194_vm13, %v4453_v45, %v2192_v23  ;;  %vm2174_vm14 = vweird.f32 %v4456_v50  ;;  %v2181_v39 = vor.u32 1.1754944e-38, %v2180_v32 }
 0x9f2   : > { %v2203_v37 = vadd.f32 %v4444_v33, %v2202_v60  ;;  %v2142_v44 = vmul.f32 %v3377_v51, %v2141_v3  ;;  %vm2179_vm4 = vcmp.eq.f32.partialorder %v2178_v29, 8.507059e+37  ;;  %v4522_v42 = vmul.f32 %v4388_v48, %v2197_v2 }
 0x9f3   : > { %v2128_v56 = vadd.f32 %v3375_v40, %v2127_v1 }
 0x9f4   : > { %v3379_v10 = vpop.eup %3378  ;;  %v2207_v22 = vsel %vm4472_vm6, %v4444_v33, %v2203_v37  ;;  %v2143_v15 = vadd.f32 %v3377_v51, %v2142_v44  ;;  %v2220_v48 = vpack.c.bf16 %v4522_v42, %v4522_v42 }
 0x9f5   : > { %v2132_v14 = vsel %vm2131_vm12, %v3375_v40, %v2128_v56  ;;  %v2170_v16 = vmul.f32 %v3379_v10, %v4456_v50  ;;  %v2212_v27 = vsel %vm4476_vm8, %v2211_v7, %v2207_v22 }
 0x9f6   : > { %v2137_v19 = vsel %vm2134_vm1, %v2136_v31, %v2132_v14  ;;  %v2147_v25 = vsel %vm2146_vm2, %v3377_v51, %v2143_v15  ;;  %vm2175_vm1 = vweird.f32 %v3379_v10  ;;  %v2218_v51 = vpack.c.bf16 %v4509_v36, %v4509_v36 }
 0x9f7   : > { %v4497_v24 = vmul.f32 %v4394_v55, %v2137_v19  ;;  %v2171_v26 = vsub.f32 1.0, %v2170_v16  ;;  %v2152_v28 = vsel %vm2149_vm3, %v2151_v20, %v2147_v25  ;;  %vm2176_vm15 = vmor %vm2174_vm14, %vm2175_vm1  ;;  %v2315_v62 = vunpack.c.l.b16 %v2220_v48 }
 0x9f8   : > { %v4506_v34 = vmul.f32 %v4398_v58, %v2152_v28  ;;  %v4519_v58 = vmul.f32 %v4392_v54, %v2212_v27  ;;  %v2285_v53 = vunpack.c.l.b16 %v2218_v51  ;;  %vm4743_vm1 = vcmask 195584  }
 0x9f9   : > { %v2216_v33 = vpack.c.bf16 %v4497_v24, %v4497_v24  ;;  %v2172_v18 = vmul.f32 %v3379_v10, %v2171_v26  ;;  %v2262_v55 = vpop.permute.xlu0 %2261  ;;  %vm4744_vm13 = vmmov %vm4743_vm1  ;;  %vm4745_vm14 = vcmask 261120  }
 0x9fa   : > { %v2267_v40 = vsel %vm2235_vm10, %v2262_v55, 0  ;;  %v2217_v43 = vpack.c.bf16 %v4506_v34, %v4506_v34  ;;  %v2221_v54 = vpack.c.bf16 %v4519_v58, %v4519_v58 }
 0x9fb   : > { %v2173_v4 = vadd.f32 %v3379_v10, %v2172_v18  ;;  %2276 = vmatpush.bf16.msra.mxu1 %v2267_v40  ;;  %v2255_v46 = vunpack.c.l.b16 %v2216_v33 }
 0x9fc   : > { %v2256_v49 = vunpack.c.l.b16 %v2217_v43  ;;  %v2316_v57 = vunpack.c.l.b16 %v2221_v54 }
 0x9fd   : > { %v2177_v17 = vsel %vm2176_vm15, %v3379_v10, %v2173_v4 }
 0x9fe   : > { %v2182_v45 = vsel %vm2179_vm4, %v2181_v39, %v2177_v17  ;;  %v2257_v50 = vpack.c.b16 %v2256_v49, %v2255_v46  ;;  %v2317_v63 = vpack.c.b16 %v2316_v57, %v2315_v62  ;;  %v3135_v17 = vld [vmem:[%s4166_s15 + $0x8] sm:$0xff] }
 0x9ff   : > { %v4527_v47 = vmul.f32 %v4404_v61, %v2182_v45  ;;  %v3134_v45 = vld [vmem:[%s4166_s15] sm:$0xff] }
 0xa00   : > { %3079 = vmatmul.msk.bf16.vlgmr.msra.gmra.mxu1 %vm2021_vm5, %v2257_v50 }
 0xa01   : > { %v2219_v52 = vpack.c.bf16 %v4527_v47, %v4527_v47 }
 0xa03   : > { %v2286_v38 = vunpack.c.l.b16 %v2219_v52 }
 0xa05   : > { %v2322_v59 = vpop.permute.xlu1 %2321  ;;  %v2287_v60 = vpack.c.b16 %v2286_v38, %v2285_v53 }
 0xa06   : > { %v2327_v61 = vsel %vm2235_vm10, %v2322_v59, 0 }
 0xa07   : > { %3080 = vmatmul.msk.bf16.vlgmr.msra.gmra.mxu2 %vm2021_vm5, %v2287_v60  ;;  %2336 = vmatpush.bf16.msra.mxu3 %v2327_v61 }
 0xa0a   : > { %3081 = vmatmul.msk.bf16.vlgmr.msra.gmra.mxu3 %vm2021_vm5, %v2317_v63 }
 0xa0d   : > { %v2231_v0 = vpop.permute.xlu1 %2230 }
 0xa0e   : > { %v2237_v1 = vsel %vm2235_vm10, %v2231_v0, 0 }
 0xa0f   : > { %2246 = vmatpush.bf16.msra.mxu0 %v2237_v1 }
 0xa13   : > { %2399 = vmatpush.bf16.msrb.mxu0 %v3135_v17 }
 0xa17   : > { %2400 = vmatpush.bf16.msrb.mxu0 %v3134_v45 }
 0xa24   : > { %v2075_v3 = vpop.xlane.xlu0 %2074 }
 0xa25   : > { %3380 = vrcp.f32 %v2075_v3  ;;  %v2072_v37 = vpop.xlane.xlu2 %2071  ;;  %v2120_v44 = vand.u32 2147483648, %v2075_v3  ;;  %v2118_v31 = vand.u32 2147483647, %v2075_v3  ;;  %vm2114_vm10 = vweird.f32 %v2075_v3 }
 0xa26   : > { %3382 = vrcp.f32 %v2072_v37  ;;  %v2105_v21 = vand.u32 2147483648, %v2072_v37  ;;  %v2103_v14 = vand.u32 2147483647, %v2072_v37  ;;  %vm2099_vm12 = vweird.f32 %v2072_v37 }
 0xa27   : > { %v2121_v16 = vor.u32 1.1754944e-38, %v2120_v44  ;;  %vm2119_vm0 = vcmp.eq.f32.partialorder %v2118_v31, 8.507059e+37 }
 0xa28   : > { %v2106_v20 = vor.u32 1.1754944e-38, %v2105_v21  ;;  %vm2104_vm3 = vcmp.eq.f32.partialorder %v2103_v14, 8.507059e+37 }
 0xa2b   : > { %v3381_v5 = vpop.eup %3380 }
 0xa2c   : > { %v3383_v6 = vpop.eup %3382  ;;  %v2110_v8 = vmul.f32 %v3381_v5, %v2075_v3  ;;  %vm2115_vm6 = vweird.f32 %v3381_v5 }
 0xa2d   : > { %v2095_v9 = vmul.f32 %v3383_v6, %v2072_v37  ;;  %vm2100_vm7 = vweird.f32 %v3383_v6  ;;  %vm2116_vm8 = vmor %vm2114_vm10, %vm2115_vm6 }
 0xa2e   : > { %v2111_v56 = vsub.f32 1.0, %v2110_v8  ;;  %vm2101_vm2 = vmor %vm2099_vm12, %vm2100_vm7 }
 0xa2f   : > { %v2096_v10 = vsub.f32 1.0, %v2095_v9 }
 0xa30   : > { %v2112_v11 = vmul.f32 %v3381_v5, %v2111_v56 }
 0xa31   : > { %v2097_v22 = vmul.f32 %v3383_v6, %v2096_v10 }
 0xa32   : > { %v2113_v15 = vadd.f32 %v3381_v5, %v2112_v11 }
 0xa33   : > { %v2098_v7 = vadd.f32 %v3383_v6, %v2097_v22 }
 0xa34   : > { %v2117_v19 = vsel %vm2116_vm8, %v3381_v5, %v2113_v15 }
 0xa35   : > { %v2122_v23 = vsel %vm2119_vm0, %v2121_v16, %v2117_v19  ;;  %v2102_v25 = vsel %vm2101_vm2, %v3383_v6, %v2098_v7  ;;  %v3309_v6 = vld [vmem:[%s4746_s11] ss:$0 sm:$0xff] }
 0xa36   : > { %v2123_v26 = vmul.f32 %v4418_v13, %v2122_v23  ;;  %v2107_v27 = vsel %vm2104_vm3, %v2106_v20, %v2102_v25 }
 0xa37   : > { %v2108_v28 = vmul.f32 %v4420_v41, %v2107_v27 }
 0xa38   : > { %v2215_v29 = vpack.c.bf16 %v2123_v26, %v2123_v26 }
 0xa39   : > { %v2214_v32 = vpack.c.bf16 %v2108_v28, %v2108_v28 }
 0xa3a   : > { %v2225_v33 = vunpack.c.l.b16 %v2215_v29 }
 0xa3b   : > { %v2224_v18 = vunpack.c.l.b16 %v2214_v32 }
 0xa3d   : > { %v2226_v55 = vpack.c.b16 %v2225_v33, %v2224_v18 }
 0xa3f   : > { %3078 = vmatmul.msk.bf16.vlgmr.msra.gmra.mxu0 %vm2021_vm5, %v2226_v55 }
 0xa7d   : > { %v2278_v40 = vpop.f32.mrf.mxu1 }
 0xa85   : > { %v2280_v2 = vpop.f32.mrf.mxu1 }
 0xa86   : > { %v3287_v43 = vpack.i.bf16 %v2280_v2, %v2278_v40 }
 0xa88   : > { %3288 = vrot.lane.b32.xlu1 %v3287_v43, %s3791_s20 }
 0xa8a   : > { %v2308_v4 = vpop.f32.mrf.mxu2 }
 0xa8d   : > { %v2338_v39 = vpop.f32.mrf.mxu3 }
 0xa92   : > { %v2310_v13 = vpop.f32.mrf.mxu2 }
 0xa93   : > { %v3292_v46 = vpack.i.bf16 %v2310_v13, %v2308_v4 }
 0xa95   : > { %3293 = vrot.lane.b32.xlu1 %v3292_v46, %s3792_s18  ;;  %v2340_v41 = vpop.f32.mrf.mxu3 }
 0xa96   : > { %v3297_v49 = vpack.i.bf16 %v2340_v41, %v2338_v39 }
 0xa9d   : > { %3298 = vrot.lane.b32.xlu1 %v3297_v49, %s3793_s13 }
 0xabc   : > { %v2248_v50 = vpop.f32.mrf.mxu0 }
 0xac4   : > { %v2250_v57 = vpop.f32.mrf.mxu0 }
 0xafa   : > { %v3289_v51 = vpop.permute.xlu1 %3288 }
 0xafb   : > { %v3291_v52 = vunpack.i.h.bf16 %v3289_v51  ;;  %v3290_v48 = vunpack.i.l.bf16 %v3289_v51 }
 0xafd   : > { %v2367_v60 = vsel %vm1364_vm9, %v2248_v50, %v3290_v48  ;;  %v2368_v62 = vsel %vm1364_vm9, %v2250_v57, %v3291_v52 }
 0xb07   : > { %v3294_v54 = vpop.permute.xlu1 %3293 }
 0xb08   : > { %v3296_v53 = vunpack.i.h.bf16 %v3294_v54  ;;  %v3295_v38 = vunpack.i.l.bf16 %v3294_v54 }
 0xb0a   : > { %v2369_v0 = vsel %vm1481_vm11, %v2367_v60, %v3295_v38  ;;  %v2370_v1 = vsel %vm1481_vm11, %v2368_v62, %v3296_v53 }
 0xb0f   : > { %v3299_v59 = vpop.permute.xlu1 %3298 }
 0xb10   : > { %v3301_v61 = vunpack.i.h.bf16 %v3299_v59  ;;  %v3300_v63 = vunpack.i.l.bf16 %v3299_v59 }
 0xb12   : > { %v2371_v3 = vsel %vm4743_vm1, %v2369_v0, %v3300_v63  ;;  %v2372_v37 = vsel %vm4744_vm13, %v2370_v1, %v3301_v61 }
 0xb13   : > { %v2377_v5 = vpack.c.bf16 %v2372_v37, %v2371_v3 }
 0xb15   : > { %3090 = vmatmul.msk.bf16.vlgmr.msrb.gmra.mxu0 %vm4745_vm14, %v2377_v5 }
 0xb92   : > { %v2402_v8 = vpop.f32.mrf.mxu0 }
 0xb93   : > { %v2407_v9 = vadd.f32 %v2402_v8, %v4310_v30 }
 0xb95   : > { %v4558_v56 = vadd.f32 %v3309_v6, %v2407_v9 }
 0xb99   : > { %2418 = sbr.rel (%p3091_p3) target bundleno = 3159 (0xc57), region = 148 }
 0xb9a   : > { %v2404_v44 = vpop.f32.mrf.mxu0 }
 0xb9b   : > { %v2408_v10 = vadd.f32 %v2404_v44, %v4315_v35 }
 0xb9d   : > { %v4561_v11 = vadd.f32 %v3309_v6, %v2408_v10 }
 0xb9e   : > { %v3794_v31 = vmov 4.0   ;;  %v2419_v21 = vsel %vm2021_vm5, %v2108_v28, 0.0  ;;  %v2420_v22 = vsel %vm2021_vm5, %v4497_v24, 0.0  ;;  %v2422_v30 = vsel %vm2021_vm5, %v4509_v36, 0.0 }
 0xb9f   : > { %3384 = vrcp.f32 %v3794_v31  ;;  %v2421_v14 = vadd.f32 %v2420_v22, %v2419_v21  ;;  %v2426_v35 = vsel %vm2021_vm5, %v2123_v26, 0.0  ;;  %v2427_v7 = vsel %vm2021_vm5, %v4506_v34, 0.0 }
 0xba0   : > { %v2424_v20 = vsel %vm2021_vm5, %v4522_v42, 0.0  ;;  %v2428_v25 = vadd.f32 %v2427_v7, %v2426_v35  ;;  %v2429_v24 = vsel %vm2021_vm5, %v4527_v47, 0.0  ;;  %v2431_v26 = vsel %vm2021_vm5, %v4519_v58, 0.0 }
 0xba1   : > { %v2423_v19 = vadd.f32 %v2422_v30, %v2421_v14  ;;  %vm2474_vm11 = vcmask 125952  }
 0xba2   : > { %v2430_v29 = vadd.f32 %v2429_v24, %v2428_v25 }
 0xba3   : > { %v2425_v28 = vadd.f32 %v2424_v20, %v2423_v19 }
 0xba4   : > { %v2432_v33 = vadd.f32 %v2431_v26, %v2430_v29 }
 0xba5   : > { %v3385_v15 = vpop.eup %3384 }
 0xba6   : > { %v2434_v16 = vmul.f32 4.0, %v3385_v15  ;;  %vm2438_vm9 = vweird.f32 %v3385_v15 }
 0xba8   : > { %v2435_v23 = vsub.f32 1.0, %v2434_v16 }
 0xbaa   : > { %v2436_v27 = vmul.f32 %v3385_v15, %v2435_v23 }
 0xbac   : > { %v2437_v36 = vadd.f32 %v3385_v15, %v2436_v27 }
 0xbae   : > { %v2439_v32 = vsel %vm2438_vm9, %v3385_v15, %v2437_v36 }
 0xbaf   : > { %v2440_v34 = vmul.f32 %v2439_v32, %v2425_v28  ;;  %v2441_v18 = vmul.f32 %v2439_v32, %v2432_v33 }
 0xbb1   : > { %2442 = vxpose.xlu0.b32.start [1/2] (short) (narrow) %v2440_v34, 8 }
 0xbb9   : > { %2443 = vxpose.xlu0.b32.end [2/2] (short) (narrow) %v2441_v18, 8 }
 0xc55   : > { %v2458_v42 = vpop.trf.xlu0 }
 0xc56   : > { %2475 = vst.msk [vmem:[%s4182_s10] sm:$0xf] %vm2474_vm11, %v2458_v42 }
 0xc57 PF: > { %vm4747_vm15 = vcmask 261120   ;;  %v3137_v17 = vld [vmem:[%s4108_s6 + $0x8] sm:$0xff]  ;;  %v3136_v51 = vld [vmem:[%s4108_s6] sm:$0xff]  ;;  %s4751_s27 = scalar_lea.vmem [#allocation10], %s4079_s12  ;;  %s4752_s6 = scalar_lea.vmem [#allocation12], %s4079_s12  ;;  %vm2605_vm1 = vcmask 523264  }
 0xc58   : > { %v2478_v47 = vsel %vm4747_vm15, %v4558_v56, 0.0  ;;  %vm4748_vm4 = vmmov %vm4747_vm15  ;;  %2562 = vmatpush.bf16.msrb.mxu1 %v3137_v17  ;;  %v3386_v6 = vld [vmem:[%s4751_s27] ss:$0 sm:$0xff]  ;;  %v3141_v15 = vld [vmem:[%s4177_s4 + $0x18] sm:$0xff]  ;;  %s4754_s15 = scalar_lea.vmem [#allocation15], %s4079_s12  ;;  %s4755_s10 = scalar_lea.vmem [#allocation16], %s4079_s12 }
 0xc59   : > { %2479 = vadd.xlane.f32.xlu0 %v2478_v47  ;;  %v2481_v55 = vsel %vm4748_vm4, %v4561_v11, 0.0  ;;  %vm4749_vm5 = vmmov %vm4748_vm4  ;;  %v3387_v31 = vld [vmem:[%s4752_s6] ss:$0 sm:$0xff]  ;;  %2613 = vmatpush.bf16.msrb.mxu2 %v3141_v15  ;;  %v3140_v16 = vld [vmem:[%s4177_s4 + $0x10] sm:$0xff] }
 0xc5a   : > { %vm4750_vm6 = vmmov %vm4748_vm4  ;;  %v3139_v35 = vld [vmem:[%s4177_s4 + $0x8] sm:$0xff]  ;;  %v3138_v7 = vld [vmem:[%s4177_s4] sm:$0xff] }
 0xc5b   : > { %vm4753_vm3 = vmmov %vm4748_vm4  ;;  %v3388_v20 = vld [vmem:[%s4754_s15] ss:$0 sm:$0xff] }
 0xc5c   : > { %2563 = vmatpush.bf16.msrb.mxu1 %v3136_v51  ;;  %v3389_v29 = vld [vmem:[%s4755_s10] ss:$0 sm:$0xff]  ;;  %vm4756_vm13 = vmmov %vm4753_vm3 }
 0xc5d   : > { %2614 = vmatpush.bf16.msrb.mxu2 %v3140_v16  ;;  %vm4757_vm14 = vmmov %vm4753_vm3 }
 0xc61   : > { %2482 = vadd.xlane.f32.xlu0 %v2481_v55  ;;  %2615 = vmatpush.bf16.msrb.mxu2 %v3139_v35 }
 0xc65   : > { %2616 = vmatpush.bf16.msrb.mxu2 %v3138_v7 }
 0xccc   : > { %v2480_v58 = vpop.xlane.xlu0 %2479 }
 0xccd   : > { %v2484_v40 = vmul.f32 %v2480_v58, %v4197_v12 }
 0xccf   : > { %v2486_v2 = vsub.f32 %v4558_v56, %v2484_v40 }
 0xcd1   : > { %v2488_v43 = vmul.f32 %v2486_v2, %v2486_v2 }
 0xcd3   : > { %v2490_v4 = vsel %vm4749_vm5, %v2488_v43, 0.0 }
 0xcd4   : > { %2491 = vadd.xlane.f32.xlu1 %v2490_v4  ;;  %v2483_v39 = vpop.xlane.xlu0 %2482 }
 0xcd5   : > { %v2485_v13 = vmul.f32 %v2483_v39, %v4197_v12 }
 0xcd7   : > { %v2487_v46 = vsub.f32 %v4561_v11, %v2485_v13 }
 0xcd9   : > { %v2489_v41 = vmul.f32 %v2487_v46, %v2487_v46 }
 0xcdb   : > { %v2493_v49 = vsel %vm4750_vm6, %v2489_v41, 0.0 }
 0xcdc   : > { %2494 = vadd.xlane.f32.xlu1 %v2493_v49 }
 0xd47   : > { %v2492_v45 = vpop.xlane.xlu1 %2491 }
 0xd48   : > { %v2496_v50 = vmul.f32 %v2492_v45, %v4197_v12 }
 0xd4a   : > { %v2498_v54 = vadd.f32 1e-05, %v2496_v50 }
 0xd4c   : > { %3390 = vrsqrt.f32 %v2498_v54  ;;  %vm2506_vm10 = vweird.f32 %v2498_v54 }
 0xd4f   : > { %v2495_v52 = vpop.xlane.xlu1 %2494 }
 0xd50   : > { %v2497_v48 = vmul.f32 %v2495_v52, %v4197_v12 }
 0xd52   : > { %v3391_v53 = vpop.eup %3390  ;;  %v2499_v38 = vadd.f32 1e-05, %v2497_v48 }
 0xd53   : > { %v2501_v57 = vmul.f32 %v3391_v53, %v2498_v54  ;;  %vm2507_vm7 = vweird.f32 %v3391_v53 }
 0xd54   : > { %3392 = vrsqrt.f32 %v2499_v38  ;;  %vm2508_vm8 = vmor %vm2506_vm10, %vm2507_vm7  ;;  %vm2516_vm0 = vweird.f32 %v2499_v38 }
 0xd55   : > { %v2502_v59 = vmul.f32 %v3391_v53, %v2501_v57 }
 0xd57   : > { %v2503_v60 = vmul.f32 0.5, %v2502_v59 }
 0xd59   : > { %v2504_v62 = vsub.f32 1.5, %v2503_v60 }
 0xd5a   : > { %v3393_v61 = vpop.eup %3392 }
 0xd5b   : > { %v2505_v63 = vmul.f32 %v3391_v53, %v2504_v62  ;;  %v2511_v0 = vmul.f32 %v3393_v61, %v2499_v38  ;;  %vm2517_vm12 = vweird.f32 %v3393_v61 }
 0xd5c   : > { %vm2518_vm2 = vmor %vm2516_vm0, %vm2517_vm12 }
 0xd5d   : > { %v2512_v1 = vmul.f32 %v3393_v61, %v2511_v0  ;;  %v2509_v37 = vsel %vm2508_vm8, %v3391_v53, %v2505_v63 }
 0xd5e   : > { %v2520_v12 = vmul.f32 %v2509_v37, %v2486_v2 }
 0xd5f   : > { %v2513_v3 = vmul.f32 0.5, %v2512_v1 }
 0xd60   : > { %v2525_v10 = vmul.f32 %v3386_v6, %v2520_v12 }
 0xd61   : > { %v2514_v5 = vsub.f32 1.5, %v2513_v3 }
 0xd62   : > { %v2530_v22 = vadd.f32 %v3387_v31, %v2525_v10 }
 0xd63   : > { %v2515_v8 = vmul.f32 %v3393_v61, %v2514_v5 }
 0xd65   : > { %v2519_v9 = vsel %vm2518_vm2, %v3393_v61, %v2515_v8 }
 0xd66   : > { %v2521_v44 = vmul.f32 %v2519_v9, %v2487_v46 }
 0xd68   : > { %v2526_v21 = vmul.f32 %v3386_v6, %v2521_v44 }
 0xd6a   : > { %v2531_v14 = vadd.f32 %v3387_v31, %v2526_v21 }
 0xd6c   : > { %v2536_v30 = vpack.c.bf16 %v2531_v14, %v2530_v22 }
 0xd6e   : > { %3100 = vmatmul.msk.bf16.vlgmr.msrb.gmra.mxu1 %vm4753_vm3, %v2536_v30 }
 0xdeb   : > { %v2565_v19 = vpop.f32.mrf.mxu1 }
 0xdec   : > { %v2566_v23 = vadd.f32 %v3388_v20, %v2565_v19 }
 0xdee   : > { %v2570_v24 = vmax.f32 %v2566_v23, 0.0 }
 0xdf3   : > { %v2567_v25 = vpop.f32.mrf.mxu1 }
 0xdf4   : > { %v2568_v27 = vadd.f32 %v3388_v20, %v2567_v25 }
 0xdf6   : > { %v2571_v28 = vmax.f32 %v2568_v27, 0.0 }
 0xdf8   : > { %v2580_v36 = vpack.c.bf16 %v2571_v28, %v2570_v24 }
 0xdfa   : > { %3117 = vmatmul.msk.bf16.vlgmr.msrb.gmra.mxu2 %vm2605_vm1, %v2580_v36 }
 0xe7d   : > { %v2618_v32 = vpop.f32.mrf.mxu2 }
 0xe7e   : > { %v2623_v26 = vadd.f32 %v2618_v32, %v4558_v56 }
 0xe80   : > { %v2629_v34 = vadd.f32 %v3389_v29, %v2623_v26 }
 0xe82   : > { %2631 = vst.msk [vmem:[%s4172_s30] sm:$0xff] %vm4756_vm13, %v2629_v34 }
 0xe85   : > { %v2620_v33 = vpop.f32.mrf.mxu2 }
 0xe86   : > { %v2624_v18 = vadd.f32 %v2620_v33, %v4561_v11 }
 0xe88   : > { %v2630_v42 = vadd.f32 %v3389_v29, %v2624_v18 }
 0xe8a   : > { %2632 = vst.msk [vmem:[%s4172_s30 + $0x8] sm:$0xff] %vm4757_vm14, %v2630_v42 }
 0xe8b PF: > { %s50_s0 = sadd.s32 1, %s3780_s0   ;;  %s4758_s4 = sld [smem:[#allocation24_spill]] }
 0xe8c   : > { %p47_p4 = scmp.ge.s32.totalorder %s50_s0, 6   ;;  %s4759_s26 = sld [smem:[#allocation29_spill]] }
 0xe8d   : > { %s4760_s27 = sld [smem:[#allocation25_spill]]  ;;  %s4764_s2 = smov %s3756_s25 }
 0xe8e   : > { %s4761_s3 = sld [smem:[#allocation26_spill]]  ;;  %49 = sbr.rel (!%p47_p4) target bundleno = 38 (0x26), region = 299 }
 0xe8f   : > { %s4762_s28 = sld [smem:[#allocation27_spill]] }
 0xe90   : > { %s4763_s29 = sld [smem:[#allocation28_spill]] }
 0xe91   : > { %s4765_s25 = smov %s4758_s4 }
 0xe93   :  { %2668 = vsyncpa [#allocation3], 1 }
 0xe94   :  { %2670 = vsyncpa [#allocation3 + $0x1], 1 }
 0xe95   :  { %2671 = vsyncpa [#allocation5], 1 }
 0xe96   :  { %2673 = vsyncpa [#allocation5 + $0x1], 1 }
 0xe97   :  { %2674 = vsyncpa [#allocation8], 1 }
 0xe98   :  { %2676 = vsyncpa [#allocation8 + $0x1], 1 }
 0xe99   :  { %2677 = vsyncpa [#allocation11], 1 }
 0xe9a   :  { %2679 = vsyncpa [#allocation11 + $0x1], 1 }
 0xe9b   :  { %2680 = vsyncpa [#allocation14], 1 }
 0xe9c   :  { %2682 = vsyncpa [#allocation14 + $0x1], 1 }
 0xe9d   :  { %2683 = vsyncpa [#allocation17], 1 }
 0xe9e   :  { %2685 = vsyncpa [#allocation17 + $0x1], 1 }

</bundles_post_ra>
